<compile_context>
chip_gen: v7x
topology: tpu7x:2x2x1
jax: 0.10.0
libtpu: 0.0.40
codegen_flags: <defaults>
</compile_context>

<pallas_src>
import functools

import jax
import jax.numpy as jnp
import numpy as np
from jax.experimental import pallas as pl
from jax.experimental.pallas import tpu as pltpu

HIDDEN = 32        # hidden_size
OUTPUT = 40        # output_size (vocab)
MAX_LENGTH = 10    # max_length (encoder length == number of decode steps here)
LANE = 128         # every packed chunk is padded to this lane width


def attn_decoder_kernel(H, V, L, T, tok_ref, emb_ref, enc_ref, w_ref, b_ref,
                        h0_ref, out_ref):
    """All T decoder steps in one kernel invocation; hidden carried in-register."""
    f32 = jnp.float32
    C = LANE

    hid = h0_ref[...]                                           # (1, H) initial hidden
    # Hoisted out of the unrolled loop (JAX does not CSE broadcast_in_dim).
    zV = jnp.zeros((1, C - V), f32)
    zH = jnp.zeros((1, C - H), f32)
    zL = jnp.zeros((1, C - L), f32)
    lane_ids = jax.lax.broadcasted_iota(jnp.int32, (1, V), 1)   # for one-hot gather

    rows = []
    for t in range(T):                                          # fully unrolled (T small)
        tok = tok_ref[t]                                        # scalar id from SMEM
        # Embedding row gather as a one-hot MXU matmul (no per-step DMA).
        oh = (lane_ids == tok).astype(f32)                                   # (1, V)
        emb = jnp.dot(oh, emb_ref[...], preferred_element_type=f32)          # (1, H)
        # TODO(synk): training-mode dropout on `emb` omitted (eval semantics);
        # would use pltpu.prng_seed / pltpu.prng_random_bits.

        # Merged same-LHS 256-lane dots (v6e/v7x MXU width; free split on v5e).
        e2 = jnp.dot(emb, w_ref[:, 0:2 * C], preferred_element_type=f32)     # [att_e | comb_e]
        h2 = jnp.dot(hid, w_ref[:, 2 * C:4 * C], preferred_element_type=f32) # [att_h | gh_raw]

        # attn_weights = softmax(Linear_{2H->L}(cat(emb, hid)))
        att = (e2[:, 0:C] + h2[:, 0:C] + b_ref[:, 0:C])[:, :L]               # (1, L)
        m = jnp.max(att, axis=-1, keepdims=True)
        e = jnp.exp(att - m)
        attn_w = e * pl.reciprocal(jnp.sum(e, axis=-1, keepdims=True), approx=True)

        # attn_applied = attn_weights @ encoder_outputs
        applied = jnp.dot(attn_w, enc_ref[...], preferred_element_type=f32)  # (1, H)

        # relu(attn_combine(cat(emb, attn_applied)))
        comb = (e2[:, C:2 * C]
                + jnp.dot(applied, w_ref[:, 4 * C:5 * C], preferred_element_type=f32)
                + b_ref[:, C:2 * C])[:, :H]
        x = jnp.maximum(comb, 0.0)                                            # (1, H)

        # single-step GRU (PyTorch gate order r, z, n)
        gi = (jnp.dot(x, w_ref[:, 5 * C:6 * C], preferred_element_type=f32)
              + b_ref[:, 2 * C:3 * C])
        gh = h2[:, C:2 * C] + b_ref[:, 3 * C:4 * C]
        rz = jax.nn.sigmoid(gi[:, 0:2 * H] + gh[:, 0:2 * H])   # one sigmoid for r and z
        r = rz[:, 0:H]
        z = rz[:, H:2 * H]
        n = jnp.tanh(gi[:, 2 * H:3 * H] + r * gh[:, 2 * H:3 * H])
        h_new = (1.0 - z) * n + z * hid                                       # (1, H)

        # output = log_softmax(out(h_new))
        o = (jnp.dot(h_new, w_ref[:, 6 * C:7 * C], preferred_element_type=f32)
             + b_ref[:, 4 * C:5 * C])[:, :V]
        om = jnp.max(o, axis=-1, keepdims=True)
        osub = o - om
        logp = osub - jnp.log(jnp.sum(jnp.exp(osub), axis=-1, keepdims=True)) # (1, V)

        rows.append(jnp.concatenate([logp, zV], axis=-1))      # lane-pad to 128
        rows.append(jnp.concatenate([h_new, zH], axis=-1))
        rows.append(jnp.concatenate([attn_w, zL], axis=-1))
        hid = h_new                                            # carry to next step

    # Single lane-dense, unmasked writeback for the whole decode.
    out_ref[...] = jnp.concatenate(rows, axis=0)               # (3*T, 128)


def _pad_lanes(x):
    x = jnp.asarray(x, jnp.float32)
    if x.ndim == 1:
        x = x.reshape(1, -1)
    pad = (-x.shape[-1]) % LANE
    return jnp.pad(x, ((0, 0), (0, pad)))


def prepare_params(params):
    """One-time packing: transpose/split/pad all weights into two lane-dense slabs.

    Weight chunk order groups same-LHS chunks so the kernel can issue merged
    256-lane dots: [attn_emb, comb_emb | attn_hid, gru_w_hh | comb_applied |
    gru_w_ih | out_w].
    """
    H, V, L = params["hidden_size"], params["output_size"], params["max_length"]
    assert L <= LANE and V <= LANE and 3 * H <= LANE, "packing assumes each chunk fits 128 lanes"

    w_attn = params["attn_w"].T        # (2H, L):  cat(emb, hid) weight
    w_comb = params["combine_w"].T     # (2H, H):  cat(emb, attn_applied) weight
    w_blocks = [
        w_attn[:H],                    # 0: attn, emb half          (LHS = emb)
        w_comb[:H],                    # 1: combine, emb half       (LHS = emb)
        w_attn[H:],                    # 2: attn, hid half          (LHS = hid)
        params["gru_w_hh"].T,          # 3: (H, 3H)                 (LHS = hid)
        w_comb[H:],                    # 4: combine, applied half   (LHS = attn_applied)
        params["gru_w_ih"].T,          # 5: (H, 3H)                 (LHS = x)
        params["out_w"].T,             # 6: (H, V)                  (LHS = h_new)
    ]
    w_slab = jnp.concatenate([_pad_lanes(w) for w in w_blocks], axis=1)   # (H, 7*128)

    b_blocks = [params["attn_b"], params["combine_b"],
                params["gru_b_ih"], params["gru_b_hh"], params["out_b"]]
    b_slab = jnp.concatenate([_pad_lanes(b) for b in b_blocks], axis=1)   # (1, 5*128)

    return dict(hidden_size=H, output_size=V, max_length=L,
                embedding=jnp.asarray(params["embedding"], jnp.float32),
                w_slab=w_slab, b_slab=b_slab)


def attn_decoder_decode(prep, tokens, hidden, encoder_outputs):
    """Run T = len(tokens) decoder steps (teacher-forced ids) in ONE pallas_call,
    with ONE grid step (all decode steps unrolled inside the kernel)."""
    H, V, L = prep["hidden_size"], prep["output_size"], prep["max_length"]
    tokens = jnp.asarray(tokens, jnp.int32).reshape(-1)
    T = int(tokens.shape[0])
    h0 = jnp.asarray(hidden, jnp.float32).reshape(1, H)
    enc = jnp.asarray(encoder_outputs, jnp.float32)

    grid_spec = pltpu.PrefetchScalarGridSpec(
        num_scalar_prefetch=1,                                 # token ids -> SMEM
        grid=(1,),                                             # single invocation
        in_specs=[
            pl.BlockSpec((V, H), lambda i, tok: (0, 0)),           # embedding table (resident)
            pl.BlockSpec((L, H), lambda i, tok: (0, 0)),           # encoder outputs (resident)
            pl.BlockSpec((H, 7 * LANE), lambda i, tok: (0, 0)),    # packed weights (resident)
            pl.BlockSpec((1, 5 * LANE), lambda i, tok: (0, 0)),    # packed biases (resident)
            pl.BlockSpec((1, H), lambda i, tok: (0, 0)),           # initial hidden
        ],
        out_specs=pl.BlockSpec((3 * T, LANE), lambda i, tok: (0, 0)),
    )
    packed = pl.pallas_call(
        functools.partial(attn_decoder_kernel, H, V, L, T),
        out_shape=jax.ShapeDtypeStruct((3 * T, LANE), jnp.float32),
        grid_spec=grid_spec,
        compiler_params=pltpu.CompilerParams(dimension_semantics=("arbitrary",)),
    )(tokens, prep["embedding"], enc, prep["w_slab"], prep["b_slab"], h0)

    packed = packed.reshape(T, 3, LANE)
    logp = packed[:, 0, :V]       # (T, V) per-step log-probabilities
    hiddens = packed[:, 1, :H]    # (T, H) per-step new hidden state
    attn_w = packed[:, 2, :L]     # (T, L) per-step attention weights
    return logp, hiddens, attn_w


def attn_decoder_forward(prep, token, hidden, encoder_outputs):
    """Single-step call matching the PyTorch module's forward signature/outputs."""
    H = prep["hidden_size"]
    logp, hiddens, attn_w = attn_decoder_decode(prep, jnp.reshape(token, (1,)),
                                                hidden, encoder_outputs)
    return logp, hiddens[-1].reshape(1, 1, H), attn_w


# ---------------------------- pure-JAX reference ----------------------------

def reference_step(params, token, hidden, enc):
    H = params["hidden_size"]
    P = jax.lax.Precision.HIGHEST
    emb = params["embedding"][token].reshape(1, H)
    hid = hidden.reshape(1, H)
    logits = jnp.dot(jnp.concatenate([emb, hid], axis=1), params["attn_w"].T,
                     precision=P) + params["attn_b"]
    attn_w = jax.nn.softmax(logits, axis=1)
    applied = jnp.dot(attn_w, enc, precision=P)
    comb = jnp.dot(jnp.concatenate([emb, applied], axis=1), params["combine_w"].T,
                   precision=P) + params["combine_b"]
    x = jax.nn.relu(comb)
    gi = jnp.dot(x, params["gru_w_ih"].T, precision=P) + params["gru_b_ih"]
    gh = jnp.dot(hid, params["gru_w_hh"].T, precision=P) + params["gru_b_hh"]
    r = jax.nn.sigmoid(gi[:, :H] + gh[:, :H])
    z = jax.nn.sigmoid(gi[:, H:2 * H] + gh[:, H:2 * H])
    n = jnp.tanh(gi[:, 2 * H:] + r * gh[:, 2 * H:])
    h_new = (1 - z) * n + z * hid
    o = jnp.dot(h_new, params["out_w"].T, precision=P) + params["out_b"]
    return jax.nn.log_softmax(o, axis=1), h_new, attn_w


def reference_decode(params, tokens, hidden, enc):
    hid = jnp.asarray(hidden, jnp.float32).reshape(1, -1)
    logps, hids, attns = [], [], []
    for t in range(int(tokens.shape[0])):
        logp, hid, aw = reference_step(params, tokens[t], hid, enc)
        logps.append(logp), hids.append(hid), attns.append(aw)
    return (jnp.concatenate(logps, axis=0),
            jnp.concatenate(hids, axis=0),
            jnp.concatenate(attns, axis=0))


if __name__ == "__main__":
    H, V, L = HIDDEN, OUTPUT, MAX_LENGTH
    key = jax.random.PRNGKey(0)
    keys = jax.random.split(key, 16)

    def rnd(k, shape, scale=0.1):
        return (scale * jax.random.normal(k, shape)).astype(jnp.float32)

    params = dict(
        hidden_size=H, output_size=V, max_length=L,
        embedding=rnd(keys[0], (V, H), 1.0),
        attn_w=rnd(keys[1], (L, 2 * H)), attn_b=rnd(keys[2], (L,)),
        combine_w=rnd(keys[3], (H, 2 * H)), combine_b=rnd(keys[4], (H,)),
        gru_w_ih=rnd(keys[5], (3 * H, H)), gru_b_ih=rnd(keys[6], (3 * H,)),
        gru_w_hh=rnd(keys[7], (3 * H, H)), gru_b_hh=rnd(keys[8], (3 * H,)),
        out_w=rnd(keys[9], (V, H)), out_b=rnd(keys[10], (V,)),
    )
    prep = prepare_params(params)   # one-time transpose/split/pack (not per call)

    tokens = jax.random.randint(keys[11], (L,), 0, V, dtype=jnp.int32)  # teacher-forced ids
    hidden0 = rnd(keys[12], (1, 1, H), 1.0)
    encoder_outputs = rnd(keys[13], (L, H), 1.0)

    # Fused decode: ONE pallas_call, ONE grid step, all MAX_LENGTH steps unrolled inside.
    logp, hiddens, attn_w = jax.block_until_ready(
        attn_decoder_decode(prep, tokens, hidden0, encoder_outputs))
    assert logp.shape == (L, V) and hiddens.shape == (L, H) and attn_w.shape == (L, L)

    ref_logp, ref_hid, ref_attn = reference_decode(params, tokens, hidden0, encoder_outputs)
    # 5e-3 tolerance covers MXU f32 pass precision + approx reciprocal vs. HIGHEST reference.
    tol = dict(atol=5e-3, rtol=5e-3)
    np.testing.assert_allclose(np.asarray(logp), np.asarray(ref_logp), **tol)
    np.testing.assert_allclose(np.asarray(hiddens), np.asarray(ref_hid), **tol)
    np.testing.assert_allclose(np.asarray(attn_w), np.asarray(ref_attn), **tol)

    # Single-step call equivalent to the PyTorch module's forward().
    logp1, newh1, attn1 = jax.block_until_ready(
        attn_decoder_forward(prep, tokens[0], hidden0, encoder_outputs))
    assert logp1.shape == (1, V) and newh1.shape == (1, 1, H) and attn1.shape == (1, L)
    r_logp1, r_h1, r_a1 = reference_step(params, tokens[0], hidden0, encoder_outputs)
    np.testing.assert_allclose(np.asarray(logp1), np.asarray(r_logp1), **tol)
    np.testing.assert_allclose(np.asarray(newh1.reshape(1, H)), np.asarray(r_h1), **tol)
    np.testing.assert_allclose(np.asarray(attn1), np.asarray(r_a1), **tol)

    print("KERNEL_OK")
</pallas_src>

<mosaic_0001>
module attributes {stable_mosaic.version = 11 : i64} {
  func.func @attn_decoder_kernel(%arg0: i32, %arg1: memref<10xi32, #tpu.memory_space<smem>>, %arg2: memref<40x32xf32, #tpu.memory_space<vmem>>, %arg3: memref<10x32xf32, #tpu.memory_space<vmem>>, %arg4: memref<32x896xf32, #tpu.memory_space<vmem>>, %arg5: memref<1x640xf32, #tpu.memory_space<vmem>>, %arg6: memref<1x32xf32, #tpu.memory_space<vmem>>, %arg7: memref<30x128xf32, #tpu.memory_space<vmem>>) attributes {dimension_semantics = [#tpu.dimension_semantics<arbitrary>], iteration_bounds = array<i64: 1>, scalar_prefetch = 1 : i64, scratch_operands = 0 : i64, tpu.core_type = #tpu.core_type<tc>, window_params = [{pipeline_mode = #tpu.pipeline_mode<synchronous>, transform_indices = @transform_0, window_bounds = array<i64: 40, 32>}, {pipeline_mode = #tpu.pipeline_mode<synchronous>, transform_indices = @transform_1, window_bounds = array<i64: 10, 32>}, {pipeline_mode = #tpu.pipeline_mode<synchronous>, transform_indices = @transform_2, window_bounds = array<i64: 32, 896>}, {pipeline_mode = #tpu.pipeline_mode<synchronous>, transform_indices = @transform_3, window_bounds = array<i64: 1, 640>}, {pipeline_mode = #tpu.pipeline_mode<synchronous>, transform_indices = @transform_4, window_bounds = array<i64: 1, 32>}, {pipeline_mode = #tpu.pipeline_mode<synchronous>, transform_indices = @transform_5, window_bounds = array<i64: 30, 128>}]} {
    %c0 = arith.constant 0 : index
    %c0_0 = arith.constant 0 : index
    %0 = vector.load %arg6[%c0, %c0_0] : memref<1x32xf32, #tpu.memory_space<vmem>>, vector<1x32xf32>
    %cst = arith.constant 0.000000e+00 : f32
    %1 = vector.broadcast %cst : f32 to vector<1x88xf32>
    %cst_1 = arith.constant 0.000000e+00 : f32
    %2 = vector.broadcast %cst_1 : f32 to vector<1x96xf32>
    %cst_2 = arith.constant 0.000000e+00 : f32
    %3 = vector.broadcast %cst_2 : f32 to vector<1x118xf32>
    %4 = tpu.iota {dimensions = array<i32: 1>} : vector<1x40xi32>
    %c0_3 = arith.constant 0 : index
    %5 = memref.load %arg1[%c0_3] : memref<10xi32, #tpu.memory_space<smem>>
    %6 = vector.broadcast %5 : i32 to vector<1x40xi32>
    %7 = arith.cmpi eq, %4, %6 : vector<1x40xi32>
    %8 = arith.extui %7 : vector<1x40xi1> to vector<1x40xi32>
    %9 = arith.sitofp %8 : vector<1x40xi32> to vector<1x40xf32>
    %c0_4 = arith.constant 0 : index
    %c0_5 = arith.constant 0 : index
    %10 = vector.load %arg2[%c0_4, %c0_5] : memref<40x32xf32, #tpu.memory_space<vmem>>, vector<40x32xf32>
    %cst_6 = arith.constant dense<0.000000e+00> : vector<1x32xf32>
    %11 = tpu.matmul %9, %10, %cst_6 {dimension_numbers = #tpu.dot_dimension_numbers<[1], [0], [0], [1], [0, 0, 1, 1], [], []>} : vector<1x40xf32>, vector<40x32xf32>, vector<1x32xf32> -> vector<1x32xf32>
    %c0_7 = arith.constant 0 : index
    %c0_8 = arith.constant 0 : index
    %12 = vector.load %arg4[%c0_7, %c0_8] : memref<32x896xf32, #tpu.memory_space<vmem>>, vector<32x256xf32>
    %cst_9 = arith.constant dense<0.000000e+00> : vector<1x256xf32>
    %13 = tpu.matmul %11, %12, %cst_9 {dimension_numbers = #tpu.dot_dimension_numbers<[1], [0], [0], [1], [0, 0, 1, 1], [], []>} : vector<1x32xf32>, vector<32x256xf32>, vector<1x256xf32> -> vector<1x256xf32>
    %c0_10 = arith.constant 0 : index
    %c256 = arith.constant 256 : index
    %14 = vector.load %arg4[%c0_10, %c256] : memref<32x896xf32, #tpu.memory_space<vmem>>, vector<32x256xf32>
    %cst_11 = arith.constant dense<0.000000e+00> : vector<1x256xf32>
    %15 = tpu.matmul %0, %14, %cst_11 {dimension_numbers = #tpu.dot_dimension_numbers<[1], [0], [0], [1], [0, 0, 1, 1], [], []>} : vector<1x32xf32>, vector<32x256xf32>, vector<1x256xf32> -> vector<1x256xf32>
    %16 = vector.extract_strided_slice %13 {offsets = [0, 0], sizes = [1, 128], strides = [1, 1]} : vector<1x256xf32> to vector<1x128xf32>
    %17 = vector.extract_strided_slice %15 {offsets = [0, 0], sizes = [1, 128], strides = [1, 1]} : vector<1x256xf32> to vector<1x128xf32>
    %18 = arith.addf %16, %17 : vector<1x128xf32>
    %c0_12 = arith.constant 0 : index
    %c0_13 = arith.constant 0 : index
    %19 = vector.load %arg5[%c0_12, %c0_13] : memref<1x640xf32, #tpu.memory_space<vmem>>, vector<1x128xf32>
    %20 = arith.addf %18, %19 : vector<1x128xf32>
    %21 = vector.extract_strided_slice %20 {offsets = [0, 0], sizes = [1, 10], strides = [1, 1]} : vector<1x128xf32> to vector<1x10xf32>
    %cst_14 = arith.constant dense<0xFF800000> : vector<1xf32>
    %22 = vector.multi_reduction <maximumf>, %21, %cst_14 [1] : vector<1x10xf32> to vector<1xf32>
    %23 = vector.shape_cast %22 : vector<1xf32> to vector<1x1xf32>
    %24 = vector.broadcast %23 : vector<1x1xf32> to vector<1x10xf32>
    %25 = arith.subf %21, %24 : vector<1x10xf32>
    %26 = math.exp %25 : vector<1x10xf32>
    %cst_15 = arith.constant dense<0.000000e+00> : vector<1xf32>
    %27 = vector.multi_reduction <add>, %26, %cst_15 [1] : vector<1x10xf32> to vector<1xf32>
    %28 = vector.shape_cast %27 : vector<1xf32> to vector<1x1xf32>
    %29 = tpu.reciprocal %28 {approx = true} : vector<1x1xf32> -> vector<1x1xf32>
    %30 = vector.broadcast %29 : vector<1x1xf32> to vector<1x10xf32>
    %31 = arith.mulf %26, %30 : vector<1x10xf32>
    %c0_16 = arith.constant 0 : index
    %c0_17 = arith.constant 0 : index
    %32 = vector.load %arg3[%c0_16, %c0_17] : memref<10x32xf32, #tpu.memory_space<vmem>>, vector<10x32xf32>
    %cst_18 = arith.constant dense<0.000000e+00> : vector<1x32xf32>
    %33 = tpu.matmul %31, %32, %cst_18 {dimension_numbers = #tpu.dot_dimension_numbers<[1], [0], [0], [1], [0, 0, 1, 1], [], []>} : vector<1x10xf32>, vector<10x32xf32>, vector<1x32xf32> -> vector<1x32xf32>
    %34 = vector.extract_strided_slice %13 {offsets = [0, 128], sizes = [1, 128], strides = [1, 1]} : vector<1x256xf32> to vector<1x128xf32>
    %c0_19 = arith.constant 0 : index
    %c512 = arith.constant 512 : index
    %35 = vector.load %arg4[%c0_19, %c512] : memref<32x896xf32, #tpu.memory_space<vmem>>, vector<32x128xf32>
    %cst_20 = arith.constant dense<0.000000e+00> : vector<1x128xf32>
    %36 = tpu.matmul %33, %35, %cst_20 {dimension_numbers = #tpu.dot_dimension_numbers<[1], [0], [0], [1], [0, 0, 1, 1], [], []>} : vector<1x32xf32>, vector<32x128xf32>, vector<1x128xf32> -> vector<1x128xf32>
    %37 = arith.addf %34, %36 : vector<1x128xf32>
    %c0_21 = arith.constant 0 : index
    %c128 = arith.constant 128 : index
    %38 = vector.load %arg5[%c0_21, %c128] : memref<1x640xf32, #tpu.memory_space<vmem>>, vector<1x128xf32>
    %39 = arith.addf %37, %38 : vector<1x128xf32>
    %40 = vector.extract_strided_slice %39 {offsets = [0, 0], sizes = [1, 32], strides = [1, 1]} : vector<1x128xf32> to vector<1x32xf32>
    %cst_22 = arith.constant 0.000000e+00 : f32
    %41 = vector.broadcast %cst_22 : f32 to vector<1x32xf32>
    %42 = arith.maximumf %40, %41 : vector<1x32xf32>
    %c0_23 = arith.constant 0 : index
    %c640 = arith.constant 640 : index
    %43 = vector.load %arg4[%c0_23, %c640] : memref<32x896xf32, #tpu.memory_space<vmem>>, vector<32x128xf32>
    %cst_24 = arith.constant dense<0.000000e+00> : vector<1x128xf32>
    %44 = tpu.matmul %42, %43, %cst_24 {dimension_numbers = #tpu.dot_dimension_numbers<[1], [0], [0], [1], [0, 0, 1, 1], [], []>} : vector<1x32xf32>, vector<32x128xf32>, vector<1x128xf32> -> vector<1x128xf32>
    %c0_25 = arith.constant 0 : index
    %c256_26 = arith.constant 256 : index
    %45 = vector.load %arg5[%c0_25, %c256_26] : memref<1x640xf32, #tpu.memory_space<vmem>>, vector<1x128xf32>
    %46 = arith.addf %44, %45 : vector<1x128xf32>
    %47 = vector.extract_strided_slice %15 {offsets = [0, 128], sizes = [1, 128], strides = [1, 1]} : vector<1x256xf32> to vector<1x128xf32>
    %c0_27 = arith.constant 0 : index
    %c384 = arith.constant 384 : index
    %48 = vector.load %arg5[%c0_27, %c384] : memref<1x640xf32, #tpu.memory_space<vmem>>, vector<1x128xf32>
    %49 = arith.addf %47, %48 : vector<1x128xf32>
    %50 = vector.extract_strided_slice %46 {offsets = [0, 0], sizes = [1, 64], strides = [1, 1]} : vector<1x128xf32> to vector<1x64xf32>
    %51 = vector.extract_strided_slice %49 {offsets = [0, 0], sizes = [1, 64], strides = [1, 1]} : vector<1x128xf32> to vector<1x64xf32>
    %52 = arith.addf %50, %51 : vector<1x64xf32>
    %53 = arith.negf %52 : vector<1x64xf32>
    %54 = math.exp %53 : vector<1x64xf32>
    %cst_28 = arith.constant 1.000000e+00 : f32
    %55 = vector.broadcast %cst_28 : f32 to vector<1x64xf32>
    %56 = arith.addf %55, %54 : vector<1x64xf32>
    %57 = arith.divf %55, %56 : vector<1x64xf32>
    %58 = vector.extract_strided_slice %57 {offsets = [0, 0], sizes = [1, 32], strides = [1, 1]} : vector<1x64xf32> to vector<1x32xf32>
    %59 = vector.extract_strided_slice %57 {offsets = [0, 32], sizes = [1, 32], strides = [1, 1]} : vector<1x64xf32> to vector<1x32xf32>
    %60 = vector.extract_strided_slice %46 {offsets = [0, 64], sizes = [1, 32], strides = [1, 1]} : vector<1x128xf32> to vector<1x32xf32>
    %61 = vector.extract_strided_slice %49 {offsets = [0, 64], sizes = [1, 32], strides = [1, 1]} : vector<1x128xf32> to vector<1x32xf32>
    %62 = arith.mulf %58, %61 : vector<1x32xf32>
    %63 = arith.addf %60, %62 : vector<1x32xf32>
    %64 = math.tanh %63 : vector<1x32xf32>
    %cst_29 = arith.constant 1.000000e+00 : f32
    %65 = vector.broadcast %cst_29 : f32 to vector<1x32xf32>
    %66 = arith.subf %65, %59 : vector<1x32xf32>
    %67 = arith.mulf %66, %64 : vector<1x32xf32>
    %68 = arith.mulf %59, %0 : vector<1x32xf32>
    %69 = arith.addf %67, %68 : vector<1x32xf32>
    %c0_30 = arith.constant 0 : index
    %c768 = arith.constant 768 : index
    %70 = vector.load %arg4[%c0_30, %c768] : memref<32x896xf32, #tpu.memory_space<vmem>>, vector<32x128xf32>
    %cst_31 = arith.constant dense<0.000000e+00> : vector<1x128xf32>
    %71 = tpu.matmul %69, %70, %cst_31 {dimension_numbers = #tpu.dot_dimension_numbers<[1], [0], [0], [1], [0, 0, 1, 1], [], []>} : vector<1x32xf32>, vector<32x128xf32>, vector<1x128xf32> -> vector<1x128xf32>
    %c0_32 = arith.constant 0 : index
    %c512_33 = arith.constant 512 : index
    %72 = vector.load %arg5[%c0_32, %c512_33] : memref<1x640xf32, #tpu.memory_space<vmem>>, vector<1x128xf32>
    %73 = arith.addf %71, %72 : vector<1x128xf32>
    %74 = vector.extract_strided_slice %73 {offsets = [0, 0], sizes = [1, 40], strides = [1, 1]} : vector<1x128xf32> to vector<1x40xf32>
    %cst_34 = arith.constant dense<0xFF800000> : vector<1xf32>
    %75 = vector.multi_reduction <maximumf>, %74, %cst_34 [1] : vector<1x40xf32> to vector<1xf32>
    %76 = vector.shape_cast %75 : vector<1xf32> to vector<1x1xf32>
    %77 = vector.broadcast %76 : vector<1x1xf32> to vector<1x40xf32>
    %78 = arith.subf %74, %77 : vector<1x40xf32>
    %79 = math.exp %78 : vector<1x40xf32>
    %cst_35 = arith.constant dense<0.000000e+00> : vector<1xf32>
    %80 = vector.multi_reduction <add>, %79, %cst_35 [1] : vector<1x40xf32> to vector<1xf32>
    %81 = vector.shape_cast %80 : vector<1xf32> to vector<1x1xf32>
    %82 = math.log %81 : vector<1x1xf32>
    %83 = vector.broadcast %82 : vector<1x1xf32> to vector<1x40xf32>
    %84 = arith.subf %78, %83 : vector<1x40xf32>
    %85 = tpu.concatenate %84, %1 in 1 : vector<1x40xf32>, vector<1x88xf32> -> vector<1x128xf32>
    %86 = tpu.concatenate %69, %2 in 1 : vector<1x32xf32>, vector<1x96xf32> -> vector<1x128xf32>
    %87 = tpu.concatenate %31, %3 in 1 : vector<1x10xf32>, vector<1x118xf32> -> vector<1x128xf32>
    %c1 = arith.constant 1 : index
    %88 = memref.load %arg1[%c1] : memref<10xi32, #tpu.memory_space<smem>>
    %89 = vector.broadcast %88 : i32 to vector<1x40xi32>
    %90 = arith.cmpi eq, %4, %89 : vector<1x40xi32>
    %91 = arith.extui %90 : vector<1x40xi1> to vector<1x40xi32>
    %92 = arith.sitofp %91 : vector<1x40xi32> to vector<1x40xf32>
    %c0_36 = arith.constant 0 : index
    %c0_37 = arith.constant 0 : index
    %93 = vector.load %arg2[%c0_36, %c0_37] : memref<40x32xf32, #tpu.memory_space<vmem>>, vector<40x32xf32>
    %cst_38 = arith.constant dense<0.000000e+00> : vector<1x32xf32>
    %94 = tpu.matmul %92, %93, %cst_38 {dimension_numbers = #tpu.dot_dimension_numbers<[1], [0], [0], [1], [0, 0, 1, 1], [], []>} : vector<1x40xf32>, vector<40x32xf32>, vector<1x32xf32> -> vector<1x32xf32>
    %c0_39 = arith.constant 0 : index
    %c0_40 = arith.constant 0 : index
    %95 = vector.load %arg4[%c0_39, %c0_40] : memref<32x896xf32, #tpu.memory_space<vmem>>, vector<32x256xf32>
    %cst_41 = arith.constant dense<0.000000e+00> : vector<1x256xf32>
    %96 = tpu.matmul %94, %95, %cst_41 {dimension_numbers = #tpu.dot_dimension_numbers<[1], [0], [0], [1], [0, 0, 1, 1], [], []>} : vector<1x32xf32>, vector<32x256xf32>, vector<1x256xf32> -> vector<1x256xf32>
    %c0_42 = arith.constant 0 : index
    %c256_43 = arith.constant 256 : index
    %97 = vector.load %arg4[%c0_42, %c256_43] : memref<32x896xf32, #tpu.memory_space<vmem>>, vector<32x256xf32>
    %cst_44 = arith.constant dense<0.000000e+00> : vector<1x256xf32>
    %98 = tpu.matmul %69, %97, %cst_44 {dimension_numbers = #tpu.dot_dimension_numbers<[1], [0], [0], [1], [0, 0, 1, 1], [], []>} : vector<1x32xf32>, vector<32x256xf32>, vector<1x256xf32> -> vector<1x256xf32>
    %99 = vector.extract_strided_slice %96 {offsets = [0, 0], sizes = [1, 128], strides = [1, 1]} : vector<1x256xf32> to vector<1x128xf32>
    %100 = vector.extract_strided_slice %98 {offsets = [0, 0], sizes = [1, 128], strides = [1, 1]} : vector<1x256xf32> to vector<1x128xf32>
    %101 = arith.addf %99, %100 : vector<1x128xf32>
    %c0_45 = arith.constant 0 : index
    %c0_46 = arith.constant 0 : index
    %102 = vector.load %arg5[%c0_45, %c0_46] : memref<1x640xf32, #tpu.memory_space<vmem>>, vector<1x128xf32>
    %103 = arith.addf %101, %102 : vector<1x128xf32>
    %104 = vector.extract_strided_slice %103 {offsets = [0, 0], sizes = [1, 10], strides = [1, 1]} : vector<1x128xf32> to vector<1x10xf32>
    %cst_47 = arith.constant dense<0xFF800000> : vector<1xf32>
    %105 = vector.multi_reduction <maximumf>, %104, %cst_47 [1] : vector<1x10xf32> to vector<1xf32>
    %106 = vector.shape_cast %105 : vector<1xf32> to vector<1x1xf32>
    %107 = vector.broadcast %106 : vector<1x1xf32> to vector<1x10xf32>
    %108 = arith.subf %104, %107 : vector<1x10xf32>
    %109 = math.exp %108 : vector<1x10xf32>
    %cst_48 = arith.constant dense<0.000000e+00> : vector<1xf32>
    %110 = vector.multi_reduction <add>, %109, %cst_48 [1] : vector<1x10xf32> to vector<1xf32>
    %111 = vector.shape_cast %110 : vector<1xf32> to vector<1x1xf32>
    %112 = tpu.reciprocal %111 {approx = true} : vector<1x1xf32> -> vector<1x1xf32>
    %113 = vector.broadcast %112 : vector<1x1xf32> to vector<1x10xf32>
    %114 = arith.mulf %109, %113 : vector<1x10xf32>
    %c0_49 = arith.constant 0 : index
    %c0_50 = arith.constant 0 : index
    %115 = vector.load %arg3[%c0_49, %c0_50] : memref<10x32xf32, #tpu.memory_space<vmem>>, vector<10x32xf32>
    %cst_51 = arith.constant dense<0.000000e+00> : vector<1x32xf32>
    %116 = tpu.matmul %114, %115, %cst_51 {dimension_numbers = #tpu.dot_dimension_numbers<[1], [0], [0], [1], [0, 0, 1, 1], [], []>} : vector<1x10xf32>, vector<10x32xf32>, vector<1x32xf32> -> vector<1x32xf32>
    %117 = vector.extract_strided_slice %96 {offsets = [0, 128], sizes = [1, 128], strides = [1, 1]} : vector<1x256xf32> to vector<1x128xf32>
    %c0_52 = arith.constant 0 : index
    %c512_53 = arith.constant 512 : index
    %118 = vector.load %arg4[%c0_52, %c512_53] : memref<32x896xf32, #tpu.memory_space<vmem>>, vector<32x128xf32>
    %cst_54 = arith.constant dense<0.000000e+00> : vector<1x128xf32>
    %119 = tpu.matmul %116, %118, %cst_54 {dimension_numbers = #tpu.dot_dimension_numbers<[1], [0], [0], [1], [0, 0, 1, 1], [], []>} : vector<1x32xf32>, vector<32x128xf32>, vector<1x128xf32> -> vector<1x128xf32>
    %120 = arith.addf %117, %119 : vector<1x128xf32>
    %c0_55 = arith.constant 0 : index
    %c128_56 = arith.constant 128 : index
    %121 = vector.load %arg5[%c0_55, %c128_56] : memref<1x640xf32, #tpu.memory_space<vmem>>, vector<1x128xf32>
    %122 = arith.addf %120, %121 : vector<1x128xf32>
    %123 = vector.extract_strided_slice %122 {offsets = [0, 0], sizes = [1, 32], strides = [1, 1]} : vector<1x128xf32> to vector<1x32xf32>
    %cst_57 = arith.constant 0.000000e+00 : f32
    %124 = vector.broadcast %cst_57 : f32 to vector<1x32xf32>
    %125 = arith.maximumf %123, %124 : vector<1x32xf32>
    %c0_58 = arith.constant 0 : index
    %c640_59 = arith.constant 640 : index
    %126 = vector.load %arg4[%c0_58, %c640_59] : memref<32x896xf32, #tpu.memory_space<vmem>>, vector<32x128xf32>
    %cst_60 = arith.constant dense<0.000000e+00> : vector<1x128xf32>
    %127 = tpu.matmul %125, %126, %cst_60 {dimension_numbers = #tpu.dot_dimension_numbers<[1], [0], [0], [1], [0, 0, 1, 1], [], []>} : vector<1x32xf32>, vector<32x128xf32>, vector<1x128xf32> -> vector<1x128xf32>
    %c0_61 = arith.constant 0 : index
    %c256_62 = arith.constant 256 : index
    %128 = vector.load %arg5[%c0_61, %c256_62] : memref<1x640xf32, #tpu.memory_space<vmem>>, vector<1x128xf32>
    %129 = arith.addf %127, %128 : vector<1x128xf32>
    %130 = vector.extract_strided_slice %98 {offsets = [0, 128], sizes = [1, 128], strides = [1, 1]} : vector<1x256xf32> to vector<1x128xf32>
    %c0_63 = arith.constant 0 : index
    %c384_64 = arith.constant 384 : index
    %131 = vector.load %arg5[%c0_63, %c384_64] : memref<1x640xf32, #tpu.memory_space<vmem>>, vector<1x128xf32>
    %132 = arith.addf %130, %131 : vector<1x128xf32>
    %133 = vector.extract_strided_slice %129 {offsets = [0, 0], sizes = [1, 64], strides = [1, 1]} : vector<1x128xf32> to vector<1x64xf32>
    %134 = vector.extract_strided_slice %132 {offsets = [0, 0], sizes = [1, 64], strides = [1, 1]} : vector<1x128xf32> to vector<1x64xf32>
    %135 = arith.addf %133, %134 : vector<1x64xf32>
    %136 = arith.negf %135 : vector<1x64xf32>
    %137 = math.exp %136 : vector<1x64xf32>
    %cst_65 = arith.constant 1.000000e+00 : f32
    %138 = vector.broadcast %cst_65 : f32 to vector<1x64xf32>
    %139 = arith.addf %138, %137 : vector<1x64xf32>
    %140 = arith.divf %138, %139 : vector<1x64xf32>
    %141 = vector.extract_strided_slice %140 {offsets = [0, 0], sizes = [1, 32], strides = [1, 1]} : vector<1x64xf32> to vector<1x32xf32>
    %142 = vector.extract_strided_slice %140 {offsets = [0, 32], sizes = [1, 32], strides = [1, 1]} : vector<1x64xf32> to vector<1x32xf32>
    %143 = vector.extract_strided_slice %129 {offsets = [0, 64], sizes = [1, 32], strides = [1, 1]} : vector<1x128xf32> to vector<1x32xf32>
    %144 = vector.extract_strided_slice %132 {offsets = [0, 64], sizes = [1, 32], strides = [1, 1]} : vector<1x128xf32> to vector<1x32xf32>
    %145 = arith.mulf %141, %144 : vector<1x32xf32>
    %146 = arith.addf %143, %145 : vector<1x32xf32>
    %147 = math.tanh %146 : vector<1x32xf32>
    %cst_66 = arith.constant 1.000000e+00 : f32
    %148 = vector.broadcast %cst_66 : f32 to vector<1x32xf32>
    %149 = arith.subf %148, %142 : vector<1x32xf32>
    %150 = arith.mulf %149, %147 : vector<1x32xf32>
    %151 = arith.mulf %142, %69 : vector<1x32xf32>
    %152 = arith.addf %150, %151 : vector<1x32xf32>
    %c0_67 = arith.constant 0 : index
    %c768_68 = arith.constant 768 : index
    %153 = vector.load %arg4[%c0_67, %c768_68] : memref<32x896xf32, #tpu.memory_space<vmem>>, vector<32x128xf32>
    %cst_69 = arith.constant dense<0.000000e+00> : vector<1x128xf32>
    %154 = tpu.matmul %152, %153, %cst_69 {dimension_numbers = #tpu.dot_dimension_numbers<[1], [0], [0], [1], [0, 0, 1, 1], [], []>} : vector<1x32xf32>, vector<32x128xf32>, vector<1x128xf32> -> vector<1x128xf32>
    %c0_70 = arith.constant 0 : index
    %c512_71 = arith.constant 512 : index
    %155 = vector.load %arg5[%c0_70, %c512_71] : memref<1x640xf32, #tpu.memory_space<vmem>>, vector<1x128xf32>
    %156 = arith.addf %154, %155 : vector<1x128xf32>
    %157 = vector.extract_strided_slice %156 {offsets = [0, 0], sizes = [1, 40], strides = [1, 1]} : vector<1x128xf32> to vector<1x40xf32>
    %cst_72 = arith.constant dense<0xFF800000> : vector<1xf32>
    %158 = vector.multi_reduction <maximumf>, %157, %cst_72 [1] : vector<1x40xf32> to vector<1xf32>
    %159 = vector.shape_cast %158 : vector<1xf32> to vector<1x1xf32>
    %160 = vector.broadcast %159 : vector<1x1xf32> to vector<1x40xf32>
    %161 = arith.subf %157, %160 : vector<1x40xf32>
    %162 = math.exp %161 : vector<1x40xf32>
    %cst_73 = arith.constant dense<0.000000e+00> : vector<1xf32>
    %163 = vector.multi_reduction <add>, %162, %cst_73 [1] : vector<1x40xf32> to vector<1xf32>
    %164 = vector.shape_cast %163 : vector<1xf32> to vector<1x1xf32>
    %165 = math.log %164 : vector<1x1xf32>
    %166 = vector.broadcast %165 : vector<1x1xf32> to vector<1x40xf32>
    %167 = arith.subf %161, %166 : vector<1x40xf32>
    %168 = tpu.concatenate %167, %1 in 1 : vector<1x40xf32>, vector<1x88xf32> -> vector<1x128xf32>
    %169 = tpu.concatenate %152, %2 in 1 : vector<1x32xf32>, vector<1x96xf32> -> vector<1x128xf32>
    %170 = tpu.concatenate %114, %3 in 1 : vector<1x10xf32>, vector<1x118xf32> -> vector<1x128xf32>
    %c2 = arith.constant 2 : index
    %171 = memref.load %arg1[%c2] : memref<10xi32, #tpu.memory_space<smem>>
    %172 = vector.broadcast %171 : i32 to vector<1x40xi32>
    %173 = arith.cmpi eq, %4, %172 : vector<1x40xi32>
    %174 = arith.extui %173 : vector<1x40xi1> to vector<1x40xi32>
    %175 = arith.sitofp %174 : vector<1x40xi32> to vector<1x40xf32>
    %c0_74 = arith.constant 0 : index
    %c0_75 = arith.constant 0 : index
    %176 = vector.load %arg2[%c0_74, %c0_75] : memref<40x32xf32, #tpu.memory_space<vmem>>, vector<40x32xf32>
    %cst_76 = arith.constant dense<0.000000e+00> : vector<1x32xf32>
    %177 = tpu.matmul %175, %176, %cst_76 {dimension_numbers = #tpu.dot_dimension_numbers<[1], [0], [0], [1], [0, 0, 1, 1], [], []>} : vector<1x40xf32>, vector<40x32xf32>, vector<1x32xf32> -> vector<1x32xf32>
    %c0_77 = arith.constant 0 : index
    %c0_78 = arith.constant 0 : index
    %178 = vector.load %arg4[%c0_77, %c0_78] : memref<32x896xf32, #tpu.memory_space<vmem>>, vector<32x256xf32>
    %cst_79 = arith.constant dense<0.000000e+00> : vector<1x256xf32>
    %179 = tpu.matmul %177, %178, %cst_79 {dimension_numbers = #tpu.dot_dimension_numbers<[1], [0], [0], [1], [0, 0, 1, 1], [], []>} : vector<1x32xf32>, vector<32x256xf32>, vector<1x256xf32> -> vector<1x256xf32>
    %c0_80 = arith.constant 0 : index
    %c256_81 = arith.constant 256 : index
    %180 = vector.load %arg4[%c0_80, %c256_81] : memref<32x896xf32, #tpu.memory_space<vmem>>, vector<32x256xf32>
    %cst_82 = arith.constant dense<0.000000e+00> : vector<1x256xf32>
    %181 = tpu.matmul %152, %180, %cst_82 {dimension_numbers = #tpu.dot_dimension_numbers<[1], [0], [0], [1], [0, 0, 1, 1], [], []>} : vector<1x32xf32>, vector<32x256xf32>, vector<1x256xf32> -> vector<1x256xf32>
    %182 = vector.extract_strided_slice %179 {offsets = [0, 0], sizes = [1, 128], strides = [1, 1]} : vector<1x256xf32> to vector<1x128xf32>
    %183 = vector.extract_strided_slice %181 {offsets = [0, 0], sizes = [1, 128], strides = [1, 1]} : vector<1x256xf32> to vector<1x128xf32>
    %184 = arith.addf %182, %183 : vector<1x128xf32>
    %c0_83 = arith.constant 0 : index
    %c0_84 = arith.constant 0 : index
    %185 = vector.load %arg5[%c0_83, %c0_84] : memref<1x640xf32, #tpu.memory_space<vmem>>, vector<1x128xf32>
    %186 = arith.addf %184, %185 : vector<1x128xf32>
    %187 = vector.extract_strided_slice %186 {offsets = [0, 0], sizes = [1, 10], strides = [1, 1]} : vector<1x128xf32> to vector<1x10xf32>
    %cst_85 = arith.constant dense<0xFF800000> : vector<1xf32>
    %188 = vector.multi_reduction <maximumf>, %187, %cst_85 [1] : vector<1x10xf32> to vector<1xf32>
    %189 = vector.shape_cast %188 : vector<1xf32> to vector<1x1xf32>
    %190 = vector.broadcast %189 : vector<1x1xf32> to vector<1x10xf32>
    %191 = arith.subf %187, %190 : vector<1x10xf32>
    %192 = math.exp %191 : vector<1x10xf32>
    %cst_86 = arith.constant dense<0.000000e+00> : vector<1xf32>
    %193 = vector.multi_reduction <add>, %192, %cst_86 [1] : vector<1x10xf32> to vector<1xf32>
    %194 = vector.shape_cast %193 : vector<1xf32> to vector<1x1xf32>
    %195 = tpu.reciprocal %194 {approx = true} : vector<1x1xf32> -> vector<1x1xf32>
    %196 = vector.broadcast %195 : vector<1x1xf32> to vector<1x10xf32>
    %197 = arith.mulf %192, %196 : vector<1x10xf32>
    %c0_87 = arith.constant 0 : index
    %c0_88 = arith.constant 0 : index
    %198 = vector.load %arg3[%c0_87, %c0_88] : memref<10x32xf32, #tpu.memory_space<vmem>>, vector<10x32xf32>
    %cst_89 = arith.constant dense<0.000000e+00> : vector<1x32xf32>
    %199 = tpu.matmul %197, %198, %cst_89 {dimension_numbers = #tpu.dot_dimension_numbers<[1], [0], [0], [1], [0, 0, 1, 1], [], []>} : vector<1x10xf32>, vector<10x32xf32>, vector<1x32xf32> -> vector<1x32xf32>
    %200 = vector.extract_strided_slice %179 {offsets = [0, 128], sizes = [1, 128], strides = [1, 1]} : vector<1x256xf32> to vector<1x128xf32>
    %c0_90 = arith.constant 0 : index
    %c512_91 = arith.constant 512 : index
    %201 = vector.load %arg4[%c0_90, %c512_91] : memref<32x896xf32, #tpu.memory_space<vmem>>, vector<32x128xf32>
    %cst_92 = arith.constant dense<0.000000e+00> : vector<1x128xf32>
    %202 = tpu.matmul %199, %201, %cst_92 {dimension_numbers = #tpu.dot_dimension_numbers<[1], [0], [0], [1], [0, 0, 1, 1], [], []>} : vector<1x32xf32>, vector<32x128xf32>, vector<1x128xf32> -> vector<1x128xf32>
    %203 = arith.addf %200, %202 : vector<1x128xf32>
    %c0_93 = arith.constant 0 : index
    %c128_94 = arith.constant 128 : index
    %204 = vector.load %arg5[%c0_93, %c128_94] : memref<1x640xf32, #tpu.memory_space<vmem>>, vector<1x128xf32>
    %205 = arith.addf %203, %204 : vector<1x128xf32>
    %206 = vector.extract_strided_slice %205 {offsets = [0, 0], sizes = [1, 32], strides = [1, 1]} : vector<1x128xf32> to vector<1x32xf32>
    %cst_95 = arith.constant 0.000000e+00 : f32
    %207 = vector.broadcast %cst_95 : f32 to vector<1x32xf32>
    %208 = arith.maximumf %206, %207 : vector<1x32xf32>
    %c0_96 = arith.constant 0 : index
    %c640_97 = arith.constant 640 : index
    %209 = vector.load %arg4[%c0_96, %c640_97] : memref<32x896xf32, #tpu.memory_space<vmem>>, vector<32x128xf32>
    %cst_98 = arith.constant dense<0.000000e+00> : vector<1x128xf32>
    %210 = tpu.matmul %208, %209, %cst_98 {dimension_numbers = #tpu.dot_dimension_numbers<[1], [0], [0], [1], [0, 0, 1, 1], [], []>} : vector<1x32xf32>, vector<32x128xf32>, vector<1x128xf32> -> vector<1x128xf32>
    %c0_99 = arith.constant 0 : index
    %c256_100 = arith.constant 256 : index
    %211 = vector.load %arg5[%c0_99, %c256_100] : memref<1x640xf32, #tpu.memory_space<vmem>>, vector<1x128xf32>
    %212 = arith.addf %210, %211 : vector<1x128xf32>
    %213 = vector.extract_strided_slice %181 {offsets = [0, 128], sizes = [1, 128], strides = [1, 1]} : vector<1x256xf32> to vector<1x128xf32>
    %c0_101 = arith.constant 0 : index
    %c384_102 = arith.constant 384 : index
    %214 = vector.load %arg5[%c0_101, %c384_102] : memref<1x640xf32, #tpu.memory_space<vmem>>, vector<1x128xf32>
    %215 = arith.addf %213, %214 : vector<1x128xf32>
    %216 = vector.extract_strided_slice %212 {offsets = [0, 0], sizes = [1, 64], strides = [1, 1]} : vector<1x128xf32> to vector<1x64xf32>
    %217 = vector.extract_strided_slice %215 {offsets = [0, 0], sizes = [1, 64], strides = [1, 1]} : vector<1x128xf32> to vector<1x64xf32>
    %218 = arith.addf %216, %217 : vector<1x64xf32>
    %219 = arith.negf %218 : vector<1x64xf32>
    %220 = math.exp %219 : vector<1x64xf32>
    %cst_103 = arith.constant 1.000000e+00 : f32
    %221 = vector.broadcast %cst_103 : f32 to vector<1x64xf32>
    %222 = arith.addf %221, %220 : vector<1x64xf32>
    %223 = arith.divf %221, %222 : vector<1x64xf32>
    %224 = vector.extract_strided_slice %223 {offsets = [0, 0], sizes = [1, 32], strides = [1, 1]} : vector<1x64xf32> to vector<1x32xf32>
    %225 = vector.extract_strided_slice %223 {offsets = [0, 32], sizes = [1, 32], strides = [1, 1]} : vector<1x64xf32> to vector<1x32xf32>
    %226 = vector.extract_strided_slice %212 {offsets = [0, 64], sizes = [1, 32], strides = [1, 1]} : vector<1x128xf32> to vector<1x32xf32>
    %227 = vector.extract_strided_slice %215 {offsets = [0, 64], sizes = [1, 32], strides = [1, 1]} : vector<1x128xf32> to vector<1x32xf32>
    %228 = arith.mulf %224, %227 : vector<1x32xf32>
    %229 = arith.addf %226, %228 : vector<1x32xf32>
    %230 = math.tanh %229 : vector<1x32xf32>
    %cst_104 = arith.constant 1.000000e+00 : f32
    %231 = vector.broadcast %cst_104 : f32 to vector<1x32xf32>
    %232 = arith.subf %231, %225 : vector<1x32xf32>
    %233 = arith.mulf %232, %230 : vector<1x32xf32>
    %234 = arith.mulf %225, %152 : vector<1x32xf32>
    %235 = arith.addf %233, %234 : vector<1x32xf32>
    %c0_105 = arith.constant 0 : index
    %c768_106 = arith.constant 768 : index
    %236 = vector.load %arg4[%c0_105, %c768_106] : memref<32x896xf32, #tpu.memory_space<vmem>>, vector<32x128xf32>
    %cst_107 = arith.constant dense<0.000000e+00> : vector<1x128xf32>
    %237 = tpu.matmul %235, %236, %cst_107 {dimension_numbers = #tpu.dot_dimension_numbers<[1], [0], [0], [1], [0, 0, 1, 1], [], []>} : vector<1x32xf32>, vector<32x128xf32>, vector<1x128xf32> -> vector<1x128xf32>
    %c0_108 = arith.constant 0 : index
    %c512_109 = arith.constant 512 : index
    %238 = vector.load %arg5[%c0_108, %c512_109] : memref<1x640xf32, #tpu.memory_space<vmem>>, vector<1x128xf32>
    %239 = arith.addf %237, %238 : vector<1x128xf32>
    %240 = vector.extract_strided_slice %239 {offsets = [0, 0], sizes = [1, 40], strides = [1, 1]} : vector<1x128xf32> to vector<1x40xf32>
    %cst_110 = arith.constant dense<0xFF800000> : vector<1xf32>
    %241 = vector.multi_reduction <maximumf>, %240, %cst_110 [1] : vector<1x40xf32> to vector<1xf32>
    %242 = vector.shape_cast %241 : vector<1xf32> to vector<1x1xf32>
    %243 = vector.broadcast %242 : vector<1x1xf32> to vector<1x40xf32>
    %244 = arith.subf %240, %243 : vector<1x40xf32>
    %245 = math.exp %244 : vector<1x40xf32>
    %cst_111 = arith.constant dense<0.000000e+00> : vector<1xf32>
    %246 = vector.multi_reduction <add>, %245, %cst_111 [1] : vector<1x40xf32> to vector<1xf32>
    %247 = vector.shape_cast %246 : vector<1xf32> to vector<1x1xf32>
    %248 = math.log %247 : vector<1x1xf32>
    %249 = vector.broadcast %248 : vector<1x1xf32> to vector<1x40xf32>
    %250 = arith.subf %244, %249 : vector<1x40xf32>
    %251 = tpu.concatenate %250, %1 in 1 : vector<1x40xf32>, vector<1x88xf32> -> vector<1x128xf32>
    %252 = tpu.concatenate %235, %2 in 1 : vector<1x32xf32>, vector<1x96xf32> -> vector<1x128xf32>
    %253 = tpu.concatenate %197, %3 in 1 : vector<1x10xf32>, vector<1x118xf32> -> vector<1x128xf32>
    %c3 = arith.constant 3 : index
    %254 = memref.load %arg1[%c3] : memref<10xi32, #tpu.memory_space<smem>>
    %255 = vector.broadcast %254 : i32 to vector<1x40xi32>
    %256 = arith.cmpi eq, %4, %255 : vector<1x40xi32>
    %257 = arith.extui %256 : vector<1x40xi1> to vector<1x40xi32>
    %258 = arith.sitofp %257 : vector<1x40xi32> to vector<1x40xf32>
    %c0_112 = arith.constant 0 : index
    %c0_113 = arith.constant 0 : index
    %259 = vector.load %arg2[%c0_112, %c0_113] : memref<40x32xf32, #tpu.memory_space<vmem>>, vector<40x32xf32>
    %cst_114 = arith.constant dense<0.000000e+00> : vector<1x32xf32>
    %260 = tpu.matmul %258, %259, %cst_114 {dimension_numbers = #tpu.dot_dimension_numbers<[1], [0], [0], [1], [0, 0, 1, 1], [], []>} : vector<1x40xf32>, vector<40x32xf32>, vector<1x32xf32> -> vector<1x32xf32>
    %c0_115 = arith.constant 0 : index
    %c0_116 = arith.constant 0 : index
    %261 = vector.load %arg4[%c0_115, %c0_116] : memref<32x896xf32, #tpu.memory_space<vmem>>, vector<32x256xf32>
    %cst_117 = arith.constant dense<0.000000e+00> : vector<1x256xf32>
    %262 = tpu.matmul %260, %261, %cst_117 {dimension_numbers = #tpu.dot_dimension_numbers<[1], [0], [0], [1], [0, 0, 1, 1], [], []>} : vector<1x32xf32>, vector<32x256xf32>, vector<1x256xf32> -> vector<1x256xf32>
    %c0_118 = arith.constant 0 : index
    %c256_119 = arith.constant 256 : index
    %263 = vector.load %arg4[%c0_118, %c256_119] : memref<32x896xf32, #tpu.memory_space<vmem>>, vector<32x256xf32>
    %cst_120 = arith.constant dense<0.000000e+00> : vector<1x256xf32>
    %264 = tpu.matmul %235, %263, %cst_120 {dimension_numbers = #tpu.dot_dimension_numbers<[1], [0], [0], [1], [0, 0, 1, 1], [], []>} : vector<1x32xf32>, vector<32x256xf32>, vector<1x256xf32> -> vector<1x256xf32>
    %265 = vector.extract_strided_slice %262 {offsets = [0, 0], sizes = [1, 128], strides = [1, 1]} : vector<1x256xf32> to vector<1x128xf32>
    %266 = vector.extract_strided_slice %264 {offsets = [0, 0], sizes = [1, 128], strides = [1, 1]} : vector<1x256xf32> to vector<1x128xf32>
    %267 = arith.addf %265, %266 : vector<1x128xf32>
    %c0_121 = arith.constant 0 : index
    %c0_122 = arith.constant 0 : index
    %268 = vector.load %arg5[%c0_121, %c0_122] : memref<1x640xf32, #tpu.memory_space<vmem>>, vector<1x128xf32>
    %269 = arith.addf %267, %268 : vector<1x128xf32>
    %270 = vector.extract_strided_slice %269 {offsets = [0, 0], sizes = [1, 10], strides = [1, 1]} : vector<1x128xf32> to vector<1x10xf32>
    %cst_123 = arith.constant dense<0xFF800000> : vector<1xf32>
    %271 = vector.multi_reduction <maximumf>, %270, %cst_123 [1] : vector<1x10xf32> to vector<1xf32>
    %272 = vector.shape_cast %271 : vector<1xf32> to vector<1x1xf32>
    %273 = vector.broadcast %272 : vector<1x1xf32> to vector<1x10xf32>
    %274 = arith.subf %270, %273 : vector<1x10xf32>
    %275 = math.exp %274 : vector<1x10xf32>
    %cst_124 = arith.constant dense<0.000000e+00> : vector<1xf32>
    %276 = vector.multi_reduction <add>, %275, %cst_124 [1] : vector<1x10xf32> to vector<1xf32>
    %277 = vector.shape_cast %276 : vector<1xf32> to vector<1x1xf32>
    %278 = tpu.reciprocal %277 {approx = true} : vector<1x1xf32> -> vector<1x1xf32>
    %279 = vector.broadcast %278 : vector<1x1xf32> to vector<1x10xf32>
    %280 = arith.mulf %275, %279 : vector<1x10xf32>
    %c0_125 = arith.constant 0 : index
    %c0_126 = arith.constant 0 : index
    %281 = vector.load %arg3[%c0_125, %c0_126] : memref<10x32xf32, #tpu.memory_space<vmem>>, vector<10x32xf32>
    %cst_127 = arith.constant dense<0.000000e+00> : vector<1x32xf32>
    %282 = tpu.matmul %280, %281, %cst_127 {dimension_numbers = #tpu.dot_dimension_numbers<[1], [0], [0], [1], [0, 0, 1, 1], [], []>} : vector<1x10xf32>, vector<10x32xf32>, vector<1x32xf32> -> vector<1x32xf32>
    %283 = vector.extract_strided_slice %262 {offsets = [0, 128], sizes = [1, 128], strides = [1, 1]} : vector<1x256xf32> to vector<1x128xf32>
    %c0_128 = arith.constant 0 : index
    %c512_129 = arith.constant 512 : index
    %284 = vector.load %arg4[%c0_128, %c512_129] : memref<32x896xf32, #tpu.memory_space<vmem>>, vector<32x128xf32>
    %cst_130 = arith.constant dense<0.000000e+00> : vector<1x128xf32>
    %285 = tpu.matmul %282, %284, %cst_130 {dimension_numbers = #tpu.dot_dimension_numbers<[1], [0], [0], [1], [0, 0, 1, 1], [], []>} : vector<1x32xf32>, vector<32x128xf32>, vector<1x128xf32> -> vector<1x128xf32>
    %286 = arith.addf %283, %285 : vector<1x128xf32>
    %c0_131 = arith.constant 0 : index
    %c128_132 = arith.constant 128 : index
    %287 = vector.load %arg5[%c0_131, %c128_132] : memref<1x640xf32, #tpu.memory_space<vmem>>, vector<1x128xf32>
    %288 = arith.addf %286, %287 : vector<1x128xf32>
    %289 = vector.extract_strided_slice %288 {offsets = [0, 0], sizes = [1, 32], strides = [1, 1]} : vector<1x128xf32> to vector<1x32xf32>
    %cst_133 = arith.constant 0.000000e+00 : f32
    %290 = vector.broadcast %cst_133 : f32 to vector<1x32xf32>
    %291 = arith.maximumf %289, %290 : vector<1x32xf32>
    %c0_134 = arith.constant 0 : index
    %c640_135 = arith.constant 640 : index
    %292 = vector.load %arg4[%c0_134, %c640_135] : memref<32x896xf32, #tpu.memory_space<vmem>>, vector<32x128xf32>
    %cst_136 = arith.constant dense<0.000000e+00> : vector<1x128xf32>
    %293 = tpu.matmul %291, %292, %cst_136 {dimension_numbers = #tpu.dot_dimension_numbers<[1], [0], [0], [1], [0, 0, 1, 1], [], []>} : vector<1x32xf32>, vector<32x128xf32>, vector<1x128xf32> -> vector<1x128xf32>
    %c0_137 = arith.constant 0 : index
    %c256_138 = arith.constant 256 : index
    %294 = vector.load %arg5[%c0_137, %c256_138] : memref<1x640xf32, #tpu.memory_space<vmem>>, vector<1x128xf32>
    %295 = arith.addf %293, %294 : vector<1x128xf32>
    %296 = vector.extract_strided_slice %264 {offsets = [0, 128], sizes = [1, 128], strides = [1, 1]} : vector<1x256xf32> to vector<1x128xf32>
    %c0_139 = arith.constant 0 : index
    %c384_140 = arith.constant 384 : index
    %297 = vector.load %arg5[%c0_139, %c384_140] : memref<1x640xf32, #tpu.memory_space<vmem>>, vector<1x128xf32>
    %298 = arith.addf %296, %297 : vector<1x128xf32>
    %299 = vector.extract_strided_slice %295 {offsets = [0, 0], sizes = [1, 64], strides = [1, 1]} : vector<1x128xf32> to vector<1x64xf32>
    %300 = vector.extract_strided_slice %298 {offsets = [0, 0], sizes = [1, 64], strides = [1, 1]} : vector<1x128xf32> to vector<1x64xf32>
    %301 = arith.addf %299, %300 : vector<1x64xf32>
    %302 = arith.negf %301 : vector<1x64xf32>
    %303 = math.exp %302 : vector<1x64xf32>
    %cst_141 = arith.constant 1.000000e+00 : f32
    %304 = vector.broadcast %cst_141 : f32 to vector<1x64xf32>
    %305 = arith.addf %304, %303 : vector<1x64xf32>
    %306 = arith.divf %304, %305 : vector<1x64xf32>
    %307 = vector.extract_strided_slice %306 {offsets = [0, 0], sizes = [1, 32], strides = [1, 1]} : vector<1x64xf32> to vector<1x32xf32>
    %308 = vector.extract_strided_slice %306 {offsets = [0, 32], sizes = [1, 32], strides = [1, 1]} : vector<1x64xf32> to vector<1x32xf32>
    %309 = vector.extract_strided_slice %295 {offsets = [0, 64], sizes = [1, 32], strides = [1, 1]} : vector<1x128xf32> to vector<1x32xf32>
    %310 = vector.extract_strided_slice %298 {offsets = [0, 64], sizes = [1, 32], strides = [1, 1]} : vector<1x128xf32> to vector<1x32xf32>
    %311 = arith.mulf %307, %310 : vector<1x32xf32>
    %312 = arith.addf %309, %311 : vector<1x32xf32>
    %313 = math.tanh %312 : vector<1x32xf32>
    %cst_142 = arith.constant 1.000000e+00 : f32
    %314 = vector.broadcast %cst_142 : f32 to vector<1x32xf32>
    %315 = arith.subf %314, %308 : vector<1x32xf32>
    %316 = arith.mulf %315, %313 : vector<1x32xf32>
    %317 = arith.mulf %308, %235 : vector<1x32xf32>
    %318 = arith.addf %316, %317 : vector<1x32xf32>
    %c0_143 = arith.constant 0 : index
    %c768_144 = arith.constant 768 : index
    %319 = vector.load %arg4[%c0_143, %c768_144] : memref<32x896xf32, #tpu.memory_space<vmem>>, vector<32x128xf32>
    %cst_145 = arith.constant dense<0.000000e+00> : vector<1x128xf32>
    %320 = tpu.matmul %318, %319, %cst_145 {dimension_numbers = #tpu.dot_dimension_numbers<[1], [0], [0], [1], [0, 0, 1, 1], [], []>} : vector<1x32xf32>, vector<32x128xf32>, vector<1x128xf32> -> vector<1x128xf32>
    %c0_146 = arith.constant 0 : index
    %c512_147 = arith.constant 512 : index
    %321 = vector.load %arg5[%c0_146, %c512_147] : memref<1x640xf32, #tpu.memory_space<vmem>>, vector<1x128xf32>
    %322 = arith.addf %320, %321 : vector<1x128xf32>
    %323 = vector.extract_strided_slice %322 {offsets = [0, 0], sizes = [1, 40], strides = [1, 1]} : vector<1x128xf32> to vector<1x40xf32>
    %cst_148 = arith.constant dense<0xFF800000> : vector<1xf32>
    %324 = vector.multi_reduction <maximumf>, %323, %cst_148 [1] : vector<1x40xf32> to vector<1xf32>
    %325 = vector.shape_cast %324 : vector<1xf32> to vector<1x1xf32>
    %326 = vector.broadcast %325 : vector<1x1xf32> to vector<1x40xf32>
    %327 = arith.subf %323, %326 : vector<1x40xf32>
    %328 = math.exp %327 : vector<1x40xf32>
    %cst_149 = arith.constant dense<0.000000e+00> : vector<1xf32>
    %329 = vector.multi_reduction <add>, %328, %cst_149 [1] : vector<1x40xf32> to vector<1xf32>
    %330 = vector.shape_cast %329 : vector<1xf32> to vector<1x1xf32>
    %331 = math.log %330 : vector<1x1xf32>
    %332 = vector.broadcast %331 : vector<1x1xf32> to vector<1x40xf32>
    %333 = arith.subf %327, %332 : vector<1x40xf32>
    %334 = tpu.concatenate %333, %1 in 1 : vector<1x40xf32>, vector<1x88xf32> -> vector<1x128xf32>
    %335 = tpu.concatenate %318, %2 in 1 : vector<1x32xf32>, vector<1x96xf32> -> vector<1x128xf32>
    %336 = tpu.concatenate %280, %3 in 1 : vector<1x10xf32>, vector<1x118xf32> -> vector<1x128xf32>
    %c4 = arith.constant 4 : index
    %337 = memref.load %arg1[%c4] : memref<10xi32, #tpu.memory_space<smem>>
    %338 = vector.broadcast %337 : i32 to vector<1x40xi32>
    %339 = arith.cmpi eq, %4, %338 : vector<1x40xi32>
    %340 = arith.extui %339 : vector<1x40xi1> to vector<1x40xi32>
    %341 = arith.sitofp %340 : vector<1x40xi32> to vector<1x40xf32>
    %c0_150 = arith.constant 0 : index
    %c0_151 = arith.constant 0 : index
    %342 = vector.load %arg2[%c0_150, %c0_151] : memref<40x32xf32, #tpu.memory_space<vmem>>, vector<40x32xf32>
    %cst_152 = arith.constant dense<0.000000e+00> : vector<1x32xf32>
    %343 = tpu.matmul %341, %342, %cst_152 {dimension_numbers = #tpu.dot_dimension_numbers<[1], [0], [0], [1], [0, 0, 1, 1], [], []>} : vector<1x40xf32>, vector<40x32xf32>, vector<1x32xf32> -> vector<1x32xf32>
    %c0_153 = arith.constant 0 : index
    %c0_154 = arith.constant 0 : index
    %344 = vector.load %arg4[%c0_153, %c0_154] : memref<32x896xf32, #tpu.memory_space<vmem>>, vector<32x256xf32>
    %cst_155 = arith.constant dense<0.000000e+00> : vector<1x256xf32>
    %345 = tpu.matmul %343, %344, %cst_155 {dimension_numbers = #tpu.dot_dimension_numbers<[1], [0], [0], [1], [0, 0, 1, 1], [], []>} : vector<1x32xf32>, vector<32x256xf32>, vector<1x256xf32> -> vector<1x256xf32>
    %c0_156 = arith.constant 0 : index
    %c256_157 = arith.constant 256 : index
    %346 = vector.load %arg4[%c0_156, %c256_157] : memref<32x896xf32, #tpu.memory_space<vmem>>, vector<32x256xf32>
    %cst_158 = arith.constant dense<0.000000e+00> : vector<1x256xf32>
    %347 = tpu.matmul %318, %346, %cst_158 {dimension_numbers = #tpu.dot_dimension_numbers<[1], [0], [0], [1], [0, 0, 1, 1], [], []>} : vector<1x32xf32>, vector<32x256xf32>, vector<1x256xf32> -> vector<1x256xf32>
    %348 = vector.extract_strided_slice %345 {offsets = [0, 0], sizes = [1, 128], strides = [1, 1]} : vector<1x256xf32> to vector<1x128xf32>
    %349 = vector.extract_strided_slice %347 {offsets = [0, 0], sizes = [1, 128], strides = [1, 1]} : vector<1x256xf32> to vector<1x128xf32>
    %350 = arith.addf %348, %349 : vector<1x128xf32>
    %c0_159 = arith.constant 0 : index
    %c0_160 = arith.constant 0 : index
    %351 = vector.load %arg5[%c0_159, %c0_160] : memref<1x640xf32, #tpu.memory_space<vmem>>, vector<1x128xf32>
    %352 = arith.addf %350, %351 : vector<1x128xf32>
    %353 = vector.extract_strided_slice %352 {offsets = [0, 0], sizes = [1, 10], strides = [1, 1]} : vector<1x128xf32> to vector<1x10xf32>
    %cst_161 = arith.constant dense<0xFF800000> : vector<1xf32>
    %354 = vector.multi_reduction <maximumf>, %353, %cst_161 [1] : vector<1x10xf32> to vector<1xf32>
    %355 = vector.shape_cast %354 : vector<1xf32> to vector<1x1xf32>
    %356 = vector.broadcast %355 : vector<1x1xf32> to vector<1x10xf32>
    %357 = arith.subf %353, %356 : vector<1x10xf32>
    %358 = math.exp %357 : vector<1x10xf32>
    %cst_162 = arith.constant dense<0.000000e+00> : vector<1xf32>
    %359 = vector.multi_reduction <add>, %358, %cst_162 [1] : vector<1x10xf32> to vector<1xf32>
    %360 = vector.shape_cast %359 : vector<1xf32> to vector<1x1xf32>
    %361 = tpu.reciprocal %360 {approx = true} : vector<1x1xf32> -> vector<1x1xf32>
    %362 = vector.broadcast %361 : vector<1x1xf32> to vector<1x10xf32>
    %363 = arith.mulf %358, %362 : vector<1x10xf32>
    %c0_163 = arith.constant 0 : index
    %c0_164 = arith.constant 0 : index
    %364 = vector.load %arg3[%c0_163, %c0_164] : memref<10x32xf32, #tpu.memory_space<vmem>>, vector<10x32xf32>
    %cst_165 = arith.constant dense<0.000000e+00> : vector<1x32xf32>
    %365 = tpu.matmul %363, %364, %cst_165 {dimension_numbers = #tpu.dot_dimension_numbers<[1], [0], [0], [1], [0, 0, 1, 1], [], []>} : vector<1x10xf32>, vector<10x32xf32>, vector<1x32xf32> -> vector<1x32xf32>
    %366 = vector.extract_strided_slice %345 {offsets = [0, 128], sizes = [1, 128], strides = [1, 1]} : vector<1x256xf32> to vector<1x128xf32>
    %c0_166 = arith.constant 0 : index
    %c512_167 = arith.constant 512 : index
    %367 = vector.load %arg4[%c0_166, %c512_167] : memref<32x896xf32, #tpu.memory_space<vmem>>, vector<32x128xf32>
    %cst_168 = arith.constant dense<0.000000e+00> : vector<1x128xf32>
    %368 = tpu.matmul %365, %367, %cst_168 {dimension_numbers = #tpu.dot_dimension_numbers<[1], [0], [0], [1], [0, 0, 1, 1], [], []>} : vector<1x32xf32>, vector<32x128xf32>, vector<1x128xf32> -> vector<1x128xf32>
    %369 = arith.addf %366, %368 : vector<1x128xf32>
    %c0_169 = arith.constant 0 : index
    %c128_170 = arith.constant 128 : index
    %370 = vector.load %arg5[%c0_169, %c128_170] : memref<1x640xf32, #tpu.memory_space<vmem>>, vector<1x128xf32>
    %371 = arith.addf %369, %370 : vector<1x128xf32>
    %372 = vector.extract_strided_slice %371 {offsets = [0, 0], sizes = [1, 32], strides = [1, 1]} : vector<1x128xf32> to vector<1x32xf32>
    %cst_171 = arith.constant 0.000000e+00 : f32
    %373 = vector.broadcast %cst_171 : f32 to vector<1x32xf32>
    %374 = arith.maximumf %372, %373 : vector<1x32xf32>
    %c0_172 = arith.constant 0 : index
    %c640_173 = arith.constant 640 : index
    %375 = vector.load %arg4[%c0_172, %c640_173] : memref<32x896xf32, #tpu.memory_space<vmem>>, vector<32x128xf32>
    %cst_174 = arith.constant dense<0.000000e+00> : vector<1x128xf32>
    %376 = tpu.matmul %374, %375, %cst_174 {dimension_numbers = #tpu.dot_dimension_numbers<[1], [0], [0], [1], [0, 0, 1, 1], [], []>} : vector<1x32xf32>, vector<32x128xf32>, vector<1x128xf32> -> vector<1x128xf32>
    %c0_175 = arith.constant 0 : index
    %c256_176 = arith.constant 256 : index
    %377 = vector.load %arg5[%c0_175, %c256_176] : memref<1x640xf32, #tpu.memory_space<vmem>>, vector<1x128xf32>
    %378 = arith.addf %376, %377 : vector<1x128xf32>
    %379 = vector.extract_strided_slice %347 {offsets = [0, 128], sizes = [1, 128], strides = [1, 1]} : vector<1x256xf32> to vector<1x128xf32>
    %c0_177 = arith.constant 0 : index
    %c384_178 = arith.constant 384 : index
    %380 = vector.load %arg5[%c0_177, %c384_178] : memref<1x640xf32, #tpu.memory_space<vmem>>, vector<1x128xf32>
    %381 = arith.addf %379, %380 : vector<1x128xf32>
    %382 = vector.extract_strided_slice %378 {offsets = [0, 0], sizes = [1, 64], strides = [1, 1]} : vector<1x128xf32> to vector<1x64xf32>
    %383 = vector.extract_strided_slice %381 {offsets = [0, 0], sizes = [1, 64], strides = [1, 1]} : vector<1x128xf32> to vector<1x64xf32>
    %384 = arith.addf %382, %383 : vector<1x64xf32>
    %385 = arith.negf %384 : vector<1x64xf32>
    %386 = math.exp %385 : vector<1x64xf32>
    %cst_179 = arith.constant 1.000000e+00 : f32
    %387 = vector.broadcast %cst_179 : f32 to vector<1x64xf32>
    %388 = arith.addf %387, %386 : vector<1x64xf32>
    %389 = arith.divf %387, %388 : vector<1x64xf32>
    %390 = vector.extract_strided_slice %389 {offsets = [0, 0], sizes = [1, 32], strides = [1, 1]} : vector<1x64xf32> to vector<1x32xf32>
    %391 = vector.extract_strided_slice %389 {offsets = [0, 32], sizes = [1, 32], strides = [1, 1]} : vector<1x64xf32> to vector<1x32xf32>
    %392 = vector.extract_strided_slice %378 {offsets = [0, 64], sizes = [1, 32], strides = [1, 1]} : vector<1x128xf32> to vector<1x32xf32>
    %393 = vector.extract_strided_slice %381 {offsets = [0, 64], sizes = [1, 32], strides = [1, 1]} : vector<1x128xf32> to vector<1x32xf32>
    %394 = arith.mulf %390, %393 : vector<1x32xf32>
    %395 = arith.addf %392, %394 : vector<1x32xf32>
    %396 = math.tanh %395 : vector<1x32xf32>
    %cst_180 = arith.constant 1.000000e+00 : f32
    %397 = vector.broadcast %cst_180 : f32 to vector<1x32xf32>
    %398 = arith.subf %397, %391 : vector<1x32xf32>
    %399 = arith.mulf %398, %396 : vector<1x32xf32>
    %400 = arith.mulf %391, %318 : vector<1x32xf32>
    %401 = arith.addf %399, %400 : vector<1x32xf32>
    %c0_181 = arith.constant 0 : index
    %c768_182 = arith.constant 768 : index
    %402 = vector.load %arg4[%c0_181, %c768_182] : memref<32x896xf32, #tpu.memory_space<vmem>>, vector<32x128xf32>
    %cst_183 = arith.constant dense<0.000000e+00> : vector<1x128xf32>
    %403 = tpu.matmul %401, %402, %cst_183 {dimension_numbers = #tpu.dot_dimension_numbers<[1], [0], [0], [1], [0, 0, 1, 1], [], []>} : vector<1x32xf32>, vector<32x128xf32>, vector<1x128xf32> -> vector<1x128xf32>
    %c0_184 = arith.constant 0 : index
    %c512_185 = arith.constant 512 : index
    %404 = vector.load %arg5[%c0_184, %c512_185] : memref<1x640xf32, #tpu.memory_space<vmem>>, vector<1x128xf32>
    %405 = arith.addf %403, %404 : vector<1x128xf32>
    %406 = vector.extract_strided_slice %405 {offsets = [0, 0], sizes = [1, 40], strides = [1, 1]} : vector<1x128xf32> to vector<1x40xf32>
    %cst_186 = arith.constant dense<0xFF800000> : vector<1xf32>
    %407 = vector.multi_reduction <maximumf>, %406, %cst_186 [1] : vector<1x40xf32> to vector<1xf32>
    %408 = vector.shape_cast %407 : vector<1xf32> to vector<1x1xf32>
    %409 = vector.broadcast %408 : vector<1x1xf32> to vector<1x40xf32>
    %410 = arith.subf %406, %409 : vector<1x40xf32>
    %411 = math.exp %410 : vector<1x40xf32>
    %cst_187 = arith.constant dense<0.000000e+00> : vector<1xf32>
    %412 = vector.multi_reduction <add>, %411, %cst_187 [1] : vector<1x40xf32> to vector<1xf32>
    %413 = vector.shape_cast %412 : vector<1xf32> to vector<1x1xf32>
    %414 = math.log %413 : vector<1x1xf32>
    %415 = vector.broadcast %414 : vector<1x1xf32> to vector<1x40xf32>
    %416 = arith.subf %410, %415 : vector<1x40xf32>
    %417 = tpu.concatenate %416, %1 in 1 : vector<1x40xf32>, vector<1x88xf32> -> vector<1x128xf32>
    %418 = tpu.concatenate %401, %2 in 1 : vector<1x32xf32>, vector<1x96xf32> -> vector<1x128xf32>
    %419 = tpu.concatenate %363, %3 in 1 : vector<1x10xf32>, vector<1x118xf32> -> vector<1x128xf32>
    %c5 = arith.constant 5 : index
    %420 = memref.load %arg1[%c5] : memref<10xi32, #tpu.memory_space<smem>>
    %421 = vector.broadcast %420 : i32 to vector<1x40xi32>
    %422 = arith.cmpi eq, %4, %421 : vector<1x40xi32>
    %423 = arith.extui %422 : vector<1x40xi1> to vector<1x40xi32>
    %424 = arith.sitofp %423 : vector<1x40xi32> to vector<1x40xf32>
    %c0_188 = arith.constant 0 : index
    %c0_189 = arith.constant 0 : index
    %425 = vector.load %arg2[%c0_188, %c0_189] : memref<40x32xf32, #tpu.memory_space<vmem>>, vector<40x32xf32>
    %cst_190 = arith.constant dense<0.000000e+00> : vector<1x32xf32>
    %426 = tpu.matmul %424, %425, %cst_190 {dimension_numbers = #tpu.dot_dimension_numbers<[1], [0], [0], [1], [0, 0, 1, 1], [], []>} : vector<1x40xf32>, vector<40x32xf32>, vector<1x32xf32> -> vector<1x32xf32>
    %c0_191 = arith.constant 0 : index
    %c0_192 = arith.constant 0 : index
    %427 = vector.load %arg4[%c0_191, %c0_192] : memref<32x896xf32, #tpu.memory_space<vmem>>, vector<32x256xf32>
    %cst_193 = arith.constant dense<0.000000e+00> : vector<1x256xf32>
    %428 = tpu.matmul %426, %427, %cst_193 {dimension_numbers = #tpu.dot_dimension_numbers<[1], [0], [0], [1], [0, 0, 1, 1], [], []>} : vector<1x32xf32>, vector<32x256xf32>, vector<1x256xf32> -> vector<1x256xf32>
    %c0_194 = arith.constant 0 : index
    %c256_195 = arith.constant 256 : index
    %429 = vector.load %arg4[%c0_194, %c256_195] : memref<32x896xf32, #tpu.memory_space<vmem>>, vector<32x256xf32>
    %cst_196 = arith.constant dense<0.000000e+00> : vector<1x256xf32>
    %430 = tpu.matmul %401, %429, %cst_196 {dimension_numbers = #tpu.dot_dimension_numbers<[1], [0], [0], [1], [0, 0, 1, 1], [], []>} : vector<1x32xf32>, vector<32x256xf32>, vector<1x256xf32> -> vector<1x256xf32>
    %431 = vector.extract_strided_slice %428 {offsets = [0, 0], sizes = [1, 128], strides = [1, 1]} : vector<1x256xf32> to vector<1x128xf32>
    %432 = vector.extract_strided_slice %430 {offsets = [0, 0], sizes = [1, 128], strides = [1, 1]} : vector<1x256xf32> to vector<1x128xf32>
    %433 = arith.addf %431, %432 : vector<1x128xf32>
    %c0_197 = arith.constant 0 : index
    %c0_198 = arith.constant 0 : index
    %434 = vector.load %arg5[%c0_197, %c0_198] : memref<1x640xf32, #tpu.memory_space<vmem>>, vector<1x128xf32>
    %435 = arith.addf %433, %434 : vector<1x128xf32>
    %436 = vector.extract_strided_slice %435 {offsets = [0, 0], sizes = [1, 10], strides = [1, 1]} : vector<1x128xf32> to vector<1x10xf32>
    %cst_199 = arith.constant dense<0xFF800000> : vector<1xf32>
    %437 = vector.multi_reduction <maximumf>, %436, %cst_199 [1] : vector<1x10xf32> to vector<1xf32>
    %438 = vector.shape_cast %437 : vector<1xf32> to vector<1x1xf32>
    %439 = vector.broadcast %438 : vector<1x1xf32> to vector<1x10xf32>
    %440 = arith.subf %436, %439 : vector<1x10xf32>
    %441 = math.exp %440 : vector<1x10xf32>
    %cst_200 = arith.constant dense<0.000000e+00> : vector<1xf32>
    %442 = vector.multi_reduction <add>, %441, %cst_200 [1] : vector<1x10xf32> to vector<1xf32>
    %443 = vector.shape_cast %442 : vector<1xf32> to vector<1x1xf32>
    %444 = tpu.reciprocal %443 {approx = true} : vector<1x1xf32> -> vector<1x1xf32>
    %445 = vector.broadcast %444 : vector<1x1xf32> to vector<1x10xf32>
    %446 = arith.mulf %441, %445 : vector<1x10xf32>
    %c0_201 = arith.constant 0 : index
    %c0_202 = arith.constant 0 : index
    %447 = vector.load %arg3[%c0_201, %c0_202] : memref<10x32xf32, #tpu.memory_space<vmem>>, vector<10x32xf32>
    %cst_203 = arith.constant dense<0.000000e+00> : vector<1x32xf32>
    %448 = tpu.matmul %446, %447, %cst_203 {dimension_numbers = #tpu.dot_dimension_numbers<[1], [0], [0], [1], [0, 0, 1, 1], [], []>} : vector<1x10xf32>, vector<10x32xf32>, vector<1x32xf32> -> vector<1x32xf32>
    %449 = vector.extract_strided_slice %428 {offsets = [0, 128], sizes = [1, 128], strides = [1, 1]} : vector<1x256xf32> to vector<1x128xf32>
    %c0_204 = arith.constant 0 : index
    %c512_205 = arith.constant 512 : index
    %450 = vector.load %arg4[%c0_204, %c512_205] : memref<32x896xf32, #tpu.memory_space<vmem>>, vector<32x128xf32>
    %cst_206 = arith.constant dense<0.000000e+00> : vector<1x128xf32>
    %451 = tpu.matmul %448, %450, %cst_206 {dimension_numbers = #tpu.dot_dimension_numbers<[1], [0], [0], [1], [0, 0, 1, 1], [], []>} : vector<1x32xf32>, vector<32x128xf32>, vector<1x128xf32> -> vector<1x128xf32>
    %452 = arith.addf %449, %451 : vector<1x128xf32>
    %c0_207 = arith.constant 0 : index
    %c128_208 = arith.constant 128 : index
    %453 = vector.load %arg5[%c0_207, %c128_208] : memref<1x640xf32, #tpu.memory_space<vmem>>, vector<1x128xf32>
    %454 = arith.addf %452, %453 : vector<1x128xf32>
    %455 = vector.extract_strided_slice %454 {offsets = [0, 0], sizes = [1, 32], strides = [1, 1]} : vector<1x128xf32> to vector<1x32xf32>
    %cst_209 = arith.constant 0.000000e+00 : f32
    %456 = vector.broadcast %cst_209 : f32 to vector<1x32xf32>
    %457 = arith.maximumf %455, %456 : vector<1x32xf32>
    %c0_210 = arith.constant 0 : index
    %c640_211 = arith.constant 640 : index
    %458 = vector.load %arg4[%c0_210, %c640_211] : memref<32x896xf32, #tpu.memory_space<vmem>>, vector<32x128xf32>
    %cst_212 = arith.constant dense<0.000000e+00> : vector<1x128xf32>
    %459 = tpu.matmul %457, %458, %cst_212 {dimension_numbers = #tpu.dot_dimension_numbers<[1], [0], [0], [1], [0, 0, 1, 1], [], []>} : vector<1x32xf32>, vector<32x128xf32>, vector<1x128xf32> -> vector<1x128xf32>
    %c0_213 = arith.constant 0 : index
    %c256_214 = arith.constant 256 : index
    %460 = vector.load %arg5[%c0_213, %c256_214] : memref<1x640xf32, #tpu.memory_space<vmem>>, vector<1x128xf32>
    %461 = arith.addf %459, %460 : vector<1x128xf32>
    %462 = vector.extract_strided_slice %430 {offsets = [0, 128], sizes = [1, 128], strides = [1, 1]} : vector<1x256xf32> to vector<1x128xf32>
    %c0_215 = arith.constant 0 : index
    %c384_216 = arith.constant 384 : index
    %463 = vector.load %arg5[%c0_215, %c384_216] : memref<1x640xf32, #tpu.memory_space<vmem>>, vector<1x128xf32>
    %464 = arith.addf %462, %463 : vector<1x128xf32>
    %465 = vector.extract_strided_slice %461 {offsets = [0, 0], sizes = [1, 64], strides = [1, 1]} : vector<1x128xf32> to vector<1x64xf32>
    %466 = vector.extract_strided_slice %464 {offsets = [0, 0], sizes = [1, 64], strides = [1, 1]} : vector<1x128xf32> to vector<1x64xf32>
    %467 = arith.addf %465, %466 : vector<1x64xf32>
    %468 = arith.negf %467 : vector<1x64xf32>
    %469 = math.exp %468 : vector<1x64xf32>
    %cst_217 = arith.constant 1.000000e+00 : f32
    %470 = vector.broadcast %cst_217 : f32 to vector<1x64xf32>
    %471 = arith.addf %470, %469 : vector<1x64xf32>
    %472 = arith.divf %470, %471 : vector<1x64xf32>
    %473 = vector.extract_strided_slice %472 {offsets = [0, 0], sizes = [1, 32], strides = [1, 1]} : vector<1x64xf32> to vector<1x32xf32>
    %474 = vector.extract_strided_slice %472 {offsets = [0, 32], sizes = [1, 32], strides = [1, 1]} : vector<1x64xf32> to vector<1x32xf32>
    %475 = vector.extract_strided_slice %461 {offsets = [0, 64], sizes = [1, 32], strides = [1, 1]} : vector<1x128xf32> to vector<1x32xf32>
    %476 = vector.extract_strided_slice %464 {offsets = [0, 64], sizes = [1, 32], strides = [1, 1]} : vector<1x128xf32> to vector<1x32xf32>
    %477 = arith.mulf %473, %476 : vector<1x32xf32>
    %478 = arith.addf %475, %477 : vector<1x32xf32>
    %479 = math.tanh %478 : vector<1x32xf32>
    %cst_218 = arith.constant 1.000000e+00 : f32
    %480 = vector.broadcast %cst_218 : f32 to vector<1x32xf32>
    %481 = arith.subf %480, %474 : vector<1x32xf32>
    %482 = arith.mulf %481, %479 : vector<1x32xf32>
    %483 = arith.mulf %474, %401 : vector<1x32xf32>
    %484 = arith.addf %482, %483 : vector<1x32xf32>
    %c0_219 = arith.constant 0 : index
    %c768_220 = arith.constant 768 : index
    %485 = vector.load %arg4[%c0_219, %c768_220] : memref<32x896xf32, #tpu.memory_space<vmem>>, vector<32x128xf32>
    %cst_221 = arith.constant dense<0.000000e+00> : vector<1x128xf32>
    %486 = tpu.matmul %484, %485, %cst_221 {dimension_numbers = #tpu.dot_dimension_numbers<[1], [0], [0], [1], [0, 0, 1, 1], [], []>} : vector<1x32xf32>, vector<32x128xf32>, vector<1x128xf32> -> vector<1x128xf32>
    %c0_222 = arith.constant 0 : index
    %c512_223 = arith.constant 512 : index
    %487 = vector.load %arg5[%c0_222, %c512_223] : memref<1x640xf32, #tpu.memory_space<vmem>>, vector<1x128xf32>
    %488 = arith.addf %486, %487 : vector<1x128xf32>
    %489 = vector.extract_strided_slice %488 {offsets = [0, 0], sizes = [1, 40], strides = [1, 1]} : vector<1x128xf32> to vector<1x40xf32>
    %cst_224 = arith.constant dense<0xFF800000> : vector<1xf32>
    %490 = vector.multi_reduction <maximumf>, %489, %cst_224 [1] : vector<1x40xf32> to vector<1xf32>
    %491 = vector.shape_cast %490 : vector<1xf32> to vector<1x1xf32>
    %492 = vector.broadcast %491 : vector<1x1xf32> to vector<1x40xf32>
    %493 = arith.subf %489, %492 : vector<1x40xf32>
    %494 = math.exp %493 : vector<1x40xf32>
    %cst_225 = arith.constant dense<0.000000e+00> : vector<1xf32>
    %495 = vector.multi_reduction <add>, %494, %cst_225 [1] : vector<1x40xf32> to vector<1xf32>
    %496 = vector.shape_cast %495 : vector<1xf32> to vector<1x1xf32>
    %497 = math.log %496 : vector<1x1xf32>
    %498 = vector.broadcast %497 : vector<1x1xf32> to vector<1x40xf32>
    %499 = arith.subf %493, %498 : vector<1x40xf32>
    %500 = tpu.concatenate %499, %1 in 1 : vector<1x40xf32>, vector<1x88xf32> -> vector<1x128xf32>
    %501 = tpu.concatenate %484, %2 in 1 : vector<1x32xf32>, vector<1x96xf32> -> vector<1x128xf32>
    %502 = tpu.concatenate %446, %3 in 1 : vector<1x10xf32>, vector<1x118xf32> -> vector<1x128xf32>
    %c6 = arith.constant 6 : index
    %503 = memref.load %arg1[%c6] : memref<10xi32, #tpu.memory_space<smem>>
    %504 = vector.broadcast %503 : i32 to vector<1x40xi32>
    %505 = arith.cmpi eq, %4, %504 : vector<1x40xi32>
    %506 = arith.extui %505 : vector<1x40xi1> to vector<1x40xi32>
    %507 = arith.sitofp %506 : vector<1x40xi32> to vector<1x40xf32>
    %c0_226 = arith.constant 0 : index
    %c0_227 = arith.constant 0 : index
    %508 = vector.load %arg2[%c0_226, %c0_227] : memref<40x32xf32, #tpu.memory_space<vmem>>, vector<40x32xf32>
    %cst_228 = arith.constant dense<0.000000e+00> : vector<1x32xf32>
    %509 = tpu.matmul %507, %508, %cst_228 {dimension_numbers = #tpu.dot_dimension_numbers<[1], [0], [0], [1], [0, 0, 1, 1], [], []>} : vector<1x40xf32>, vector<40x32xf32>, vector<1x32xf32> -> vector<1x32xf32>
    %c0_229 = arith.constant 0 : index
    %c0_230 = arith.constant 0 : index
    %510 = vector.load %arg4[%c0_229, %c0_230] : memref<32x896xf32, #tpu.memory_space<vmem>>, vector<32x256xf32>
    %cst_231 = arith.constant dense<0.000000e+00> : vector<1x256xf32>
    %511 = tpu.matmul %509, %510, %cst_231 {dimension_numbers = #tpu.dot_dimension_numbers<[1], [0], [0], [1], [0, 0, 1, 1], [], []>} : vector<1x32xf32>, vector<32x256xf32>, vector<1x256xf32> -> vector<1x256xf32>
    %c0_232 = arith.constant 0 : index
    %c256_233 = arith.constant 256 : index
    %512 = vector.load %arg4[%c0_232, %c256_233] : memref<32x896xf32, #tpu.memory_space<vmem>>, vector<32x256xf32>
    %cst_234 = arith.constant dense<0.000000e+00> : vector<1x256xf32>
    %513 = tpu.matmul %484, %512, %cst_234 {dimension_numbers = #tpu.dot_dimension_numbers<[1], [0], [0], [1], [0, 0, 1, 1], [], []>} : vector<1x32xf32>, vector<32x256xf32>, vector<1x256xf32> -> vector<1x256xf32>
    %514 = vector.extract_strided_slice %511 {offsets = [0, 0], sizes = [1, 128], strides = [1, 1]} : vector<1x256xf32> to vector<1x128xf32>
    %515 = vector.extract_strided_slice %513 {offsets = [0, 0], sizes = [1, 128], strides = [1, 1]} : vector<1x256xf32> to vector<1x128xf32>
    %516 = arith.addf %514, %515 : vector<1x128xf32>
    %c0_235 = arith.constant 0 : index
    %c0_236 = arith.constant 0 : index
    %517 = vector.load %arg5[%c0_235, %c0_236] : memref<1x640xf32, #tpu.memory_space<vmem>>, vector<1x128xf32>
    %518 = arith.addf %516, %517 : vector<1x128xf32>
    %519 = vector.extract_strided_slice %518 {offsets = [0, 0], sizes = [1, 10], strides = [1, 1]} : vector<1x128xf32> to vector<1x10xf32>
    %cst_237 = arith.constant dense<0xFF800000> : vector<1xf32>
    %520 = vector.multi_reduction <maximumf>, %519, %cst_237 [1] : vector<1x10xf32> to vector<1xf32>
    %521 = vector.shape_cast %520 : vector<1xf32> to vector<1x1xf32>
    %522 = vector.broadcast %521 : vector<1x1xf32> to vector<1x10xf32>
    %523 = arith.subf %519, %522 : vector<1x10xf32>
    %524 = math.exp %523 : vector<1x10xf32>
    %cst_238 = arith.constant dense<0.000000e+00> : vector<1xf32>
    %525 = vector.multi_reduction <add>, %524, %cst_238 [1] : vector<1x10xf32> to vector<1xf32>
    %526 = vector.shape_cast %525 : vector<1xf32> to vector<1x1xf32>
    %527 = tpu.reciprocal %526 {approx = true} : vector<1x1xf32> -> vector<1x1xf32>
    %528 = vector.broadcast %527 : vector<1x1xf32> to vector<1x10xf32>
    %529 = arith.mulf %524, %528 : vector<1x10xf32>
    %c0_239 = arith.constant 0 : index
    %c0_240 = arith.constant 0 : index
    %530 = vector.load %arg3[%c0_239, %c0_240] : memref<10x32xf32, #tpu.memory_space<vmem>>, vector<10x32xf32>
    %cst_241 = arith.constant dense<0.000000e+00> : vector<1x32xf32>
    %531 = tpu.matmul %529, %530, %cst_241 {dimension_numbers = #tpu.dot_dimension_numbers<[1], [0], [0], [1], [0, 0, 1, 1], [], []>} : vector<1x10xf32>, vector<10x32xf32>, vector<1x32xf32> -> vector<1x32xf32>
    %532 = vector.extract_strided_slice %511 {offsets = [0, 128], sizes = [1, 128], strides = [1, 1]} : vector<1x256xf32> to vector<1x128xf32>
    %c0_242 = arith.constant 0 : index
    %c512_243 = arith.constant 512 : index
    %533 = vector.load %arg4[%c0_242, %c512_243] : memref<32x896xf32, #tpu.memory_space<vmem>>, vector<32x128xf32>
    %cst_244 = arith.constant dense<0.000000e+00> : vector<1x128xf32>
    %534 = tpu.matmul %531, %533, %cst_244 {dimension_numbers = #tpu.dot_dimension_numbers<[1], [0], [0], [1], [0, 0, 1, 1], [], []>} : vector<1x32xf32>, vector<32x128xf32>, vector<1x128xf32> -> vector<1x128xf32>
    %535 = arith.addf %532, %534 : vector<1x128xf32>
    %c0_245 = arith.constant 0 : index
    %c128_246 = arith.constant 128 : index
    %536 = vector.load %arg5[%c0_245, %c128_246] : memref<1x640xf32, #tpu.memory_space<vmem>>, vector<1x128xf32>
    %537 = arith.addf %535, %536 : vector<1x128xf32>
    %538 = vector.extract_strided_slice %537 {offsets = [0, 0], sizes = [1, 32], strides = [1, 1]} : vector<1x128xf32> to vector<1x32xf32>
    %cst_247 = arith.constant 0.000000e+00 : f32
    %539 = vector.broadcast %cst_247 : f32 to vector<1x32xf32>
    %540 = arith.maximumf %538, %539 : vector<1x32xf32>
    %c0_248 = arith.constant 0 : index
    %c640_249 = arith.constant 640 : index
    %541 = vector.load %arg4[%c0_248, %c640_249] : memref<32x896xf32, #tpu.memory_space<vmem>>, vector<32x128xf32>
    %cst_250 = arith.constant dense<0.000000e+00> : vector<1x128xf32>
    %542 = tpu.matmul %540, %541, %cst_250 {dimension_numbers = #tpu.dot_dimension_numbers<[1], [0], [0], [1], [0, 0, 1, 1], [], []>} : vector<1x32xf32>, vector<32x128xf32>, vector<1x128xf32> -> vector<1x128xf32>
    %c0_251 = arith.constant 0 : index
    %c256_252 = arith.constant 256 : index
    %543 = vector.load %arg5[%c0_251, %c256_252] : memref<1x640xf32, #tpu.memory_space<vmem>>, vector<1x128xf32>
    %544 = arith.addf %542, %543 : vector<1x128xf32>
    %545 = vector.extract_strided_slice %513 {offsets = [0, 128], sizes = [1, 128], strides = [1, 1]} : vector<1x256xf32> to vector<1x128xf32>
    %c0_253 = arith.constant 0 : index
    %c384_254 = arith.constant 384 : index
    %546 = vector.load %arg5[%c0_253, %c384_254] : memref<1x640xf32, #tpu.memory_space<vmem>>, vector<1x128xf32>
    %547 = arith.addf %545, %546 : vector<1x128xf32>
    %548 = vector.extract_strided_slice %544 {offsets = [0, 0], sizes = [1, 64], strides = [1, 1]} : vector<1x128xf32> to vector<1x64xf32>
    %549 = vector.extract_strided_slice %547 {offsets = [0, 0], sizes = [1, 64], strides = [1, 1]} : vector<1x128xf32> to vector<1x64xf32>
    %550 = arith.addf %548, %549 : vector<1x64xf32>
    %551 = arith.negf %550 : vector<1x64xf32>
    %552 = math.exp %551 : vector<1x64xf32>
    %cst_255 = arith.constant 1.000000e+00 : f32
    %553 = vector.broadcast %cst_255 : f32 to vector<1x64xf32>
    %554 = arith.addf %553, %552 : vector<1x64xf32>
    %555 = arith.divf %553, %554 : vector<1x64xf32>
    %556 = vector.extract_strided_slice %555 {offsets = [0, 0], sizes = [1, 32], strides = [1, 1]} : vector<1x64xf32> to vector<1x32xf32>
    %557 = vector.extract_strided_slice %555 {offsets = [0, 32], sizes = [1, 32], strides = [1, 1]} : vector<1x64xf32> to vector<1x32xf32>
    %558 = vector.extract_strided_slice %544 {offsets = [0, 64], sizes = [1, 32], strides = [1, 1]} : vector<1x128xf32> to vector<1x32xf32>
    %559 = vector.extract_strided_slice %547 {offsets = [0, 64], sizes = [1, 32], strides = [1, 1]} : vector<1x128xf32> to vector<1x32xf32>
    %560 = arith.mulf %556, %559 : vector<1x32xf32>
    %561 = arith.addf %558, %560 : vector<1x32xf32>
    %562 = math.tanh %561 : vector<1x32xf32>
    %cst_256 = arith.constant 1.000000e+00 : f32
    %563 = vector.broadcast %cst_256 : f32 to vector<1x32xf32>
    %564 = arith.subf %563, %557 : vector<1x32xf32>
    %565 = arith.mulf %564, %562 : vector<1x32xf32>
    %566 = arith.mulf %557, %484 : vector<1x32xf32>
    %567 = arith.addf %565, %566 : vector<1x32xf32>
    %c0_257 = arith.constant 0 : index
    %c768_258 = arith.constant 768 : index
    %568 = vector.load %arg4[%c0_257, %c768_258] : memref<32x896xf32, #tpu.memory_space<vmem>>, vector<32x128xf32>
    %cst_259 = arith.constant dense<0.000000e+00> : vector<1x128xf32>
    %569 = tpu.matmul %567, %568, %cst_259 {dimension_numbers = #tpu.dot_dimension_numbers<[1], [0], [0], [1], [0, 0, 1, 1], [], []>} : vector<1x32xf32>, vector<32x128xf32>, vector<1x128xf32> -> vector<1x128xf32>
    %c0_260 = arith.constant 0 : index
    %c512_261 = arith.constant 512 : index
    %570 = vector.load %arg5[%c0_260, %c512_261] : memref<1x640xf32, #tpu.memory_space<vmem>>, vector<1x128xf32>
    %571 = arith.addf %569, %570 : vector<1x128xf32>
    %572 = vector.extract_strided_slice %571 {offsets = [0, 0], sizes = [1, 40], strides = [1, 1]} : vector<1x128xf32> to vector<1x40xf32>
    %cst_262 = arith.constant dense<0xFF800000> : vector<1xf32>
    %573 = vector.multi_reduction <maximumf>, %572, %cst_262 [1] : vector<1x40xf32> to vector<1xf32>
    %574 = vector.shape_cast %573 : vector<1xf32> to vector<1x1xf32>
    %575 = vector.broadcast %574 : vector<1x1xf32> to vector<1x40xf32>
    %576 = arith.subf %572, %575 : vector<1x40xf32>
    %577 = math.exp %576 : vector<1x40xf32>
    %cst_263 = arith.constant dense<0.000000e+00> : vector<1xf32>
    %578 = vector.multi_reduction <add>, %577, %cst_263 [1] : vector<1x40xf32> to vector<1xf32>
    %579 = vector.shape_cast %578 : vector<1xf32> to vector<1x1xf32>
    %580 = math.log %579 : vector<1x1xf32>
    %581 = vector.broadcast %580 : vector<1x1xf32> to vector<1x40xf32>
    %582 = arith.subf %576, %581 : vector<1x40xf32>
    %583 = tpu.concatenate %582, %1 in 1 : vector<1x40xf32>, vector<1x88xf32> -> vector<1x128xf32>
    %584 = tpu.concatenate %567, %2 in 1 : vector<1x32xf32>, vector<1x96xf32> -> vector<1x128xf32>
    %585 = tpu.concatenate %529, %3 in 1 : vector<1x10xf32>, vector<1x118xf32> -> vector<1x128xf32>
    %c7 = arith.constant 7 : index
    %586 = memref.load %arg1[%c7] : memref<10xi32, #tpu.memory_space<smem>>
    %587 = vector.broadcast %586 : i32 to vector<1x40xi32>
    %588 = arith.cmpi eq, %4, %587 : vector<1x40xi32>
    %589 = arith.extui %588 : vector<1x40xi1> to vector<1x40xi32>
    %590 = arith.sitofp %589 : vector<1x40xi32> to vector<1x40xf32>
    %c0_264 = arith.constant 0 : index
    %c0_265 = arith.constant 0 : index
    %591 = vector.load %arg2[%c0_264, %c0_265] : memref<40x32xf32, #tpu.memory_space<vmem>>, vector<40x32xf32>
    %cst_266 = arith.constant dense<0.000000e+00> : vector<1x32xf32>
    %592 = tpu.matmul %590, %591, %cst_266 {dimension_numbers = #tpu.dot_dimension_numbers<[1], [0], [0], [1], [0, 0, 1, 1], [], []>} : vector<1x40xf32>, vector<40x32xf32>, vector<1x32xf32> -> vector<1x32xf32>
    %c0_267 = arith.constant 0 : index
    %c0_268 = arith.constant 0 : index
    %593 = vector.load %arg4[%c0_267, %c0_268] : memref<32x896xf32, #tpu.memory_space<vmem>>, vector<32x256xf32>
    %cst_269 = arith.constant dense<0.000000e+00> : vector<1x256xf32>
    %594 = tpu.matmul %592, %593, %cst_269 {dimension_numbers = #tpu.dot_dimension_numbers<[1], [0], [0], [1], [0, 0, 1, 1], [], []>} : vector<1x32xf32>, vector<32x256xf32>, vector<1x256xf32> -> vector<1x256xf32>
    %c0_270 = arith.constant 0 : index
    %c256_271 = arith.constant 256 : index
    %595 = vector.load %arg4[%c0_270, %c256_271] : memref<32x896xf32, #tpu.memory_space<vmem>>, vector<32x256xf32>
    %cst_272 = arith.constant dense<0.000000e+00> : vector<1x256xf32>
    %596 = tpu.matmul %567, %595, %cst_272 {dimension_numbers = #tpu.dot_dimension_numbers<[1], [0], [0], [1], [0, 0, 1, 1], [], []>} : vector<1x32xf32>, vector<32x256xf32>, vector<1x256xf32> -> vector<1x256xf32>
    %597 = vector.extract_strided_slice %594 {offsets = [0, 0], sizes = [1, 128], strides = [1, 1]} : vector<1x256xf32> to vector<1x128xf32>
    %598 = vector.extract_strided_slice %596 {offsets = [0, 0], sizes = [1, 128], strides = [1, 1]} : vector<1x256xf32> to vector<1x128xf32>
    %599 = arith.addf %597, %598 : vector<1x128xf32>
    %c0_273 = arith.constant 0 : index
    %c0_274 = arith.constant 0 : index
    %600 = vector.load %arg5[%c0_273, %c0_274] : memref<1x640xf32, #tpu.memory_space<vmem>>, vector<1x128xf32>
    %601 = arith.addf %599, %600 : vector<1x128xf32>
    %602 = vector.extract_strided_slice %601 {offsets = [0, 0], sizes = [1, 10], strides = [1, 1]} : vector<1x128xf32> to vector<1x10xf32>
    %cst_275 = arith.constant dense<0xFF800000> : vector<1xf32>
    %603 = vector.multi_reduction <maximumf>, %602, %cst_275 [1] : vector<1x10xf32> to vector<1xf32>
    %604 = vector.shape_cast %603 : vector<1xf32> to vector<1x1xf32>
    %605 = vector.broadcast %604 : vector<1x1xf32> to vector<1x10xf32>
    %606 = arith.subf %602, %605 : vector<1x10xf32>
    %607 = math.exp %606 : vector<1x10xf32>
    %cst_276 = arith.constant dense<0.000000e+00> : vector<1xf32>
    %608 = vector.multi_reduction <add>, %607, %cst_276 [1] : vector<1x10xf32> to vector<1xf32>
    %609 = vector.shape_cast %608 : vector<1xf32> to vector<1x1xf32>
    %610 = tpu.reciprocal %609 {approx = true} : vector<1x1xf32> -> vector<1x1xf32>
    %611 = vector.broadcast %610 : vector<1x1xf32> to vector<1x10xf32>
    %612 = arith.mulf %607, %611 : vector<1x10xf32>
    %c0_277 = arith.constant 0 : index
    %c0_278 = arith.constant 0 : index
    %613 = vector.load %arg3[%c0_277, %c0_278] : memref<10x32xf32, #tpu.memory_space<vmem>>, vector<10x32xf32>
    %cst_279 = arith.constant dense<0.000000e+00> : vector<1x32xf32>
    %614 = tpu.matmul %612, %613, %cst_279 {dimension_numbers = #tpu.dot_dimension_numbers<[1], [0], [0], [1], [0, 0, 1, 1], [], []>} : vector<1x10xf32>, vector<10x32xf32>, vector<1x32xf32> -> vector<1x32xf32>
    %615 = vector.extract_strided_slice %594 {offsets = [0, 128], sizes = [1, 128], strides = [1, 1]} : vector<1x256xf32> to vector<1x128xf32>
    %c0_280 = arith.constant 0 : index
    %c512_281 = arith.constant 512 : index
    %616 = vector.load %arg4[%c0_280, %c512_281] : memref<32x896xf32, #tpu.memory_space<vmem>>, vector<32x128xf32>
    %cst_282 = arith.constant dense<0.000000e+00> : vector<1x128xf32>
    %617 = tpu.matmul %614, %616, %cst_282 {dimension_numbers = #tpu.dot_dimension_numbers<[1], [0], [0], [1], [0, 0, 1, 1], [], []>} : vector<1x32xf32>, vector<32x128xf32>, vector<1x128xf32> -> vector<1x128xf32>
    %618 = arith.addf %615, %617 : vector<1x128xf32>
    %c0_283 = arith.constant 0 : index
    %c128_284 = arith.constant 128 : index
    %619 = vector.load %arg5[%c0_283, %c128_284] : memref<1x640xf32, #tpu.memory_space<vmem>>, vector<1x128xf32>
    %620 = arith.addf %618, %619 : vector<1x128xf32>
    %621 = vector.extract_strided_slice %620 {offsets = [0, 0], sizes = [1, 32], strides = [1, 1]} : vector<1x128xf32> to vector<1x32xf32>
    %cst_285 = arith.constant 0.000000e+00 : f32
    %622 = vector.broadcast %cst_285 : f32 to vector<1x32xf32>
    %623 = arith.maximumf %621, %622 : vector<1x32xf32>
    %c0_286 = arith.constant 0 : index
    %c640_287 = arith.constant 640 : index
    %624 = vector.load %arg4[%c0_286, %c640_287] : memref<32x896xf32, #tpu.memory_space<vmem>>, vector<32x128xf32>
    %cst_288 = arith.constant dense<0.000000e+00> : vector<1x128xf32>
    %625 = tpu.matmul %623, %624, %cst_288 {dimension_numbers = #tpu.dot_dimension_numbers<[1], [0], [0], [1], [0, 0, 1, 1], [], []>} : vector<1x32xf32>, vector<32x128xf32>, vector<1x128xf32> -> vector<1x128xf32>
    %c0_289 = arith.constant 0 : index
    %c256_290 = arith.constant 256 : index
    %626 = vector.load %arg5[%c0_289, %c256_290] : memref<1x640xf32, #tpu.memory_space<vmem>>, vector<1x128xf32>
    %627 = arith.addf %625, %626 : vector<1x128xf32>
    %628 = vector.extract_strided_slice %596 {offsets = [0, 128], sizes = [1, 128], strides = [1, 1]} : vector<1x256xf32> to vector<1x128xf32>
    %c0_291 = arith.constant 0 : index
    %c384_292 = arith.constant 384 : index
    %629 = vector.load %arg5[%c0_291, %c384_292] : memref<1x640xf32, #tpu.memory_space<vmem>>, vector<1x128xf32>
    %630 = arith.addf %628, %629 : vector<1x128xf32>
    %631 = vector.extract_strided_slice %627 {offsets = [0, 0], sizes = [1, 64], strides = [1, 1]} : vector<1x128xf32> to vector<1x64xf32>
    %632 = vector.extract_strided_slice %630 {offsets = [0, 0], sizes = [1, 64], strides = [1, 1]} : vector<1x128xf32> to vector<1x64xf32>
    %633 = arith.addf %631, %632 : vector<1x64xf32>
    %634 = arith.negf %633 : vector<1x64xf32>
    %635 = math.exp %634 : vector<1x64xf32>
    %cst_293 = arith.constant 1.000000e+00 : f32
    %636 = vector.broadcast %cst_293 : f32 to vector<1x64xf32>
    %637 = arith.addf %636, %635 : vector<1x64xf32>
    %638 = arith.divf %636, %637 : vector<1x64xf32>
    %639 = vector.extract_strided_slice %638 {offsets = [0, 0], sizes = [1, 32], strides = [1, 1]} : vector<1x64xf32> to vector<1x32xf32>
    %640 = vector.extract_strided_slice %638 {offsets = [0, 32], sizes = [1, 32], strides = [1, 1]} : vector<1x64xf32> to vector<1x32xf32>
    %641 = vector.extract_strided_slice %627 {offsets = [0, 64], sizes = [1, 32], strides = [1, 1]} : vector<1x128xf32> to vector<1x32xf32>
    %642 = vector.extract_strided_slice %630 {offsets = [0, 64], sizes = [1, 32], strides = [1, 1]} : vector<1x128xf32> to vector<1x32xf32>
    %643 = arith.mulf %639, %642 : vector<1x32xf32>
    %644 = arith.addf %641, %643 : vector<1x32xf32>
    %645 = math.tanh %644 : vector<1x32xf32>
    %cst_294 = arith.constant 1.000000e+00 : f32
    %646 = vector.broadcast %cst_294 : f32 to vector<1x32xf32>
    %647 = arith.subf %646, %640 : vector<1x32xf32>
    %648 = arith.mulf %647, %645 : vector<1x32xf32>
    %649 = arith.mulf %640, %567 : vector<1x32xf32>
    %650 = arith.addf %648, %649 : vector<1x32xf32>
    %c0_295 = arith.constant 0 : index
    %c768_296 = arith.constant 768 : index
    %651 = vector.load %arg4[%c0_295, %c768_296] : memref<32x896xf32, #tpu.memory_space<vmem>>, vector<32x128xf32>
    %cst_297 = arith.constant dense<0.000000e+00> : vector<1x128xf32>
    %652 = tpu.matmul %650, %651, %cst_297 {dimension_numbers = #tpu.dot_dimension_numbers<[1], [0], [0], [1], [0, 0, 1, 1], [], []>} : vector<1x32xf32>, vector<32x128xf32>, vector<1x128xf32> -> vector<1x128xf32>
    %c0_298 = arith.constant 0 : index
    %c512_299 = arith.constant 512 : index
    %653 = vector.load %arg5[%c0_298, %c512_299] : memref<1x640xf32, #tpu.memory_space<vmem>>, vector<1x128xf32>
    %654 = arith.addf %652, %653 : vector<1x128xf32>
    %655 = vector.extract_strided_slice %654 {offsets = [0, 0], sizes = [1, 40], strides = [1, 1]} : vector<1x128xf32> to vector<1x40xf32>
    %cst_300 = arith.constant dense<0xFF800000> : vector<1xf32>
    %656 = vector.multi_reduction <maximumf>, %655, %cst_300 [1] : vector<1x40xf32> to vector<1xf32>
    %657 = vector.shape_cast %656 : vector<1xf32> to vector<1x1xf32>
    %658 = vector.broadcast %657 : vector<1x1xf32> to vector<1x40xf32>
    %659 = arith.subf %655, %658 : vector<1x40xf32>
    %660 = math.exp %659 : vector<1x40xf32>
    %cst_301 = arith.constant dense<0.000000e+00> : vector<1xf32>
    %661 = vector.multi_reduction <add>, %660, %cst_301 [1] : vector<1x40xf32> to vector<1xf32>
    %662 = vector.shape_cast %661 : vector<1xf32> to vector<1x1xf32>
    %663 = math.log %662 : vector<1x1xf32>
    %664 = vector.broadcast %663 : vector<1x1xf32> to vector<1x40xf32>
    %665 = arith.subf %659, %664 : vector<1x40xf32>
    %666 = tpu.concatenate %665, %1 in 1 : vector<1x40xf32>, vector<1x88xf32> -> vector<1x128xf32>
    %667 = tpu.concatenate %650, %2 in 1 : vector<1x32xf32>, vector<1x96xf32> -> vector<1x128xf32>
    %668 = tpu.concatenate %612, %3 in 1 : vector<1x10xf32>, vector<1x118xf32> -> vector<1x128xf32>
    %c8 = arith.constant 8 : index
    %669 = memref.load %arg1[%c8] : memref<10xi32, #tpu.memory_space<smem>>
    %670 = vector.broadcast %669 : i32 to vector<1x40xi32>
    %671 = arith.cmpi eq, %4, %670 : vector<1x40xi32>
    %672 = arith.extui %671 : vector<1x40xi1> to vector<1x40xi32>
    %673 = arith.sitofp %672 : vector<1x40xi32> to vector<1x40xf32>
    %c0_302 = arith.constant 0 : index
    %c0_303 = arith.constant 0 : index
    %674 = vector.load %arg2[%c0_302, %c0_303] : memref<40x32xf32, #tpu.memory_space<vmem>>, vector<40x32xf32>
    %cst_304 = arith.constant dense<0.000000e+00> : vector<1x32xf32>
    %675 = tpu.matmul %673, %674, %cst_304 {dimension_numbers = #tpu.dot_dimension_numbers<[1], [0], [0], [1], [0, 0, 1, 1], [], []>} : vector<1x40xf32>, vector<40x32xf32>, vector<1x32xf32> -> vector<1x32xf32>
    %c0_305 = arith.constant 0 : index
    %c0_306 = arith.constant 0 : index
    %676 = vector.load %arg4[%c0_305, %c0_306] : memref<32x896xf32, #tpu.memory_space<vmem>>, vector<32x256xf32>
    %cst_307 = arith.constant dense<0.000000e+00> : vector<1x256xf32>
    %677 = tpu.matmul %675, %676, %cst_307 {dimension_numbers = #tpu.dot_dimension_numbers<[1], [0], [0], [1], [0, 0, 1, 1], [], []>} : vector<1x32xf32>, vector<32x256xf32>, vector<1x256xf32> -> vector<1x256xf32>
    %c0_308 = arith.constant 0 : index
    %c256_309 = arith.constant 256 : index
    %678 = vector.load %arg4[%c0_308, %c256_309] : memref<32x896xf32, #tpu.memory_space<vmem>>, vector<32x256xf32>
    %cst_310 = arith.constant dense<0.000000e+00> : vector<1x256xf32>
    %679 = tpu.matmul %650, %678, %cst_310 {dimension_numbers = #tpu.dot_dimension_numbers<[1], [0], [0], [1], [0, 0, 1, 1], [], []>} : vector<1x32xf32>, vector<32x256xf32>, vector<1x256xf32> -> vector<1x256xf32>
    %680 = vector.extract_strided_slice %677 {offsets = [0, 0], sizes = [1, 128], strides = [1, 1]} : vector<1x256xf32> to vector<1x128xf32>
    %681 = vector.extract_strided_slice %679 {offsets = [0, 0], sizes = [1, 128], strides = [1, 1]} : vector<1x256xf32> to vector<1x128xf32>
    %682 = arith.addf %680, %681 : vector<1x128xf32>
    %c0_311 = arith.constant 0 : index
    %c0_312 = arith.constant 0 : index
    %683 = vector.load %arg5[%c0_311, %c0_312] : memref<1x640xf32, #tpu.memory_space<vmem>>, vector<1x128xf32>
    %684 = arith.addf %682, %683 : vector<1x128xf32>
    %685 = vector.extract_strided_slice %684 {offsets = [0, 0], sizes = [1, 10], strides = [1, 1]} : vector<1x128xf32> to vector<1x10xf32>
    %cst_313 = arith.constant dense<0xFF800000> : vector<1xf32>
    %686 = vector.multi_reduction <maximumf>, %685, %cst_313 [1] : vector<1x10xf32> to vector<1xf32>
    %687 = vector.shape_cast %686 : vector<1xf32> to vector<1x1xf32>
    %688 = vector.broadcast %687 : vector<1x1xf32> to vector<1x10xf32>
    %689 = arith.subf %685, %688 : vector<1x10xf32>
    %690 = math.exp %689 : vector<1x10xf32>
    %cst_314 = arith.constant dense<0.000000e+00> : vector<1xf32>
    %691 = vector.multi_reduction <add>, %690, %cst_314 [1] : vector<1x10xf32> to vector<1xf32>
    %692 = vector.shape_cast %691 : vector<1xf32> to vector<1x1xf32>
    %693 = tpu.reciprocal %692 {approx = true} : vector<1x1xf32> -> vector<1x1xf32>
    %694 = vector.broadcast %693 : vector<1x1xf32> to vector<1x10xf32>
    %695 = arith.mulf %690, %694 : vector<1x10xf32>
    %c0_315 = arith.constant 0 : index
    %c0_316 = arith.constant 0 : index
    %696 = vector.load %arg3[%c0_315, %c0_316] : memref<10x32xf32, #tpu.memory_space<vmem>>, vector<10x32xf32>
    %cst_317 = arith.constant dense<0.000000e+00> : vector<1x32xf32>
    %697 = tpu.matmul %695, %696, %cst_317 {dimension_numbers = #tpu.dot_dimension_numbers<[1], [0], [0], [1], [0, 0, 1, 1], [], []>} : vector<1x10xf32>, vector<10x32xf32>, vector<1x32xf32> -> vector<1x32xf32>
    %698 = vector.extract_strided_slice %677 {offsets = [0, 128], sizes = [1, 128], strides = [1, 1]} : vector<1x256xf32> to vector<1x128xf32>
    %c0_318 = arith.constant 0 : index
    %c512_319 = arith.constant 512 : index
    %699 = vector.load %arg4[%c0_318, %c512_319] : memref<32x896xf32, #tpu.memory_space<vmem>>, vector<32x128xf32>
    %cst_320 = arith.constant dense<0.000000e+00> : vector<1x128xf32>
    %700 = tpu.matmul %697, %699, %cst_320 {dimension_numbers = #tpu.dot_dimension_numbers<[1], [0], [0], [1], [0, 0, 1, 1], [], []>} : vector<1x32xf32>, vector<32x128xf32>, vector<1x128xf32> -> vector<1x128xf32>
    %701 = arith.addf %698, %700 : vector<1x128xf32>
    %c0_321 = arith.constant 0 : index
    %c128_322 = arith.constant 128 : index
    %702 = vector.load %arg5[%c0_321, %c128_322] : memref<1x640xf32, #tpu.memory_space<vmem>>, vector<1x128xf32>
    %703 = arith.addf %701, %702 : vector<1x128xf32>
    %704 = vector.extract_strided_slice %703 {offsets = [0, 0], sizes = [1, 32], strides = [1, 1]} : vector<1x128xf32> to vector<1x32xf32>
    %cst_323 = arith.constant 0.000000e+00 : f32
    %705 = vector.broadcast %cst_323 : f32 to vector<1x32xf32>
    %706 = arith.maximumf %704, %705 : vector<1x32xf32>
    %c0_324 = arith.constant 0 : index
    %c640_325 = arith.constant 640 : index
    %707 = vector.load %arg4[%c0_324, %c640_325] : memref<32x896xf32, #tpu.memory_space<vmem>>, vector<32x128xf32>
    %cst_326 = arith.constant dense<0.000000e+00> : vector<1x128xf32>
    %708 = tpu.matmul %706, %707, %cst_326 {dimension_numbers = #tpu.dot_dimension_numbers<[1], [0], [0], [1], [0, 0, 1, 1], [], []>} : vector<1x32xf32>, vector<32x128xf32>, vector<1x128xf32> -> vector<1x128xf32>
    %c0_327 = arith.constant 0 : index
    %c256_328 = arith.constant 256 : index
    %709 = vector.load %arg5[%c0_327, %c256_328] : memref<1x640xf32, #tpu.memory_space<vmem>>, vector<1x128xf32>
    %710 = arith.addf %708, %709 : vector<1x128xf32>
    %711 = vector.extract_strided_slice %679 {offsets = [0, 128], sizes = [1, 128], strides = [1, 1]} : vector<1x256xf32> to vector<1x128xf32>
    %c0_329 = arith.constant 0 : index
    %c384_330 = arith.constant 384 : index
    %712 = vector.load %arg5[%c0_329, %c384_330] : memref<1x640xf32, #tpu.memory_space<vmem>>, vector<1x128xf32>
    %713 = arith.addf %711, %712 : vector<1x128xf32>
    %714 = vector.extract_strided_slice %710 {offsets = [0, 0], sizes = [1, 64], strides = [1, 1]} : vector<1x128xf32> to vector<1x64xf32>
    %715 = vector.extract_strided_slice %713 {offsets = [0, 0], sizes = [1, 64], strides = [1, 1]} : vector<1x128xf32> to vector<1x64xf32>
    %716 = arith.addf %714, %715 : vector<1x64xf32>
    %717 = arith.negf %716 : vector<1x64xf32>
    %718 = math.exp %717 : vector<1x64xf32>
    %cst_331 = arith.constant 1.000000e+00 : f32
    %719 = vector.broadcast %cst_331 : f32 to vector<1x64xf32>
    %720 = arith.addf %719, %718 : vector<1x64xf32>
    %721 = arith.divf %719, %720 : vector<1x64xf32>
    %722 = vector.extract_strided_slice %721 {offsets = [0, 0], sizes = [1, 32], strides = [1, 1]} : vector<1x64xf32> to vector<1x32xf32>
    %723 = vector.extract_strided_slice %721 {offsets = [0, 32], sizes = [1, 32], strides = [1, 1]} : vector<1x64xf32> to vector<1x32xf32>
    %724 = vector.extract_strided_slice %710 {offsets = [0, 64], sizes = [1, 32], strides = [1, 1]} : vector<1x128xf32> to vector<1x32xf32>
    %725 = vector.extract_strided_slice %713 {offsets = [0, 64], sizes = [1, 32], strides = [1, 1]} : vector<1x128xf32> to vector<1x32xf32>
    %726 = arith.mulf %722, %725 : vector<1x32xf32>
    %727 = arith.addf %724, %726 : vector<1x32xf32>
    %728 = math.tanh %727 : vector<1x32xf32>
    %cst_332 = arith.constant 1.000000e+00 : f32
    %729 = vector.broadcast %cst_332 : f32 to vector<1x32xf32>
    %730 = arith.subf %729, %723 : vector<1x32xf32>
    %731 = arith.mulf %730, %728 : vector<1x32xf32>
    %732 = arith.mulf %723, %650 : vector<1x32xf32>
    %733 = arith.addf %731, %732 : vector<1x32xf32>
    %c0_333 = arith.constant 0 : index
    %c768_334 = arith.constant 768 : index
    %734 = vector.load %arg4[%c0_333, %c768_334] : memref<32x896xf32, #tpu.memory_space<vmem>>, vector<32x128xf32>
    %cst_335 = arith.constant dense<0.000000e+00> : vector<1x128xf32>
    %735 = tpu.matmul %733, %734, %cst_335 {dimension_numbers = #tpu.dot_dimension_numbers<[1], [0], [0], [1], [0, 0, 1, 1], [], []>} : vector<1x32xf32>, vector<32x128xf32>, vector<1x128xf32> -> vector<1x128xf32>
    %c0_336 = arith.constant 0 : index
    %c512_337 = arith.constant 512 : index
    %736 = vector.load %arg5[%c0_336, %c512_337] : memref<1x640xf32, #tpu.memory_space<vmem>>, vector<1x128xf32>
    %737 = arith.addf %735, %736 : vector<1x128xf32>
    %738 = vector.extract_strided_slice %737 {offsets = [0, 0], sizes = [1, 40], strides = [1, 1]} : vector<1x128xf32> to vector<1x40xf32>
    %cst_338 = arith.constant dense<0xFF800000> : vector<1xf32>
    %739 = vector.multi_reduction <maximumf>, %738, %cst_338 [1] : vector<1x40xf32> to vector<1xf32>
    %740 = vector.shape_cast %739 : vector<1xf32> to vector<1x1xf32>
    %741 = vector.broadcast %740 : vector<1x1xf32> to vector<1x40xf32>
    %742 = arith.subf %738, %741 : vector<1x40xf32>
    %743 = math.exp %742 : vector<1x40xf32>
    %cst_339 = arith.constant dense<0.000000e+00> : vector<1xf32>
    %744 = vector.multi_reduction <add>, %743, %cst_339 [1] : vector<1x40xf32> to vector<1xf32>
    %745 = vector.shape_cast %744 : vector<1xf32> to vector<1x1xf32>
    %746 = math.log %745 : vector<1x1xf32>
    %747 = vector.broadcast %746 : vector<1x1xf32> to vector<1x40xf32>
    %748 = arith.subf %742, %747 : vector<1x40xf32>
    %749 = tpu.concatenate %748, %1 in 1 : vector<1x40xf32>, vector<1x88xf32> -> vector<1x128xf32>
    %750 = tpu.concatenate %733, %2 in 1 : vector<1x32xf32>, vector<1x96xf32> -> vector<1x128xf32>
    %751 = tpu.concatenate %695, %3 in 1 : vector<1x10xf32>, vector<1x118xf32> -> vector<1x128xf32>
    %c9 = arith.constant 9 : index
    %752 = memref.load %arg1[%c9] : memref<10xi32, #tpu.memory_space<smem>>
    %753 = vector.broadcast %752 : i32 to vector<1x40xi32>
    %754 = arith.cmpi eq, %4, %753 : vector<1x40xi32>
    %755 = arith.extui %754 : vector<1x40xi1> to vector<1x40xi32>
    %756 = arith.sitofp %755 : vector<1x40xi32> to vector<1x40xf32>
    %c0_340 = arith.constant 0 : index
    %c0_341 = arith.constant 0 : index
    %757 = vector.load %arg2[%c0_340, %c0_341] : memref<40x32xf32, #tpu.memory_space<vmem>>, vector<40x32xf32>
    %cst_342 = arith.constant dense<0.000000e+00> : vector<1x32xf32>
    %758 = tpu.matmul %756, %757, %cst_342 {dimension_numbers = #tpu.dot_dimension_numbers<[1], [0], [0], [1], [0, 0, 1, 1], [], []>} : vector<1x40xf32>, vector<40x32xf32>, vector<1x32xf32> -> vector<1x32xf32>
    %c0_343 = arith.constant 0 : index
    %c0_344 = arith.constant 0 : index
    %759 = vector.load %arg4[%c0_343, %c0_344] : memref<32x896xf32, #tpu.memory_space<vmem>>, vector<32x256xf32>
    %cst_345 = arith.constant dense<0.000000e+00> : vector<1x256xf32>
    %760 = tpu.matmul %758, %759, %cst_345 {dimension_numbers = #tpu.dot_dimension_numbers<[1], [0], [0], [1], [0, 0, 1, 1], [], []>} : vector<1x32xf32>, vector<32x256xf32>, vector<1x256xf32> -> vector<1x256xf32>
    %c0_346 = arith.constant 0 : index
    %c256_347 = arith.constant 256 : index
    %761 = vector.load %arg4[%c0_346, %c256_347] : memref<32x896xf32, #tpu.memory_space<vmem>>, vector<32x256xf32>
    %cst_348 = arith.constant dense<0.000000e+00> : vector<1x256xf32>
    %762 = tpu.matmul %733, %761, %cst_348 {dimension_numbers = #tpu.dot_dimension_numbers<[1], [0], [0], [1], [0, 0, 1, 1], [], []>} : vector<1x32xf32>, vector<32x256xf32>, vector<1x256xf32> -> vector<1x256xf32>
    %763 = vector.extract_strided_slice %760 {offsets = [0, 0], sizes = [1, 128], strides = [1, 1]} : vector<1x256xf32> to vector<1x128xf32>
    %764 = vector.extract_strided_slice %762 {offsets = [0, 0], sizes = [1, 128], strides = [1, 1]} : vector<1x256xf32> to vector<1x128xf32>
    %765 = arith.addf %763, %764 : vector<1x128xf32>
    %c0_349 = arith.constant 0 : index
    %c0_350 = arith.constant 0 : index
    %766 = vector.load %arg5[%c0_349, %c0_350] : memref<1x640xf32, #tpu.memory_space<vmem>>, vector<1x128xf32>
    %767 = arith.addf %765, %766 : vector<1x128xf32>
    %768 = vector.extract_strided_slice %767 {offsets = [0, 0], sizes = [1, 10], strides = [1, 1]} : vector<1x128xf32> to vector<1x10xf32>
    %cst_351 = arith.constant dense<0xFF800000> : vector<1xf32>
    %769 = vector.multi_reduction <maximumf>, %768, %cst_351 [1] : vector<1x10xf32> to vector<1xf32>
    %770 = vector.shape_cast %769 : vector<1xf32> to vector<1x1xf32>
    %771 = vector.broadcast %770 : vector<1x1xf32> to vector<1x10xf32>
    %772 = arith.subf %768, %771 : vector<1x10xf32>
    %773 = math.exp %772 : vector<1x10xf32>
    %cst_352 = arith.constant dense<0.000000e+00> : vector<1xf32>
    %774 = vector.multi_reduction <add>, %773, %cst_352 [1] : vector<1x10xf32> to vector<1xf32>
    %775 = vector.shape_cast %774 : vector<1xf32> to vector<1x1xf32>
    %776 = tpu.reciprocal %775 {approx = true} : vector<1x1xf32> -> vector<1x1xf32>
    %777 = vector.broadcast %776 : vector<1x1xf32> to vector<1x10xf32>
    %778 = arith.mulf %773, %777 : vector<1x10xf32>
    %c0_353 = arith.constant 0 : index
    %c0_354 = arith.constant 0 : index
    %779 = vector.load %arg3[%c0_353, %c0_354] : memref<10x32xf32, #tpu.memory_space<vmem>>, vector<10x32xf32>
    %cst_355 = arith.constant dense<0.000000e+00> : vector<1x32xf32>
    %780 = tpu.matmul %778, %779, %cst_355 {dimension_numbers = #tpu.dot_dimension_numbers<[1], [0], [0], [1], [0, 0, 1, 1], [], []>} : vector<1x10xf32>, vector<10x32xf32>, vector<1x32xf32> -> vector<1x32xf32>
    %781 = vector.extract_strided_slice %760 {offsets = [0, 128], sizes = [1, 128], strides = [1, 1]} : vector<1x256xf32> to vector<1x128xf32>
    %c0_356 = arith.constant 0 : index
    %c512_357 = arith.constant 512 : index
    %782 = vector.load %arg4[%c0_356, %c512_357] : memref<32x896xf32, #tpu.memory_space<vmem>>, vector<32x128xf32>
    %cst_358 = arith.constant dense<0.000000e+00> : vector<1x128xf32>
    %783 = tpu.matmul %780, %782, %cst_358 {dimension_numbers = #tpu.dot_dimension_numbers<[1], [0], [0], [1], [0, 0, 1, 1], [], []>} : vector<1x32xf32>, vector<32x128xf32>, vector<1x128xf32> -> vector<1x128xf32>
    %784 = arith.addf %781, %783 : vector<1x128xf32>
    %c0_359 = arith.constant 0 : index
    %c128_360 = arith.constant 128 : index
    %785 = vector.load %arg5[%c0_359, %c128_360] : memref<1x640xf32, #tpu.memory_space<vmem>>, vector<1x128xf32>
    %786 = arith.addf %784, %785 : vector<1x128xf32>
    %787 = vector.extract_strided_slice %786 {offsets = [0, 0], sizes = [1, 32], strides = [1, 1]} : vector<1x128xf32> to vector<1x32xf32>
    %cst_361 = arith.constant 0.000000e+00 : f32
    %788 = vector.broadcast %cst_361 : f32 to vector<1x32xf32>
    %789 = arith.maximumf %787, %788 : vector<1x32xf32>
    %c0_362 = arith.constant 0 : index
    %c640_363 = arith.constant 640 : index
    %790 = vector.load %arg4[%c0_362, %c640_363] : memref<32x896xf32, #tpu.memory_space<vmem>>, vector<32x128xf32>
    %cst_364 = arith.constant dense<0.000000e+00> : vector<1x128xf32>
    %791 = tpu.matmul %789, %790, %cst_364 {dimension_numbers = #tpu.dot_dimension_numbers<[1], [0], [0], [1], [0, 0, 1, 1], [], []>} : vector<1x32xf32>, vector<32x128xf32>, vector<1x128xf32> -> vector<1x128xf32>
    %c0_365 = arith.constant 0 : index
    %c256_366 = arith.constant 256 : index
    %792 = vector.load %arg5[%c0_365, %c256_366] : memref<1x640xf32, #tpu.memory_space<vmem>>, vector<1x128xf32>
    %793 = arith.addf %791, %792 : vector<1x128xf32>
    %794 = vector.extract_strided_slice %762 {offsets = [0, 128], sizes = [1, 128], strides = [1, 1]} : vector<1x256xf32> to vector<1x128xf32>
    %c0_367 = arith.constant 0 : index
    %c384_368 = arith.constant 384 : index
    %795 = vector.load %arg5[%c0_367, %c384_368] : memref<1x640xf32, #tpu.memory_space<vmem>>, vector<1x128xf32>
    %796 = arith.addf %794, %795 : vector<1x128xf32>
    %797 = vector.extract_strided_slice %793 {offsets = [0, 0], sizes = [1, 64], strides = [1, 1]} : vector<1x128xf32> to vector<1x64xf32>
    %798 = vector.extract_strided_slice %796 {offsets = [0, 0], sizes = [1, 64], strides = [1, 1]} : vector<1x128xf32> to vector<1x64xf32>
    %799 = arith.addf %797, %798 : vector<1x64xf32>
    %800 = arith.negf %799 : vector<1x64xf32>
    %801 = math.exp %800 : vector<1x64xf32>
    %cst_369 = arith.constant 1.000000e+00 : f32
    %802 = vector.broadcast %cst_369 : f32 to vector<1x64xf32>
    %803 = arith.addf %802, %801 : vector<1x64xf32>
    %804 = arith.divf %802, %803 : vector<1x64xf32>
    %805 = vector.extract_strided_slice %804 {offsets = [0, 0], sizes = [1, 32], strides = [1, 1]} : vector<1x64xf32> to vector<1x32xf32>
    %806 = vector.extract_strided_slice %804 {offsets = [0, 32], sizes = [1, 32], strides = [1, 1]} : vector<1x64xf32> to vector<1x32xf32>
    %807 = vector.extract_strided_slice %793 {offsets = [0, 64], sizes = [1, 32], strides = [1, 1]} : vector<1x128xf32> to vector<1x32xf32>
    %808 = vector.extract_strided_slice %796 {offsets = [0, 64], sizes = [1, 32], strides = [1, 1]} : vector<1x128xf32> to vector<1x32xf32>
    %809 = arith.mulf %805, %808 : vector<1x32xf32>
    %810 = arith.addf %807, %809 : vector<1x32xf32>
    %811 = math.tanh %810 : vector<1x32xf32>
    %cst_370 = arith.constant 1.000000e+00 : f32
    %812 = vector.broadcast %cst_370 : f32 to vector<1x32xf32>
    %813 = arith.subf %812, %806 : vector<1x32xf32>
    %814 = arith.mulf %813, %811 : vector<1x32xf32>
    %815 = arith.mulf %806, %733 : vector<1x32xf32>
    %816 = arith.addf %814, %815 : vector<1x32xf32>
    %c0_371 = arith.constant 0 : index
    %c768_372 = arith.constant 768 : index
    %817 = vector.load %arg4[%c0_371, %c768_372] : memref<32x896xf32, #tpu.memory_space<vmem>>, vector<32x128xf32>
    %cst_373 = arith.constant dense<0.000000e+00> : vector<1x128xf32>
    %818 = tpu.matmul %816, %817, %cst_373 {dimension_numbers = #tpu.dot_dimension_numbers<[1], [0], [0], [1], [0, 0, 1, 1], [], []>} : vector<1x32xf32>, vector<32x128xf32>, vector<1x128xf32> -> vector<1x128xf32>
    %c0_374 = arith.constant 0 : index
    %c512_375 = arith.constant 512 : index
    %819 = vector.load %arg5[%c0_374, %c512_375] : memref<1x640xf32, #tpu.memory_space<vmem>>, vector<1x128xf32>
    %820 = arith.addf %818, %819 : vector<1x128xf32>
    %821 = vector.extract_strided_slice %820 {offsets = [0, 0], sizes = [1, 40], strides = [1, 1]} : vector<1x128xf32> to vector<1x40xf32>
    %cst_376 = arith.constant dense<0xFF800000> : vector<1xf32>
    %822 = vector.multi_reduction <maximumf>, %821, %cst_376 [1] : vector<1x40xf32> to vector<1xf32>
    %823 = vector.shape_cast %822 : vector<1xf32> to vector<1x1xf32>
    %824 = vector.broadcast %823 : vector<1x1xf32> to vector<1x40xf32>
    %825 = arith.subf %821, %824 : vector<1x40xf32>
    %826 = math.exp %825 : vector<1x40xf32>
    %cst_377 = arith.constant dense<0.000000e+00> : vector<1xf32>
    %827 = vector.multi_reduction <add>, %826, %cst_377 [1] : vector<1x40xf32> to vector<1xf32>
    %828 = vector.shape_cast %827 : vector<1xf32> to vector<1x1xf32>
    %829 = math.log %828 : vector<1x1xf32>
    %830 = vector.broadcast %829 : vector<1x1xf32> to vector<1x40xf32>
    %831 = arith.subf %825, %830 : vector<1x40xf32>
    %832 = tpu.concatenate %831, %1 in 1 : vector<1x40xf32>, vector<1x88xf32> -> vector<1x128xf32>
    %833 = tpu.concatenate %816, %2 in 1 : vector<1x32xf32>, vector<1x96xf32> -> vector<1x128xf32>
    %834 = tpu.concatenate %778, %3 in 1 : vector<1x10xf32>, vector<1x118xf32> -> vector<1x128xf32>
    %835 = tpu.concatenate %85, %86, %87, %168, %169, %170, %251, %252, %253, %334, %335, %336, %417, %418, %419, %500 in 0 : vector<1x128xf32>, vector<1x128xf32>, vector<1x128xf32>, vector<1x128xf32>, vector<1x128xf32>, vector<1x128xf32>, vector<1x128xf32>, vector<1x128xf32>, vector<1x128xf32>, vector<1x128xf32>, vector<1x128xf32>, vector<1x128xf32>, vector<1x128xf32>, vector<1x128xf32>, vector<1x128xf32>, vector<1x128xf32> -> vector<16x128xf32>
    %836 = tpu.concatenate %501, %502, %583, %584, %585, %666, %667, %668, %749, %750, %751, %832, %833, %834 in 0 : vector<1x128xf32>, vector<1x128xf32>, vector<1x128xf32>, vector<1x128xf32>, vector<1x128xf32>, vector<1x128xf32>, vector<1x128xf32>, vector<1x128xf32>, vector<1x128xf32>, vector<1x128xf32>, vector<1x128xf32>, vector<1x128xf32>, vector<1x128xf32>, vector<1x128xf32> -> vector<14x128xf32>
    %837 = tpu.concatenate %835, %836 in 0 : vector<16x128xf32>, vector<14x128xf32> -> vector<30x128xf32>
    %c0_378 = arith.constant 0 : index
    %c0_379 = arith.constant 0 : index
    %838 = vector.load %arg7[%c0_378, %c0_379] : memref<30x128xf32, #tpu.memory_space<vmem>>, vector<30x128xf32>
    tpu.vector_store %arg7[%c0_378, %c0_379], %837 {strides = array<i32>} : memref<30x128xf32, #tpu.memory_space<vmem>>, vector<30x128xf32>,
    return
  }
  func.func @transform_0(%arg0: i32, %arg1: memref<10xi32, #tpu.memory_space<smem>>) -> (i32, i32) {
    %c0_i32 = arith.constant 0 : i32
    %c0_i32_0 = arith.constant 0 : i32
    %c0_i32_1 = arith.constant 0 : i32
    return %c0_i32, %c0_i32_0 : i32, i32
  }
  func.func @transform_1(%arg0: i32, %arg1: memref<10xi32, #tpu.memory_space<smem>>) -> (i32, i32) {
    %c0_i32 = arith.constant 0 : i32
    %c0_i32_0 = arith.constant 0 : i32
    %c0_i32_1 = arith.constant 0 : i32
    return %c0_i32, %c0_i32_0 : i32, i32
  }
  func.func @transform_2(%arg0: i32, %arg1: memref<10xi32, #tpu.memory_space<smem>>) -> (i32, i32) {
    %c0_i32 = arith.constant 0 : i32
    %c0_i32_0 = arith.constant 0 : i32
    %c0_i32_1 = arith.constant 0 : i32
    return %c0_i32, %c0_i32_0 : i32, i32
  }
  func.func @transform_3(%arg0: i32, %arg1: memref<10xi32, #tpu.memory_space<smem>>) -> (i32, i32) {
    %c0_i32 = arith.constant 0 : i32
    %c0_i32_0 = arith.constant 0 : i32
    %c0_i32_1 = arith.constant 0 : i32
    return %c0_i32, %c0_i32_0 : i32, i32
  }
  func.func @transform_4(%arg0: i32, %arg1: memref<10xi32, #tpu.memory_space<smem>>) -> (i32, i32) {
    %c0_i32 = arith.constant 0 : i32
    %c0_i32_0 = arith.constant 0 : i32
    %c0_i32_1 = arith.constant 0 : i32
    return %c0_i32, %c0_i32_0 : i32, i32
  }
  func.func @transform_5(%arg0: i32, %arg1: memref<10xi32, #tpu.memory_space<smem>>) -> (i32, i32) {
    %c0_i32 = arith.constant 0 : i32
    %c0_i32_0 = arith.constant 0 : i32
    %c0_i32_1 = arith.constant 0 : i32
    return %c0_i32, %c0_i32_0 : i32, i32
  }
}

</mosaic_0001>

<bundles_post_ra>
// kernel: tpu_custom_call.1
= control target key start
LH: loop header
LB: loop body
LE: loop exit
PB: predicated region body
PF: predicated region fallthrough
CT: control target
= control target key end

     0   :  { %s8640_s0 = inlined_call_operand.vmem [shape: s32[10], index: 0, kind: input, shape index: {}]   ;;  %s8641_s1 = inlined_call_operand.vmem [shape: f32[40,32], index: 1, kind: input, shape index: {}]   ;;  %s8642_s2 = inlined_call_operand.vmem [shape: f32[10,32], index: 2, kind: input, shape index: {}]   ;;  %s8643_s3 = inlined_call_operand.hbm [shape: f32[32,896], index: 3, kind: input, shape index: {}]   ;;  %s8644_s4 = inlined_call_operand.vmem [shape: f32[1,640], index: 4, kind: input, shape index: {}]   ;;  %s8645_s5 = inlined_call_operand.vmem [shape: f32[1,32], index: 5, kind: input, shape index: {}]   ;;  %s8646_s6 = inlined_call_operand.hbm [shape: f32[30,128], index: 6, kind: output, shape index: {}]  }
   0x1   :  { %s11_s23 = sshll.u32 %s8640_s0, 4  ;;  %s12_s23 = int_to_ptr.vmem [resolvable:$true] %s11_s23 }
   0x2   :  { %s7473_s24 = scalar_lea.vmem %s12_s23, 16  ;;  %p7478_p1 = scmp.lt.s32.totalorder %s12_s23, %s12_s23 }
   0x3   :  { %p7474_p0 = scmp.ne.s32.totalorder %s12_s23, %s7473_s24  ;;  %p7479_p2 = scmp.lt.s32.totalorder %s7473_s24, %s7473_s24 }
   0x5   :  { %p7480_p3 = por %p7479_p2, %p7478_p1 }
   0x7   :  { %p7481_p4 = pnand %p7480_p3, %p7474_p0 }
   0x9   :  { %7484 = shalt.err (!%p7481_p4)  }
   0xa   :  { %s7535_s25 = smov [#allocation3]  }
   0xb   :  { %14 = dma.vmem_to_smem %s12_s23, 16, %s7535_s25, [#allocation2] }
   0xc   :  { %7529 = dma.done.wait [#allocation2], 16 }
   0xd   :  { %7530 = vsyncadd [#allocation2], 4294967280 }
   0xe   :  { %16 = sfence }
   0xf   :  { %17 = vsyncpa [#allocation5], 0 }
  0x10   :  { %18 = vsyncpa [#allocation6], 0  ;;  %s7536_s26 = smov [#allocation4]   ;;  %s7485_s29 = scalar_lea.hbm %s8643_s3, 3584 }
  0x11   :  { %s28_s27 = sshll.u32 %s7536_s26, 4  ;;  %p7486_p5 = scmp.ne.s32.totalorder %s8643_s3, %s7485_s29  ;;  %s29_s27 = int_to_ptr.vmem [resolvable:$true] %s28_s27 }
  0x12   :  { %p7489_p6 = scmp.lt.u32.totalorder %s7485_s29, %s8643_s3 }
  0x14   :  { %p7491_p7 = pnand %p7489_p6, %p7486_p5 }
  0x16   :  { %7494 = shalt.err (!%p7491_p7)
}
  0x17   :  { %s7495_s10 = scalar_lea.vmem %s29_s27, 3584  ;;  %p7500_p9 = scmp.lt.s32.totalorder %s29_s27, %s29_s27 }
  0x18   :  { %p7496_p8 = scmp.ne.s32.totalorder %s29_s27, %s7495_s10  ;;  %p7501_p10 = scmp.lt.s32.totalorder %s7495_s10, %s7495_s10 }
  0x1a   :  { %p7502_p11 = por %p7501_p10, %p7500_p9 }
  0x1c   :  { %p7503_p12 = pnand %p7502_p11, %p7496_p8 }
  0x1e   :  { %7506 = shalt.err (!%p7503_p12)
}
  0x1f   :  { %s7537_s11 = smov 896   ;;  %s7538_s12 = smov 56  }
  0x20   :  { %34 = dma.hbm_to_vmem [thread:$0]  %s8643_s3, 3584, %s29_s27, [#allocation5], %s7537_s11, %s7537_s11, %s7538_s12  }
  0x21   :  { %7531 = dma.done.wait [#allocation5], 3584  }
  0x22   :  { %7532 = vsyncadd [#allocation5], 4294963712  ;;  %v8647_v0 = vmov 0.0|0.0   ;;  %vm7540_vm0 = vmmov 0   ;;  %v7541_v1 = vmov 0.0   ;;  %s45_s15 = sld [smem:[#allocation3]]  ;;  %v43_v2 = vlaneseq }
  0x23   :  { %6874 = vmatprep.subr.bf16.mxu0 %v8647_v0  ;;  %6354 = vmatprep.mubr.msk.f32.mxu0 %vm7540_vm0, %v7541_v1  ;;  %v50_v3 = vld [vmem:[%s8641_s1] sm:$0xff]  ;;  %v51_v4 = vld [vmem:[%s8641_s1 + $0x8] sm:$0xff]  ;;  %v52_v5 = vld [vmem:[%s8641_s1 + $0x10] sm:$0xff]  ;;  %vm55_vm2 = vcmask 326656   ;;  %vm137_vm3 = vcmask 261120   ;;  %vm297_vm4 = vcmask 73728  }
  0x24   :  { %205 = vmatprep.mubr.f32.mxu1 %v7541_v1  ;;  %v7612_v6 = vpack.c.bf16 %v51_v4, %v50_v3  ;;  %v53_v7 = vld [vmem:[%s8641_s1 + $0x18] sm:$0xff]  ;;  %v130_v8 = vld [vmem:[#allocation4 + $0x8] sm:$0xff]  ;;  %v7618_v9 = vand.u32 127, %v43_v2  ;;  %v132_v10 = vld [vmem:[#allocation4 + $0x40] sm:$0xff]  ;;  %vm315_vm5 = vcmask 1041408   ;;  %vm7543_vm6 = vmmov 1  }
  0x25   :  { %v129_v11 = vld [vmem:[#allocation4] sm:$0xff]  ;;  %v131_v12 = vld [vmem:[#allocation4 + $0x38] sm:$0xff]  ;;  %v7621_v13 = vpack.c.bf16 %v53_v7, %v52_v5  ;;  %v7623_v15 = vpack.c.bf16 %v132_v10, %v130_v8  ;;  %v136_v18 = vld [vmem:[#allocation4 + $0xb0] sm:$0xff]  ;;  %vm311_vm8 = vcmask 80896   ;;  %s6005_s13 = sld [smem:[#allocation3 + $0x1]]  ;;  %s7544_s14 = smov 32  }
  0x26   :  { %6876 = vmatpush3.bf16.msra.mxu0 %v7612_v6  ;;  %v7625_v16 = vpack.c.bf16 %v131_v12, %v129_v11  ;;  %v134_v17 = vld [vmem:[#allocation4 + $0x78] sm:$0xff]  ;;  %v133_v19 = vld [vmem:[#allocation4 + $0x70] sm:$0xff]  ;;  %v135_v21 = vld [vmem:[#allocation4 + $0xa8] sm:$0xff]  ;;  %s6016_s16 = sld [smem:[#allocation3 + $0x2]]  ;;  %s6027_s17 = sld [smem:[#allocation3 + $0x3]] }
  0x27   :  { %6877 = vmatprep.subr.bf16.mxu0 %v8647_v0  ;;  %v7628_v20 = vpack.c.bf16 %v136_v18, %v134_v17  ;;  %6881 = vmatprep.subr.bf16.mxu1 %v7623_v15  ;;  %v7633_v22 = vpack.c.bf16 %v135_v21, %v133_v19  ;;  %v7641_v23 = vld [vmem:[%s8641_s1 + $0x20] sm:$0xff]  ;;  %v213_v25 = vld [vmem:[#allocation4 + $0x18] sm:$0xff]  ;;  %v215_v26 = vld [vmem:[#allocation4 + $0x50] sm:$0xff]  ;;  %s6038_s18 = sld [smem:[#allocation3 + $0x4]]  ;;  %s6060_s28 = sld [smem:[#allocation3 + $0x6]] }
  0x28   :  { %v46_v14 = vstv %s45_s15  ;;  %6883 = vmatpush1.bf16.msra.mxu1 %v7625_v16  ;;  %v7650_v27 = vpack.c.bf16 %v215_v26, %v213_v25  ;;  %v212_v28 = vld [vmem:[#allocation4 + $0x10] sm:$0xff]  ;;  %v214_v29 = vld [vmem:[#allocation4 + $0x48] sm:$0xff]  ;;  %v219_v31 = vld [vmem:[#allocation4 + $0xc0] sm:$0xff]  ;;  %s7545_s15 = smov 96   ;;  %s6071_s0 = sld [smem:[#allocation3 + $0x7]] }
  0x29   :  { %vm47_vm1 = vcmp.eq.s32.totalorder %v7618_v9, %v46_v14  ;;  %6885 = vmatprep.subr.bf16.mxu1 %v7628_v20  ;;  %v217_v30 = vld [vmem:[#allocation4 + $0x88] sm:$0xff]  ;;  %v7653_v32 = vpack.c.bf16 %v214_v29, %v212_v28  ;;  %v216_v34 = vld [vmem:[#allocation4 + $0x80] sm:$0xff]  ;;  %v218_v35 = vld [vmem:[#allocation4 + $0xb8] sm:$0xff]  ;;  %s6082_s29 = sld [smem:[#allocation3 + $0x8]]  ;;  %s6093_s30 = sld [smem:[#allocation3 + $0x9]] }
  0x2a   :  { %6879 = vmatpush3.bf16.msra.mxu0 %v7621_v13  ;;  %v5995_v24 = vsel %vm47_vm1, 1.0, %v7541_v1  ;;  %v7655_v33 = vpack.c.bf16 %v219_v31, %v217_v30  ;;  %v7659_v38 = vpack.c.bf16 %v218_v35, %v216_v34  ;;  %v7667_v39 = vld [vmem:[%s8645_s5] sm:$0x1]  ;;  %v7677_v42 = vld [vmem:[%s8644_s4 + $0x3] sm:$0x1]  ;;  %s7542_s5 = smov 64   ;;  %vm7701_vm7 = vmpackc.low %vm315_vm5, %vm7543_vm6 }
  0x2b   :  { %6352 = vmatprep.subr.mxu0 %v7541_v1  ;;  %v7682_v44 = vld [vmem:[%s8644_s4] sm:$0x1]  ;;  %v310_v56 = vld [vmem:[%s8642_s2 + $0x8] sm:$0x3]  ;;  %v390_v60 = vld [vmem:[#allocation4 + $0x58] sm:$0xff] }
  0x2c   :  { %6887 = vmatpush1.bf16.msra.mxu1 %v7633_v22  ;;  %v309_v55 = vld [vmem:[%s8642_s2] sm:$0xff]  ;;  %v391_v61 = vld [vmem:[#allocation4 + $0x90] sm:$0xff]  ;;  %v392_v63 = vld [vmem:[#allocation4 + $0xc8] sm:$0xff] }
  0x2d   :  { %6889 = vmatprep.subr.bf16.mxu1 %v7650_v27  ;;  %v7698_v57 = vpack.c.bf16 %v310_v56, %v309_v55  ;;  %v389_v59 = vld [vmem:[#allocation4 + $0x20] sm:$0xff]  ;;  %v7712_v3 = vpack.c.bf16 %v392_v63, %v391_v61  ;;  %v470_v11 = vld [vmem:[#allocation4 + $0x28] sm:$0xff]  ;;  %v472_v17 = vld [vmem:[#allocation4 + $0x98] sm:$0xff] }
  0x2e   :  { %6353 = vmatpush3.msra.mxu0 %v7641_v23  ;;  %v7709_v62 = vpack.c.bf16 %v390_v60, %v389_v59  ;;  %v471_v12 = vld [vmem:[#allocation4 + $0x60] sm:$0xff]  ;;  %v473_v18 = vld [vmem:[#allocation4 + $0xd0] sm:$0xff]  ;;  %v586_v56 = vld [vmem:[#allocation4 + $0xd8] sm:$0xff] }
  0x2f   :  { %6355 = vmatmul.mubr.msk.f32.vlgmr.msra.gmra.mrb[0].mxu0 %vm55_vm2, %v5995_v24  ;;  %6900 = vmatprep.subr.bf16.mxu0 %v8647_v0  ;;  %v7726_v14 = vpack.c.bf16 %v471_v12, %v470_v11  ;;  %v7730_v19 = vpack.c.bf16 %v473_v18, %v472_v17  ;;  %v7737_v24 = vld [vmem:[%s8644_s4 + $0x1] sm:$0x1]  ;;  %v7752_v30 = vld [vmem:[%s8644_s4 + $0x2] sm:$0x1] }
  0x30   :  { %6372 = vmatprep.mubr.msk.f32.mxu0 %vm7540_vm0, %v7541_v1  ;;  %6902 = vmatpush3.bf16.msra.mxu0 %v7709_v62 }
  0x31   :  { %6903 = vmatprep.subr.bf16.mxu0 %v8647_v0 }
  0x34   :  { %6905 = vmatpush3.bf16.msra.mxu0 %v7712_v3 }
  0x35   :  { %6912 = vmatprep.subr.bf16.mxu0 %v8647_v0 }
 0x102   :  { %v125_v36 = vpop.f32.mrb[0].mxu0 }
 0x103   :  { %v6356_v37 = vpop.f32.mrb[1].mxu0  ;;  %5997 = vmatmul.mubr.msk.f32.vlgmr.msra.gmra.mrb[0].mxu1 %vm137_vm3, %v125_v36 }
 0x104   :  { %6891 = vmatpush1.bf16.msra.mxu1 %v7653_v32  ;;  %287 = vmatprep.mubr.f32.mxu1 %v7541_v1 }
 0x105   :  { %6893 = vmatprep.subr.bf16.mxu1 %v7655_v33 }
 0x108   :  { %6895 = vmatpush1.bf16.msra.mxu1 %v7659_v38 }
 0x109   :  { %6896 = vmatprep.subr.bf16.mxu1 %v8647_v0 }
 0x10b   :  { %5998 = vmatmul.mubr.msk.f32.vlgmr.msra.gmra.mrb[2].mxu1 %vm137_vm3, %v7667_v39 }
 0x10c   :  { %6361 = vmatprep.mubr.msk.f32.mxu1 %vm7540_vm0, %v7541_v1  ;;  %6899 = vmatpush3.bf16.msk.msra.mxu1 %vm7701_vm7, %v7698_v57 }
 0x10d   :  { %6906 = vmatprep.subr.bf16.mxu1 %v8647_v0 }
 0x1d6   :  { %v207_v40 = vpop.f32.mrb[0].mxu1 }
 0x1d7   :  { %v209_v41 = vpop.f32.mrb[1].mxu1 }
 0x1de   :  { %v289_v43 = vpop.f32.mrb[2].mxu1 }
 0x1df   :  { %v294_v45 = vadd.f32 %v289_v43, %v207_v40  ;;  %v291_v46 = vpop.f32.mrb[3].mxu1  ;;  %v575_v43 = vshrl.u32 %v43_v2, 7 }
 0x1e0   :  { %v7685_v47 = vadd.f32 %v7677_v42, %v291_v46 }
 0x1e1   :  { %v296_v48 = vadd.f32 %v7682_v44, %v294_v45  ;;  %v576_v45 = vsub.s32 0, %v575_v43 }
 0x1e2   :  { %558 = vrot.lane.b32.xlu1 %v7685_v47, %s7542_s5 }
 0x1e3   :  { %v298_v49 = vsel %vm297_vm4, %v296_v48, -inf }
 0x1e4   :  { %299 = vmax.xlane.f32.xlu0 %v298_v49 }
 0x271   :  { %v300_v50 = vpop.xlane.xlu0 %299 }
 0x272   :  { %v301_v51 = vsub.f32 %v296_v48, %v300_v50  ;;  %v559_v48 = vpop.permute.xlu1 %558  ;;  %v577_v50 = vrot.slane %v7667_v39, %v576_v45 }
 0x274   :  { %v302_v52 = vmul.f32 1.442695, %v301_v51  ;;  %v681_v51 = vstv %s6005_s13 }
 0x275   :  { %vm682_vm9 = vcmp.eq.s32.totalorder %v7618_v9, %v681_v51 }
 0x276   :  { %7328 = vpow2.f32 %v302_v52  ;;  %v583_v52 = vld [vmem:[#allocation4 + $0x30] sm:$0xff] }
 0x280   :  { %v7329_v53 = vpop.eup %7328 }
 0x281   :  { %v304_v54 = vsel %vm297_vm4, %v7329_v53, 0.0 }
 0x282   :  { %305 = vadd.xlane.f32.xlu0 %v304_v54  ;;  %v585_v54 = vld [vmem:[#allocation4 + $0xa0] sm:$0xff] }
 0x283   :  { %v7770_v59 = vpack.c.bf16 %v586_v56, %v585_v54 }
 0x30f   :  { %v306_v4 = vpop.xlane.xlu0 %305 }
 0x310   :  { %7330 = vrcp.f32 %v306_v4 }
 0x31a   :  { %v7331_v5 = vpop.eup %7330 }
 0x31b   :  { %v7717_v7 = vmul.f32 %v7331_v5, %v7329_v53  ;;  %v584_v53 = vld [vmem:[#allocation4 + $0x68] sm:$0xff] }
 0x31c   :  { %v7767_v55 = vpack.c.bf16 %v584_v53, %v583_v52 }
 0x31d   :  { %6362 = vmatmul.mubr.msk.f32.vlgmr.msra.gmra.mrb[4].mxu1 %vm311_vm8, %v7717_v7 }
 0x31e   :  { %6383 = vmatprep.mubr.msk.f32.mxu1 %vm7540_vm0, %v7541_v1  ;;  %6908 = vmatpush3.bf16.msra.mxu1 %v7726_v14 }
 0x31f   :  { %6909 = vmatprep.subr.bf16.mxu1 %v8647_v0 }
 0x322   :  { %6911 = vmatpush3.bf16.msra.mxu1 %v7730_v19 }
 0x323   :  { %6918 = vmatprep.subr.bf16.mxu1 %v8647_v0 }
 0x3f0   :  { %v385_v8 = vpop.f32.mrb[4].mxu1 }
 0x3f1   :  { %v6363_v10 = vpop.f32.mrb[5].mxu1  ;;  %6373 = vmatmul.mubr.msk.f32.vlgmr.msra.gmra.mrb[2].mxu0 %vm137_vm3, %v385_v8 }
 0x3f2   :  { %6394 = vmatprep.mubr.msk.f32.mxu0 %vm7540_vm0, %v7541_v1  ;;  %6914 = vmatpush3.bf16.msra.mxu0 %v7767_v55 }
 0x3f3   :  { %6915 = vmatprep.subr.bf16.mxu0 %v8647_v0 }
 0x3f6   :  { %6917 = vmatpush3.bf16.msra.mxu0 %v7770_v59 }
 0x3f7   :  { %6925 = vmatprep.subr.bf16.mxu0 %v7623_v15 }
 0x4c4   :  { %v462_v21 = vpop.f32.mrb[2].mxu0 }
 0x4c5   :  { %v466_v25 = vadd.f32 %v462_v21, %v209_v41  ;;  %v6374_v26 = vpop.f32.mrb[3].mxu0 }
 0x4c7   :  { %v468_v28 = vadd.f32 %v7737_v24, %v466_v25 }
 0x4c9   :  { %v469_v29 = vmax.f32 %v468_v28, 0.0 }
 0x4cb   :  { %6384 = vmatmul.mubr.msk.f32.vlgmr.msra.gmra.mrb[6].mxu1 %vm137_vm3, %v469_v29 }
 0x4cc   :  { %6920 = vmatpush3.bf16.msra.mxu1 %v7612_v6  ;;  %6407 = vmatprep.mubr.msk.f32.mxu1 %vm7540_vm0, %v7541_v1 }
 0x4cd   :  { %6921 = vmatprep.subr.bf16.mxu1 %v8647_v0 }
 0x4d0   :  { %6923 = vmatpush3.bf16.msra.mxu1 %v7621_v13 }
 0x4d1   :  { %6405 = vmatprep.subr.mxu1 %v7541_v1 }
 0x4d4   :  { %6406 = vmatpush3.msra.mxu1 %v7641_v23 }
 0x4d5   :  { %6933 = vmatprep.subr.bf16.mxu1 %v7650_v27 }
 0x59e   :  { %v544_v31 = vpop.f32.mrb[6].mxu1 }
 0x59f   :  { %v545_v34 = vadd.f32 %v544_v31, %v7752_v30  ;;  %v6385_v35 = vpop.f32.mrb[7].mxu1 }
 0x5a1   :  { %v550_v36 = vadd.f32 %v7685_v47, %v545_v34  ;;  %v6006_v47 = vsel %vm682_vm9, 1.0, %v7541_v1  ;;  %vm5911_vm9 = vcmask 1043456  }
 0x5a2   :  { %6408 = vmatmul.mubr.msk.f32.vlgmr.msra.gmra.mrb[8].mxu1 %vm55_vm2, %v6006_v47 }
 0x5a3   :  { %v6003_v37 = vmul.f32 -1.442695, %v550_v36  ;;  %6935 = vmatpush1.bf16.msra.mxu1 %v7653_v32  ;;  %896 = vmatprep.mubr.f32.mxu1 %v7541_v1 }
 0x5a4   :  { %6937 = vmatprep.subr.bf16.mxu1 %v7655_v33 }
 0x5a5   :  { %7332 = vpow2.f32 %v6003_v37 }
 0x5a7   :  { %6939 = vmatpush1.bf16.msra.mxu1 %v7659_v38 }
 0x5a8   :  { %6950 = vmatprep.subr.bf16.mxu1 %v8647_v0 }
 0x5af   :  { %v7333_v40 = vpop.eup %7332 }
 0x5b0   :  { %v554_v41 = vadd.f32 1.0, %v7333_v40 }
 0x5b2   :  { %7334 = vrcp.f32 %v554_v41 }
 0x5bc   :  { %v7335_v46 = vpop.eup %7334 }
 0x5bd   :  { %v561_v49 = vmul.f32 %v7335_v46, %v559_v48  ;;  %v568_v5 = vsub.f32 1.0, %v7335_v46 }
 0x5bf   :  { %563 = vrot.lane.b32.xlu1 %v561_v49, %s7542_s5 }
 0x5c3   :  { %578 = vrot.lane.b32.xlu1 %v577_v50, %s7544_s14 }
 0x631   :  { %v564_v2 = vpop.permute.xlu1 %563 }
 0x632   :  { %v566_v39 = vadd.f32 %v564_v2, %v545_v34 }
 0x634   :  { %7336 = vtanh.f32 %v566_v39 }
 0x635   :  { %v579_v63 = vpop.permute.xlu1 %578 }
 0x636   :  { %v581_v10 = vmul.f32 %v7335_v46, %v579_v63 }
 0x63e   :  { %v7337_v60 = vpop.eup %7336 }
 0x63f   :  { %570 = vrot.lane.b32.xlu0 %v7337_v60, %s7545_s15 }
 0x675   :  { %v754_v61 = vpop.f32.mrb[8].mxu1 }
 0x676   :  { %v6409_v4 = vpop.f32.mrb[9].mxu1 }
 0x6b1   :  { %v571_v8 = vpop.permute.xlu0 %570 }
 0x6b2   :  { %v573_v11 = vmul.f32 %v571_v8, %v568_v5 }
 0x6b4   :  { %v7776_v12 = vadd.f32 %v581_v10, %v573_v11 }
 0x6b6   :  { %589 = vrot.lane.b32.xlu1 %v7776_v12, %s7545_s15 }
 0x728   :  { %v7780_v17 = vpop.permute.xlu1 %589 }
 0x729   :  { %6395 = vmatmul.mubr.msk.f32.vlgmr.msra.gmra.mrb[4].mxu0 %vm137_vm3, %v7780_v17  ;;  %6009 = vmatmul.mubr.msk.f32.vlgmr.msra.gmra.mrb[10].mxu1 %vm137_vm3, %v7780_v17 }
 0x72a   :  { %6927 = vmatpush1.bf16.msra.mxu0 %v7625_v16  ;;  %825 = vmatprep.mubr.f32.mxu0 %v7541_v1 }
 0x72b   :  { %6929 = vmatprep.subr.bf16.mxu0 %v7628_v20  ;;  %6952 = vmatpush3.bf16.msra.mxu1 %v7726_v14 }
 0x72c   :  { %6953 = vmatprep.subr.bf16.mxu1 %v8647_v0  ;;  %6436 = vmatprep.mubr.msk.f32.mxu1 %vm7540_vm0, %v7541_v1 }
 0x72e   :  { %6931 = vmatpush1.bf16.msra.mxu0 %v7633_v22 }
 0x72f   :  { %6940 = vmatprep.subr.bf16.mxu0 %v8647_v0  ;;  %6955 = vmatpush3.bf16.msra.mxu1 %v7730_v19 }
 0x730   :  { %6962 = vmatprep.subr.bf16.mxu1 %v8647_v0 }
 0x731   :  { %6008 = vmatmul.mubr.msk.f32.vlgmr.msra.gmra.mrb[6].mxu0 %vm137_vm3, %v754_v61 }
 0x732   :  { %6943 = vmatpush3.bf16.msk.msra.mxu0 %vm7701_vm7, %v7698_v57  ;;  %6414 = vmatprep.mubr.msk.f32.mxu0 %vm7540_vm0, %v7541_v1 }
 0x733   :  { %6944 = vmatprep.subr.bf16.mxu0 %v8647_v0 }
 0x7fc   :  { %v7804_v18 = vpop.f32.mrb[4].mxu0  ;;  %v898_v21 = vpop.f32.mrb[10].mxu1 }
 0x7fd   :  { %v6396_v25 = vpop.f32.mrb[5].mxu0  ;;  %v900_v26 = vpop.f32.mrb[11].mxu1 }
 0x7fe   :  { %v1138_v36 = vadd.f32 %v900_v26, %v7677_v42 }
 0x804   :  { %v827_v28 = vpop.f32.mrb[6].mxu0 }
 0x805   :  { %v903_v29 = vadd.f32 %v898_v21, %v827_v28  ;;  %v829_v31 = vpop.f32.mrb[7].mxu0  ;;  %v1257_v21 = vstv %s6016_s16 }
 0x806   :  { %vm1258_vm10 = vcmp.eq.s32.totalorder %v7618_v9, %v1257_v21 }
 0x807   :  { %v904_v34 = vadd.f32 %v903_v29, %v7682_v44  ;;  %v6017_v25 = vsel %vm1258_vm10, 1.0, %v7541_v1  ;;  %vm5913_vm10 = vcmask 1044480  }
 0x809   :  { %v905_v35 = vsel %vm297_vm4, %v904_v34, -inf }
 0x80a   :  { %906 = vmax.xlane.f32.xlu1 %v905_v35 }
 0x81b   :  { %1147 = vrot.lane.b32.xlu1 %v1138_v36, %s7542_s5 }
 0x897   :  { %v907_v37 = vpop.xlane.xlu1 %906 }
 0x898   :  { %v908_v40 = vsub.f32 %v904_v34, %v907_v37 }
 0x89a   :  { %v909_v41 = vmul.f32 1.442695, %v908_v40 }
 0x89b   :  { %v1148_v10 = vpop.permute.xlu1 %1147 }
 0x89c   :  { %7338 = vpow2.f32 %v909_v41 }
 0x8a6   :  { %v7339_v43 = vpop.eup %7338 }
 0x8a7   :  { %v911_v45 = vsel %vm297_vm4, %v7339_v43, 0.0 }
 0x8a8   :  { %912 = vadd.xlane.f32.xlu0 %v911_v45 }
 0x935   :  { %v913_v46 = vpop.xlane.xlu0 %912 }
 0x936   :  { %7340 = vrcp.f32 %v913_v46 }
 0x940   :  { %v7341_v48 = vpop.eup %7340 }
 0x941   :  { %v7811_v49 = vmul.f32 %v7341_v48, %v7339_v43 }
 0x943   :  { %6415 = vmatmul.mubr.msk.f32.vlgmr.msra.gmra.mrb[8].mxu0 %vm311_vm8, %v7811_v49 }
 0x944   :  { %6946 = vmatpush3.bf16.msra.mxu0 %v7709_v62  ;;  %6425 = vmatprep.mubr.msk.f32.mxu0 %vm7540_vm0, %v7541_v1 }
 0x945   :  { %6947 = vmatprep.subr.bf16.mxu0 %v8647_v0 }
 0x948   :  { %6949 = vmatpush3.bf16.msra.mxu0 %v7712_v3 }
 0x949   :  { %6956 = vmatprep.subr.bf16.mxu0 %v8647_v0 }
 0xa16   :  { %v985_v50 = vpop.f32.mrb[8].mxu0 }
 0xa17   :  { %v6416_v51 = vpop.f32.mrb[9].mxu0  ;;  %6426 = vmatmul.mubr.msk.f32.vlgmr.msra.gmra.mrb[10].mxu0 %vm137_vm3, %v985_v50 }
 0xa18   :  { %6958 = vmatpush3.bf16.msra.mxu0 %v7767_v55  ;;  %6447 = vmatprep.mubr.msk.f32.mxu0 %vm7540_vm0, %v7541_v1 }
 0xa19   :  { %6959 = vmatprep.subr.bf16.mxu0 %v8647_v0 }
 0xa1c   :  { %6961 = vmatpush3.bf16.msra.mxu0 %v7770_v59 }
 0xa1d   :  { %6969 = vmatprep.subr.bf16.mxu0 %v7623_v15 }
 0xaea   :  { %v1058_v47 = vpop.f32.mrb[10].mxu0 }
 0xaeb   :  { %v1062_v2 = vadd.f32 %v1058_v47, %v829_v31  ;;  %v6427_v39 = vpop.f32.mrb[11].mxu0 }
 0xaed   :  { %v1063_v52 = vadd.f32 %v1062_v2, %v7737_v24 }
 0xaef   :  { %v1064_v53 = vmax.f32 %v1063_v52, 0.0 }
 0xaf1   :  { %6437 = vmatmul.mubr.msk.f32.vlgmr.msra.gmra.mrb[12].mxu1 %vm137_vm3, %v1064_v53 }
 0xaf2   :  { %6964 = vmatpush3.bf16.msra.mxu1 %v7612_v6  ;;  %6460 = vmatprep.mubr.msk.f32.mxu1 %vm7540_vm0, %v7541_v1 }
 0xaf3   :  { %6965 = vmatprep.subr.bf16.mxu1 %v8647_v0 }
 0xaf6   :  { %6967 = vmatpush3.bf16.msra.mxu1 %v7621_v13 }
 0xaf7   :  { %6458 = vmatprep.subr.mxu1 %v7541_v1 }
 0xafa   :  { %6459 = vmatpush3.msra.mxu1 %v7641_v23 }
 0xafb   :  { %6977 = vmatprep.subr.bf16.mxu1 %v7650_v27  ;;  %6461 = vmatmul.mubr.msk.f32.vlgmr.msra.gmra.mrb[14].mxu1 %vm55_vm2, %v6017_v25 }
 0xafc   :  { %6979 = vmatpush1.bf16.msra.mxu1 %v7653_v32  ;;  %1472 = vmatprep.mubr.f32.mxu1 %v7541_v1 }
 0xafd   :  { %6981 = vmatprep.subr.bf16.mxu1 %v7655_v33 }
 0xb00   :  { %6983 = vmatpush1.bf16.msra.mxu1 %v7659_v38 }
 0xb01   :  { %6988 = vmatprep.subr.bf16.mxu1 %v8647_v0 }
 0xbc4   :  { %v1134_v54 = vpop.f32.mrb[12].mxu1 }
 0xbc5   :  { %v1135_v56 = vadd.f32 %v1134_v54, %v7752_v30  ;;  %v6438_v60 = vpop.f32.mrb[13].mxu1 }
 0xbc7   :  { %v1139_v61 = vadd.f32 %v1138_v36, %v1135_v56 }
 0xbc9   :  { %v6014_v63 = vmul.f32 -1.442695, %v1139_v61 }
 0xbcb   :  { %7342 = vpow2.f32 %v6014_v63 }
 0xbce   :  { %v1330_v31 = vpop.f32.mrb[14].mxu1 }
 0xbcf   :  { %v6462_v34 = vpop.f32.mrb[15].mxu1 }
 0xbd5   :  { %v7343_v4 = vpop.eup %7342 }
 0xbd6   :  { %v1143_v5 = vadd.f32 1.0, %v7343_v4 }
 0xbd8   :  { %7344 = vrcp.f32 %v1143_v5 }
 0xbe2   :  { %v7345_v8 = vpop.eup %7344 }
 0xbe3   :  { %v1150_v11 = vmul.f32 %v7345_v8, %v1148_v10  ;;  %v1157_v35 = vsub.f32 1.0, %v7345_v8  ;;  %v1163_v37 = vmul.f32 %v7345_v8, %v7776_v12 }
 0xbe5   :  { %1152 = vrot.lane.b32.xlu0 %v1150_v11, %s7542_s5 }
 0xc57   :  { %v1153_v26 = vpop.permute.xlu0 %1152 }
 0xc58   :  { %v1155_v28 = vadd.f32 %v1153_v26, %v1135_v56 }
 0xc5a   :  { %7346 = vtanh.f32 %v1155_v28 }
 0xc64   :  { %v7347_v29 = vpop.eup %7346 }
 0xc65   :  { %1159 = vrot.lane.b32.xlu1 %v7347_v29, %s7545_s15 }
 0xcd7   :  { %v1160_v36 = vpop.permute.xlu1 %1159 }
 0xcd8   :  { %v1162_v40 = vmul.f32 %v1160_v36, %v1157_v35 }
 0xcda   :  { %v7850_v41 = vadd.f32 %v1163_v37, %v1162_v40 }
 0xcdc   :  { %1166 = vrot.lane.b32.xlu1 %v7850_v41, %s7545_s15 }
 0xd4e   :  { %v7854_v43 = vpop.permute.xlu1 %1166 }
 0xd4f   :  { %6448 = vmatmul.mubr.msk.f32.vlgmr.msra.gmra.mrb[12].mxu0 %vm137_vm3, %v7854_v43  ;;  %6020 = vmatmul.mubr.msk.f32.vlgmr.msra.gmra.mrb[16].mxu1 %vm137_vm3, %v7854_v43 }
 0xd50   :  { %6971 = vmatpush1.bf16.msra.mxu0 %v7625_v16  ;;  %1401 = vmatprep.mubr.f32.mxu0 %v7541_v1 }
 0xd51   :  { %6973 = vmatprep.subr.bf16.mxu0 %v7628_v20  ;;  %6990 = vmatpush3.bf16.msra.mxu1 %v7709_v62 }
 0xd52   :  { %6991 = vmatprep.subr.bf16.mxu1 %v8647_v0  ;;  %6478 = vmatprep.mubr.msk.f32.mxu1 %vm7540_vm0, %v7541_v1 }
 0xd54   :  { %6975 = vmatpush1.bf16.msra.mxu0 %v7633_v22 }
 0xd55   :  { %6984 = vmatprep.subr.bf16.mxu0 %v8647_v0  ;;  %6993 = vmatpush3.bf16.msra.mxu1 %v7712_v3 }
 0xd56   :  { %7000 = vmatprep.subr.bf16.mxu1 %v8647_v0 }
 0xd57   :  { %6019 = vmatmul.mubr.msk.f32.vlgmr.msra.gmra.mrb[14].mxu0 %vm137_vm3, %v1330_v31 }
 0xd58   :  { %6987 = vmatpush3.bf16.msk.msra.mxu0 %vm7701_vm7, %v7698_v57  ;;  %6467 = vmatprep.mubr.msk.f32.mxu0 %vm7540_vm0, %v7541_v1 }
 0xd59   :  { %6994 = vmatprep.subr.bf16.mxu0 %v8647_v0 }
 0xe22   :  { %v7878_v12 = vpop.f32.mrb[12].mxu0  ;;  %v1474_v45 = vpop.f32.mrb[16].mxu1 }
 0xe23   :  { %v6449_v46 = vpop.f32.mrb[13].mxu0  ;;  %v1476_v48 = vpop.f32.mrb[17].mxu1 }
 0xe24   :  { %v1714_v52 = vadd.f32 %v1476_v48, %v7677_v42 }
 0xe2a   :  { %v1403_v50 = vpop.f32.mrb[14].mxu0 }
 0xe2b   :  { %v1479_v51 = vadd.f32 %v1474_v45, %v1403_v50  ;;  %v1405_v47 = vpop.f32.mrb[15].mxu0  ;;  %v1833_v50 = vstv %s6027_s17 }
 0xe2c   :  { %vm1834_vm11 = vcmp.eq.s32.totalorder %v7618_v9, %v1833_v50 }
 0xe2d   :  { %v1480_v2 = vadd.f32 %v1479_v51, %v7682_v44  ;;  %v6028_v51 = vsel %vm1834_vm11, 1.0, %v7541_v1  ;;  %vm5915_vm11 = vcmask 1045504  }
 0xe2f   :  { %v1481_v39 = vsel %vm297_vm4, %v1480_v2, -inf }
 0xe30   :  { %1482 = vmax.xlane.f32.xlu1 %v1481_v39 }
 0xe41   :  { %1723 = vrot.lane.b32.xlu1 %v1714_v52, %s7542_s5 }
 0xebd   :  { %v1483_v53 = vpop.xlane.xlu1 %1482 }
 0xebe   :  { %v1484_v54 = vsub.f32 %v1480_v2, %v1483_v53 }
 0xec0   :  { %v1485_v56 = vmul.f32 1.442695, %v1484_v54 }
 0xec1   :  { %v1724_v46 = vpop.permute.xlu1 %1723 }
 0xec2   :  { %7348 = vpow2.f32 %v1485_v56 }
 0xecc   :  { %v7349_v60 = vpop.eup %7348 }
 0xecd   :  { %v1487_v61 = vsel %vm297_vm4, %v7349_v60, 0.0 }
 0xece   :  { %1488 = vadd.xlane.f32.xlu0 %v1487_v61 }
 0xf5b   :  { %v1489_v63 = vpop.xlane.xlu0 %1488 }
 0xf5c   :  { %7350 = vrcp.f32 %v1489_v63 }
 0xf66   :  { %v7351_v4 = vpop.eup %7350 }
 0xf67   :  { %v7885_v5 = vmul.f32 %v7351_v4, %v7349_v60 }
 0xf69   :  { %6468 = vmatmul.mubr.msk.f32.vlgmr.msra.gmra.mrb[16].mxu0 %vm311_vm8, %v7885_v5 }
 0xf6a   :  { %6996 = vmatpush3.bf16.msra.mxu0 %v7726_v14  ;;  %6489 = vmatprep.mubr.msk.f32.mxu0 %vm7540_vm0, %v7541_v1 }
 0xf6b   :  { %6997 = vmatprep.subr.bf16.mxu0 %v8647_v0 }
 0xf6e   :  { %6999 = vmatpush3.bf16.msra.mxu0 %v7730_v19 }
 0xf6f   :  { %7006 = vmatprep.subr.bf16.mxu0 %v8647_v0 }
0x103c   :  { %v1561_v8 = vpop.f32.mrb[16].mxu0 }
0x103d   :  { %v6469_v10 = vpop.f32.mrb[17].mxu0  ;;  %6479 = vmatmul.mubr.msk.f32.vlgmr.msra.gmra.mrb[18].mxu1 %vm137_vm3, %v1561_v8 }
0x103e   :  { %7002 = vmatpush3.bf16.msra.mxu1 %v7767_v55  ;;  %6500 = vmatprep.mubr.msk.f32.mxu1 %vm7540_vm0, %v7541_v1 }
0x103f   :  { %7003 = vmatprep.subr.bf16.mxu1 %v8647_v0 }
0x1042   :  { %7005 = vmatpush3.bf16.msra.mxu1 %v7770_v59 }
0x1043   :  { %7013 = vmatprep.subr.bf16.mxu1 %v7623_v15 }
0x1110   :  { %v1634_v11 = vpop.f32.mrb[18].mxu1 }
0x1111   :  { %v1638_v21 = vadd.f32 %v1634_v11, %v1405_v47  ;;  %v6480_v25 = vpop.f32.mrb[19].mxu1 }
0x1113   :  { %v1639_v26 = vadd.f32 %v1638_v21, %v7737_v24 }
0x1115   :  { %v1640_v28 = vmax.f32 %v1639_v26, 0.0 }
0x1117   :  { %6490 = vmatmul.mubr.msk.f32.vlgmr.msra.gmra.mrb[18].mxu0 %vm137_vm3, %v1640_v28 }
0x1118   :  { %7008 = vmatpush3.bf16.msra.mxu0 %v7612_v6  ;;  %6513 = vmatprep.mubr.msk.f32.mxu0 %vm7540_vm0, %v7541_v1 }
0x1119   :  { %7009 = vmatprep.subr.bf16.mxu0 %v8647_v0 }
0x111c   :  { %7011 = vmatpush3.bf16.msra.mxu0 %v7621_v13 }
0x111d   :  { %6511 = vmatprep.subr.mxu0 %v7541_v1 }
0x1120   :  { %6512 = vmatpush3.msra.mxu0 %v7641_v23 }
0x1121   :  { %7021 = vmatprep.subr.bf16.mxu0 %v7650_v27  ;;  %6514 = vmatmul.mubr.msk.f32.vlgmr.msra.gmra.mrb[20].mxu0 %vm55_vm2, %v6028_v51 }
0x1122   :  { %7023 = vmatpush1.bf16.msra.mxu0 %v7653_v32  ;;  %2048 = vmatprep.mubr.f32.mxu0 %v7541_v1 }
0x1123   :  { %7025 = vmatprep.subr.bf16.mxu0 %v7655_v33 }
0x1126   :  { %7027 = vmatpush1.bf16.msra.mxu0 %v7659_v38 }
0x1127   :  { %7032 = vmatprep.subr.bf16.mxu0 %v8647_v0 }
0x11ea   :  { %v1710_v29 = vpop.f32.mrb[18].mxu0 }
0x11eb   :  { %v1711_v31 = vadd.f32 %v1710_v29, %v7752_v30  ;;  %v6491_v34 = vpop.f32.mrb[19].mxu0 }
0x11ed   :  { %v1715_v35 = vadd.f32 %v1714_v52, %v1711_v31 }
0x11ef   :  { %v6025_v36 = vmul.f32 -1.442695, %v1715_v35 }
0x11f1   :  { %7352 = vpow2.f32 %v6025_v36 }
0x11f4   :  { %v1906_v52 = vpop.f32.mrb[20].mxu0 }
0x11f5   :  { %v6515_v53 = vpop.f32.mrb[21].mxu0 }
0x11fb   :  { %v7353_v37 = vpop.eup %7352 }
0x11fc   :  { %v1719_v40 = vadd.f32 1.0, %v7353_v37 }
0x11fe   :  { %7354 = vrcp.f32 %v1719_v40 }
0x1208   :  { %v7355_v45 = vpop.eup %7354 }
0x1209   :  { %v1726_v48 = vmul.f32 %v7355_v45, %v1724_v46  ;;  %v1733_v54 = vsub.f32 1.0, %v7355_v45  ;;  %v1739_v60 = vmul.f32 %v7355_v45, %v7850_v41 }
0x120b   :  { %1728 = vrot.lane.b32.xlu0 %v1726_v48, %s7542_s5 }
0x127d   :  { %v1729_v47 = vpop.permute.xlu0 %1728 }
0x127e   :  { %v1731_v2 = vadd.f32 %v1729_v47, %v1711_v31 }
0x1280   :  { %7356 = vtanh.f32 %v1731_v2 }
0x128a   :  { %v7357_v39 = vpop.eup %7356 }
0x128b   :  { %1735 = vrot.lane.b32.xlu1 %v7357_v39, %s7545_s15 }
0x12fd   :  { %v1736_v56 = vpop.permute.xlu1 %1735 }
0x12fe   :  { %v1738_v61 = vmul.f32 %v1736_v56, %v1733_v54 }
0x1300   :  { %v7924_v63 = vadd.f32 %v1739_v60, %v1738_v61 }
0x1302   :  { %1742 = vrot.lane.b32.xlu1 %v7924_v63, %s7545_s15 }
0x1374   :  { %v7928_v4 = vpop.permute.xlu1 %1742 }
0x1375   :  { %6501 = vmatmul.mubr.msk.f32.vlgmr.msra.gmra.mrb[20].mxu1 %vm137_vm3, %v7928_v4  ;;  %6031 = vmatmul.mubr.msk.f32.vlgmr.msra.gmra.mrb[22].mxu0 %vm137_vm3, %v7928_v4 }
0x1376   :  { %7015 = vmatpush1.bf16.msra.mxu1 %v7625_v16  ;;  %1977 = vmatprep.mubr.f32.mxu1 %v7541_v1 }
0x1377   :  { %7017 = vmatprep.subr.bf16.mxu1 %v7628_v20  ;;  %7034 = vmatpush3.bf16.msra.mxu0 %v7709_v62 }
0x1378   :  { %7035 = vmatprep.subr.bf16.mxu0 %v8647_v0  ;;  %6531 = vmatprep.mubr.msk.f32.mxu0 %vm7540_vm0, %v7541_v1 }
0x137a   :  { %7019 = vmatpush1.bf16.msra.mxu1 %v7633_v22 }
0x137b   :  { %7028 = vmatprep.subr.bf16.mxu1 %v8647_v0  ;;  %7037 = vmatpush3.bf16.msra.mxu0 %v7712_v3 }
0x137c   :  { %7044 = vmatprep.subr.bf16.mxu0 %v8647_v0 }
0x137d   :  { %6030 = vmatmul.mubr.msk.f32.vlgmr.msra.gmra.mrb[22].mxu1 %vm137_vm3, %v1906_v52 }
0x137e   :  { %7031 = vmatpush3.bf16.msk.msra.mxu1 %vm7701_vm7, %v7698_v57  ;;  %6520 = vmatprep.mubr.msk.f32.mxu1 %vm7540_vm0, %v7541_v1 }
0x137f   :  { %7038 = vmatprep.subr.bf16.mxu1 %v8647_v0 }
0x1448   :  { %v7952_v41 = vpop.f32.mrb[20].mxu1  ;;  %v2050_v8 = vpop.f32.mrb[22].mxu0 }
0x1449   :  { %v6502_v10 = vpop.f32.mrb[21].mxu1  ;;  %v2052_v11 = vpop.f32.mrb[23].mxu0 }
0x144a   :  { %v2290_v31 = vadd.f32 %v2052_v11, %v7677_v42 }
0x1450   :  { %v1979_v21 = vpop.f32.mrb[22].mxu1 }
0x1451   :  { %v2055_v25 = vadd.f32 %v2050_v8, %v1979_v21  ;;  %v1981_v26 = vpop.f32.mrb[23].mxu1 }
0x1453   :  { %v2056_v28 = vadd.f32 %v2055_v25, %v7682_v44 }
0x1455   :  { %v2057_v29 = vsel %vm297_vm4, %v2056_v28, -inf }
0x1456   :  { %2058 = vmax.xlane.f32.xlu0 %v2057_v29 }
0x146c   :  { %2299 = vrot.lane.b32.xlu0 %v2290_v31, %s7542_s5 }
0x14e3   :  { %v2059_v34 = vpop.xlane.xlu0 %2058 }
0x14e4   :  { %v2060_v35 = vsub.f32 %v2056_v28, %v2059_v34  ;;  %v2409_v28 = vstv %s6038_s18 }
0x14e5   :  { %vm2410_vm12 = vcmp.eq.s32.totalorder %v7618_v9, %v2409_v28 }
0x14e6   :  { %v2061_v36 = vmul.f32 1.442695, %v2060_v35 }
0x14e7   :  { %v2300_v25 = vpop.permute.xlu0 %2299 }
0x14e8   :  { %7358 = vpow2.f32 %v2061_v36 }
0x14f2   :  { %v7359_v37 = vpop.eup %7358 }
0x14f3   :  { %v2063_v40 = vsel %vm297_vm4, %v7359_v37, 0.0 }
0x14f4   :  { %2064 = vadd.xlane.f32.xlu1 %v2063_v40 }
0x1581   :  { %v2065_v45 = vpop.xlane.xlu1 %2064 }
0x1582   :  { %7360 = vrcp.f32 %v2065_v45 }
0x158c   :  { %v7361_v46 = vpop.eup %7360 }
0x158d   :  { %v7959_v48 = vmul.f32 %v7361_v46, %v7359_v37 }
0x158f   :  { %6521 = vmatmul.mubr.msk.f32.vlgmr.msra.gmra.mrb[24].mxu1 %vm311_vm8, %v7959_v48 }
0x1590   :  { %7040 = vmatpush3.bf16.msra.mxu1 %v7726_v14  ;;  %6542 = vmatprep.mubr.msk.f32.mxu1 %vm7540_vm0, %v7541_v1 }
0x1591   :  { %7041 = vmatprep.subr.bf16.mxu1 %v8647_v0 }
0x1594   :  { %7043 = vmatpush3.bf16.msra.mxu1 %v7730_v19 }
0x1595   :  { %7050 = vmatprep.subr.bf16.mxu1 %v8647_v0 }
0x1662   :  { %v2137_v50 = vpop.f32.mrb[24].mxu1 }
0x1663   :  { %v6522_v51 = vpop.f32.mrb[25].mxu1  ;;  %6532 = vmatmul.mubr.msk.f32.vlgmr.msra.gmra.mrb[24].mxu0 %vm137_vm3, %v2137_v50 }
0x1664   :  { %7046 = vmatpush3.bf16.msra.mxu0 %v7767_v55  ;;  %6553 = vmatprep.mubr.msk.f32.mxu0 %vm7540_vm0, %v7541_v1 }
0x1665   :  { %7047 = vmatprep.subr.bf16.mxu0 %v8647_v0 }
0x1668   :  { %7049 = vmatpush3.bf16.msra.mxu0 %v7770_v59 }
0x1669   :  { %7057 = vmatprep.subr.bf16.mxu0 %v7623_v15 }
0x1736   :  { %v2210_v47 = vpop.f32.mrb[24].mxu0 }
0x1737   :  { %v2214_v2 = vadd.f32 %v2210_v47, %v1981_v26  ;;  %v6533_v39 = vpop.f32.mrb[25].mxu0 }
0x1739   :  { %v2215_v52 = vadd.f32 %v2214_v2, %v7737_v24 }
0x173b   :  { %v2216_v53 = vmax.f32 %v2215_v52, 0.0 }
0x173d   :  { %6543 = vmatmul.mubr.msk.f32.vlgmr.msra.gmra.mrb[26].mxu1 %vm137_vm3, %v2216_v53 }
0x173e   :  { %7052 = vmatpush3.bf16.msra.mxu1 %v7612_v6  ;;  %6566 = vmatprep.mubr.msk.f32.mxu1 %vm7540_vm0, %v7541_v1 }
0x173f   :  { %7053 = vmatprep.subr.bf16.mxu1 %v8647_v0 }
0x1742   :  { %7055 = vmatpush3.bf16.msra.mxu1 %v7621_v13 }
0x1743   :  { %6564 = vmatprep.subr.mxu1 %v7541_v1 }
0x1746   :  { %6565 = vmatpush3.msra.mxu1 %v7641_v23  ;;  %v6039_v23 = vsel %vm2410_vm12, 1.0, %v7541_v1  ;;  %vm5917_vm12 = vcmask 1046528  }
0x1747   :  { %7065 = vmatprep.subr.bf16.mxu1 %v7650_v27  ;;  %6567 = vmatmul.mubr.msk.f32.vlgmr.msra.gmra.mrb[28].mxu1 %vm55_vm2, %v6039_v23 }
0x1748   :  { %7067 = vmatpush1.bf16.msra.mxu1 %v7653_v32  ;;  %2624 = vmatprep.mubr.f32.mxu1 %v7541_v1 }
0x1749   :  { %7069 = vmatprep.subr.bf16.mxu1 %v7655_v33 }
0x174c   :  { %7071 = vmatpush1.bf16.msra.mxu1 %v7659_v38 }
0x174d   :  { %7076 = vmatprep.subr.bf16.mxu1 %v8647_v0 }
0x1810   :  { %v2286_v54 = vpop.f32.mrb[26].mxu1 }
0x1811   :  { %v2287_v56 = vadd.f32 %v2286_v54, %v7752_v30  ;;  %v6544_v60 = vpop.f32.mrb[27].mxu1 }
0x1813   :  { %v2291_v61 = vadd.f32 %v2290_v31, %v2287_v56 }
0x1815   :  { %v6036_v8 = vmul.f32 -1.442695, %v2291_v61 }
0x1817   :  { %7362 = vpow2.f32 %v6036_v8 }
0x181a   :  { %v2482_v35 = vpop.f32.mrb[28].mxu1 }
0x181b   :  { %v6568_v36 = vpop.f32.mrb[29].mxu1 }
0x1821   :  { %v7363_v10 = vpop.eup %7362 }
0x1822   :  { %v2295_v11 = vadd.f32 1.0, %v7363_v10 }
0x1824   :  { %7364 = vrcp.f32 %v2295_v11 }
0x182e   :  { %v7365_v21 = vpop.eup %7364 }
0x182f   :  { %v2302_v26 = vmul.f32 %v7365_v21, %v2300_v25  ;;  %v2309_v37 = vsub.f32 1.0, %v7365_v21  ;;  %v2315_v45 = vmul.f32 %v7365_v21, %v7924_v63 }
0x1831   :  { %2304 = vrot.lane.b32.xlu1 %v2302_v26, %s7542_s5 }
0x18a3   :  { %v2305_v29 = vpop.permute.xlu1 %2304 }
0x18a4   :  { %v2307_v31 = vadd.f32 %v2305_v29, %v2287_v56 }
0x18a6   :  { %7366 = vtanh.f32 %v2307_v31 }
0x18b0   :  { %v7367_v34 = vpop.eup %7366 }
0x18b1   :  { %2311 = vrot.lane.b32.xlu0 %v7367_v34, %s7545_s15 }
0x1923   :  { %v2312_v40 = vpop.permute.xlu0 %2311 }
0x1924   :  { %v2314_v46 = vmul.f32 %v2312_v40, %v2309_v37  ;;  %v8061_v37 = vld [vmem:[%s8641_s1 + $0x20] sm:$0xff]  ;;  %s6049_s1 = sld [smem:[#allocation3 + $0x5]] }
0x1926   :  { %v7998_v50 = vadd.f32 %v2315_v45, %v2314_v46 }
0x1928   :  { %2318 = vrot.lane.b32.xlu1 %v7998_v50, %s7545_s15 }
0x199a   :  { %v8002_v51 = vpop.permute.xlu1 %2318 }
0x199b   :  { %6554 = vmatmul.mubr.msk.f32.vlgmr.msra.gmra.mrb[26].mxu0 %vm137_vm3, %v8002_v51  ;;  %6042 = vmatmul.mubr.msk.f32.vlgmr.msra.gmra.mrb[30].mxu1 %vm137_vm3, %v8002_v51 }
0x199c   :  { %7059 = vmatpush1.bf16.msra.mxu0 %v7625_v16  ;;  %2553 = vmatprep.mubr.f32.mxu0 %v7541_v1 }
0x199d   :  { %7061 = vmatprep.subr.bf16.mxu0 %v7628_v20  ;;  %7078 = vmatpush3.bf16.msra.mxu1 %v7709_v62 }
0x199e   :  { %7079 = vmatprep.subr.bf16.mxu1 %v8647_v0  ;;  %6584 = vmatprep.mubr.msk.f32.mxu1 %vm7540_vm0, %v7541_v1 }
0x19a0   :  { %7063 = vmatpush1.bf16.msra.mxu0 %v7633_v22 }
0x19a1   :  { %7072 = vmatprep.subr.bf16.mxu0 %v8647_v0  ;;  %7081 = vmatpush3.bf16.msra.mxu1 %v7712_v3 }
0x19a2   :  { %7088 = vmatprep.subr.bf16.mxu1 %v8647_v0 }
0x19a3   :  { %6041 = vmatmul.mubr.msk.f32.vlgmr.msra.gmra.mrb[28].mxu0 %vm137_vm3, %v2482_v35 }
0x19a4   :  { %7075 = vmatpush3.bf16.msk.msra.mxu0 %vm7701_vm7, %v7698_v57  ;;  %6573 = vmatprep.mubr.msk.f32.mxu0 %vm7540_vm0, %v7541_v1 }
0x19a5   :  { %7082 = vmatprep.subr.bf16.mxu0 %v8647_v0 }
0x1a6e   :  { %v8026_v63 = vpop.f32.mrb[26].mxu0  ;;  %v2626_v47 = vpop.f32.mrb[30].mxu1 }
0x1a6f   :  { %v6555_v2 = vpop.f32.mrb[27].mxu0  ;;  %v2628_v39 = vpop.f32.mrb[31].mxu1 }
0x1a70   :  { %v2866_v61 = vadd.f32 %v2628_v39, %v7677_v42 }
0x1a76   :  { %v2555_v52 = vpop.f32.mrb[28].mxu0 }
0x1a77   :  { %v2631_v53 = vadd.f32 %v2626_v47, %v2555_v52  ;;  %v2557_v54 = vpop.f32.mrb[29].mxu0 }
0x1a79   :  { %v2632_v56 = vadd.f32 %v2631_v53, %v7682_v44 }
0x1a7b   :  { %v2633_v60 = vsel %vm297_vm4, %v2632_v56, -inf }
0x1a7c   :  { %2634 = vmax.xlane.f32.xlu0 %v2633_v60 }
0x1a92   :  { %2875 = vrot.lane.b32.xlu0 %v2866_v61, %s7542_s5 }
0x1b09   :  { %v2635_v8 = vpop.xlane.xlu0 %2634 }
0x1b0a   :  { %v2636_v10 = vsub.f32 %v2632_v56, %v2635_v8  ;;  %v2985_v56 = vstv %s6049_s1 }
0x1b0b   :  { %vm2986_vm13 = vcmp.eq.s32.totalorder %v7618_v9, %v2985_v56 }
0x1b0c   :  { %v2637_v11 = vmul.f32 1.442695, %v2636_v10  ;;  %v6050_v60 = vsel %vm2986_vm13, 1.0, %v7541_v1 }
0x1b0d   :  { %v2876_v53 = vpop.permute.xlu0 %2875 }
0x1b0e   :  { %7368 = vpow2.f32 %v2637_v11 }
0x1b18   :  { %v7369_v21 = vpop.eup %7368 }
0x1b19   :  { %v2639_v25 = vsel %vm297_vm4, %v7369_v21, 0.0 }
0x1b1a   :  { %2640 = vadd.xlane.f32.xlu1 %v2639_v25 }
0x1ba7   :  { %v2641_v26 = vpop.xlane.xlu1 %2640 }
0x1ba8   :  { %7370 = vrcp.f32 %v2641_v26 }
0x1bb2   :  { %v7371_v28 = vpop.eup %7370 }
0x1bb3   :  { %v8033_v23 = vmul.f32 %v7371_v28, %v7369_v21 }
0x1bb5   :  { %6574 = vmatmul.mubr.msk.f32.vlgmr.msra.gmra.mrb[30].mxu0 %vm311_vm8, %v8033_v23 }
0x1bb6   :  { %7084 = vmatpush3.bf16.msra.mxu0 %v7726_v14  ;;  %6595 = vmatprep.mubr.msk.f32.mxu0 %vm7540_vm0, %v7541_v1 }
0x1bb7   :  { %7085 = vmatprep.subr.bf16.mxu0 %v8647_v0 }
0x1bba   :  { %7087 = vmatpush3.bf16.msra.mxu0 %v7730_v19 }
0x1bbb   :  { %7094 = vmatprep.subr.bf16.mxu0 %v8647_v0 }
0x1c88   :  { %v2713_v42 = vpop.f32.mrb[30].mxu0 }
0x1c89   :  { %v6575_v44 = vpop.f32.mrb[31].mxu0  ;;  %6585 = vmatmul.mubr.msk.f32.vlgmr.msra.gmra.mrb[32].mxu1 %vm137_vm3, %v2713_v42 }
0x1c8a   :  { %7090 = vmatpush3.bf16.msra.mxu1 %v7767_v55  ;;  %6606 = vmatprep.mubr.msk.f32.mxu1 %vm7540_vm0, %v7541_v1 }
0x1c8b   :  { %7091 = vmatprep.subr.bf16.mxu1 %v8647_v0 }
0x1c8e   :  { %7093 = vmatpush3.bf16.msra.mxu1 %v7770_v59 }
0x1c8f   :  { %7101 = vmatprep.subr.bf16.mxu1 %v7623_v15 }
0x1d5c   :  { %v2786_v29 = vpop.f32.mrb[32].mxu1 }
0x1d5d   :  { %v2790_v31 = vadd.f32 %v2786_v29, %v2557_v54  ;;  %v6586_v34 = vpop.f32.mrb[33].mxu1 }
0x1d5f   :  { %v2791_v35 = vadd.f32 %v2790_v31, %v7737_v24 }
0x1d61   :  { %v2792_v36 = vmax.f32 %v2791_v35, 0.0 }
0x1d63   :  { %6596 = vmatmul.mubr.msk.f32.vlgmr.msra.gmra.mrb[32].mxu0 %vm137_vm3, %v2792_v36 }
0x1d64   :  { %7096 = vmatpush3.bf16.msra.mxu0 %v7612_v6  ;;  %6619 = vmatprep.mubr.msk.f32.mxu0 %vm7540_vm0, %v7541_v1 }
0x1d65   :  { %7097 = vmatprep.subr.bf16.mxu0 %v8647_v0 }
0x1d68   :  { %7099 = vmatpush3.bf16.msra.mxu0 %v7621_v13 }
0x1d69   :  { %6617 = vmatprep.subr.mxu0 %v7541_v1 }
0x1d6c   :  { %6618 = vmatpush3.msra.mxu0 %v8061_v37 }
0x1d6d   :  { %7109 = vmatprep.subr.bf16.mxu0 %v7650_v27  ;;  %6620 = vmatmul.mubr.msk.f32.vlgmr.msra.gmra.mrb[34].mxu0 %vm55_vm2, %v6050_v60 }
0x1d6e   :  { %7111 = vmatpush1.bf16.msra.mxu0 %v7653_v32  ;;  %3200 = vmatprep.mubr.f32.mxu0 %v7541_v1 }
0x1d6f   :  { %7113 = vmatprep.subr.bf16.mxu0 %v7655_v33 }
0x1d72   :  { %7115 = vmatpush1.bf16.msra.mxu0 %v7659_v38 }
0x1d73   :  { %7120 = vmatprep.subr.bf16.mxu0 %v8647_v0 }
0x1e36   :  { %v2862_v24 = vpop.f32.mrb[32].mxu0 }
0x1e37   :  { %v2863_v40 = vadd.f32 %v2862_v24, %v7752_v30  ;;  %v6597_v45 = vpop.f32.mrb[33].mxu0 }
0x1e39   :  { %v2867_v46 = vadd.f32 %v2866_v61, %v2863_v40 }
0x1e3b   :  { %v6047_v47 = vmul.f32 -1.442695, %v2867_v46 }
0x1e3d   :  { %7372 = vpow2.f32 %v6047_v47  ;;  %v8117_v47 = vld [vmem:[%s8644_s4 + $0x3] sm:$0x1] }
0x1e40   :  { %v3058_v10 = vpop.f32.mrb[34].mxu0 }
0x1e41   :  { %v6621_v11 = vpop.f32.mrb[35].mxu0 }
0x1e47   :  { %v7373_v2 = vpop.eup %7372 }
0x1e48   :  { %v2871_v39 = vadd.f32 1.0, %v7373_v2 }
0x1e4a   :  { %7374 = vrcp.f32 %v2871_v39 }
0x1e54   :  { %v7375_v52 = vpop.eup %7374 }
0x1e55   :  { %v2878_v54 = vmul.f32 %v7375_v52, %v2876_v53  ;;  %v2885_v21 = vsub.f32 1.0, %v7375_v52  ;;  %v2891_v26 = vmul.f32 %v7375_v52, %v7998_v50 }
0x1e57   :  { %2880 = vrot.lane.b32.xlu1 %v2878_v54, %s7542_s5 }
0x1ec9   :  { %v2881_v30 = vpop.permute.xlu1 %2880 }
0x1eca   :  { %v2883_v61 = vadd.f32 %v2881_v30, %v2863_v40  ;;  %v8110_v40 = vld [vmem:[%s8644_s4] sm:$0x1] }
0x1ecc   :  { %7376 = vtanh.f32 %v2883_v61 }
0x1ed6   :  { %v7377_v8 = vpop.eup %7376 }
0x1ed7   :  { %2887 = vrot.lane.b32.xlu0 %v7377_v8, %s7545_s15 }
0x1f49   :  { %v2888_v25 = vpop.permute.xlu0 %2887 }
0x1f4a   :  { %v2890_v28 = vmul.f32 %v2888_v25, %v2885_v21 }
0x1f4c   :  { %v8077_v42 = vadd.f32 %v2891_v26, %v2890_v28  ;;  %v8142_v26 = vld [vmem:[%s8644_s4 + $0x1] sm:$0x1] }
0x1f4e   :  { %2894 = vrot.lane.b32.xlu1 %v8077_v42, %s7545_s15 }
0x1fc0   :  { %v8081_v44 = vpop.permute.xlu1 %2894 }
0x1fc1   :  { %6607 = vmatmul.mubr.msk.f32.vlgmr.msra.gmra.mrb[34].mxu1 %vm137_vm3, %v8081_v44  ;;  %6053 = vmatmul.mubr.msk.f32.vlgmr.msra.gmra.mrb[36].mxu0 %vm137_vm3, %v8081_v44 }
0x1fc2   :  { %7103 = vmatpush1.bf16.msra.mxu1 %v7625_v16  ;;  %3129 = vmatprep.mubr.f32.mxu1 %v7541_v1 }
0x1fc3   :  { %7105 = vmatprep.subr.bf16.mxu1 %v7628_v20  ;;  %7122 = vmatpush3.bf16.msra.mxu0 %v7709_v62 }
0x1fc4   :  { %7123 = vmatprep.subr.bf16.mxu0 %v8647_v0  ;;  %6637 = vmatprep.mubr.msk.f32.mxu0 %vm7540_vm0, %v7541_v1 }
0x1fc6   :  { %7107 = vmatpush1.bf16.msra.mxu1 %v7633_v22 }
0x1fc7   :  { %7116 = vmatprep.subr.bf16.mxu1 %v8647_v0  ;;  %7125 = vmatpush3.bf16.msra.mxu0 %v7712_v3 }
0x1fc8   :  { %7132 = vmatprep.subr.bf16.mxu0 %v8647_v0 }
0x1fc9   :  { %6052 = vmatmul.mubr.msk.f32.vlgmr.msra.gmra.mrb[36].mxu1 %vm137_vm3, %v3058_v10 }
0x1fca   :  { %7119 = vmatpush3.bf16.msk.msra.mxu1 %vm7701_vm7, %v7698_v57  ;;  %6626 = vmatprep.mubr.msk.f32.mxu1 %vm7540_vm0, %v7541_v1 }
0x1fcb   :  { %7126 = vmatprep.subr.bf16.mxu1 %v8647_v0 }
0x2094   :  { %v8105_v50 = vpop.f32.mrb[34].mxu1  ;;  %v3202_v29 = vpop.f32.mrb[36].mxu0 }
0x2095   :  { %v6608_v31 = vpop.f32.mrb[35].mxu1  ;;  %v3204_v34 = vpop.f32.mrb[37].mxu0 }
0x2096   :  { %v3442_v2 = vadd.f32 %v8117_v47, %v3204_v34  ;;  %v8157_v34 = vld [vmem:[%s8644_s4 + $0x2] sm:$0x1] }
0x209c   :  { %v3131_v35 = vpop.f32.mrb[36].mxu1 }
0x209d   :  { %v3207_v36 = vadd.f32 %v3202_v29, %v3131_v35  ;;  %v3133_v24 = vpop.f32.mrb[37].mxu1 }
0x209f   :  { %v3208_v45 = vadd.f32 %v8110_v40, %v3207_v36 }
0x20a1   :  { %v3209_v46 = vsel %vm297_vm4, %v3208_v45, -inf }
0x20a2   :  { %3210 = vmax.xlane.f32.xlu0 %v3209_v46 }
0x20b8   :  { %3451 = vrot.lane.b32.xlu0 %v3442_v2, %s7542_s5 }
0x212f   :  { %v3211_v39 = vpop.xlane.xlu0 %3210 }
0x2130   :  { %v3212_v52 = vsub.f32 %v3208_v45, %v3211_v39 }
0x2132   :  { %v3213_v53 = vmul.f32 1.442695, %v3212_v52 }
0x2134   :  { %7378 = vpow2.f32 %v3213_v53  ;;  %v3452_v53 = vpop.permute.xlu0 %3451 }
0x213e   :  { %v7379_v54 = vpop.eup %7378 }
0x213f   :  { %v3215_v56 = vsel %vm297_vm4, %v7379_v54, 0.0 }
0x2140   :  { %3216 = vadd.xlane.f32.xlu1 %v3215_v56  ;;  %v3561_v56 = vstv %s6060_s28 }
0x2141   :  { %vm3562_vm14 = vcmp.eq.s32.totalorder %v7618_v9, %v3561_v56 }
0x21cd   :  { %v3217_v60 = vpop.xlane.xlu1 %3216 }
0x21ce   :  { %7380 = vrcp.f32 %v3217_v60  ;;  %v6061_v60 = vsel %vm3562_vm14, 1.0, %v7541_v1 }
0x21d8   :  { %v7381_v30 = vpop.eup %7380 }
0x21d9   :  { %v8122_v61 = vmul.f32 %v7381_v30, %v7379_v54 }
0x21db   :  { %6627 = vmatmul.mubr.msk.f32.vlgmr.msra.gmra.mrb[38].mxu1 %vm311_vm8, %v8122_v61 }
0x21dc   :  { %7128 = vmatpush3.bf16.msra.mxu1 %v7726_v14  ;;  %6648 = vmatprep.mubr.msk.f32.mxu1 %vm7540_vm0, %v7541_v1 }
0x21dd   :  { %7129 = vmatprep.subr.bf16.mxu1 %v8647_v0 }
0x21e0   :  { %7131 = vmatpush3.bf16.msra.mxu1 %v7730_v19 }
0x21e1   :  { %7138 = vmatprep.subr.bf16.mxu1 %v8647_v0 }
0x22ae   :  { %v3289_v8 = vpop.f32.mrb[38].mxu1 }
0x22af   :  { %v6628_v10 = vpop.f32.mrb[39].mxu1  ;;  %6638 = vmatmul.mubr.msk.f32.vlgmr.msra.gmra.mrb[38].mxu0 %vm137_vm3, %v3289_v8 }
0x22b0   :  { %7134 = vmatpush3.bf16.msra.mxu0 %v7767_v55  ;;  %6659 = vmatprep.mubr.msk.f32.mxu0 %vm7540_vm0, %v7541_v1 }
0x22b1   :  { %7135 = vmatprep.subr.bf16.mxu0 %v8647_v0 }
0x22b4   :  { %7137 = vmatpush3.bf16.msra.mxu0 %v7770_v59 }
0x22b5   :  { %7145 = vmatprep.subr.bf16.mxu0 %v7623_v15 }
0x2382   :  { %v3362_v11 = vpop.f32.mrb[38].mxu0 }
0x2383   :  { %v3366_v21 = vadd.f32 %v3362_v11, %v3133_v24  ;;  %v6639_v25 = vpop.f32.mrb[39].mxu0 }
0x2385   :  { %v3367_v28 = vadd.f32 %v8142_v26, %v3366_v21 }
0x2387   :  { %v3368_v29 = vmax.f32 %v3367_v28, 0.0 }
0x2389   :  { %6649 = vmatmul.mubr.msk.f32.vlgmr.msra.gmra.mrb[40].mxu1 %vm137_vm3, %v3368_v29 }
0x238a   :  { %7140 = vmatpush3.bf16.msra.mxu1 %v7612_v6  ;;  %6672 = vmatprep.mubr.msk.f32.mxu1 %vm7540_vm0, %v7541_v1 }
0x238b   :  { %7141 = vmatprep.subr.bf16.mxu1 %v8647_v0 }
0x238e   :  { %7143 = vmatpush3.bf16.msra.mxu1 %v7621_v13 }
0x238f   :  { %6670 = vmatprep.subr.mxu1 %v7541_v1 }
0x2392   :  { %6671 = vmatpush3.msra.mxu1 %v8061_v37 }
0x2393   :  { %7153 = vmatprep.subr.bf16.mxu1 %v7650_v27  ;;  %6673 = vmatmul.mubr.msk.f32.vlgmr.msra.gmra.mrb[42].mxu1 %vm55_vm2, %v6061_v60 }
0x2394   :  { %7155 = vmatpush1.bf16.msra.mxu1 %v7653_v32  ;;  %3776 = vmatprep.mubr.f32.mxu1 %v7541_v1 }
0x2395   :  { %7157 = vmatprep.subr.bf16.mxu1 %v7655_v33 }
0x2398   :  { %7159 = vmatpush1.bf16.msra.mxu1 %v7659_v38 }
0x2399   :  { %7164 = vmatprep.subr.bf16.mxu1 %v8647_v0 }
0x245c   :  { %v3438_v31 = vpop.f32.mrb[40].mxu1 }
0x245d   :  { %v3439_v35 = vadd.f32 %v8157_v34, %v3438_v31  ;;  %v6650_v36 = vpop.f32.mrb[41].mxu1 }
0x245f   :  { %v3443_v24 = vadd.f32 %v3442_v2, %v3439_v35 }
0x2461   :  { %v6058_v45 = vmul.f32 -1.442695, %v3443_v24 }
0x2463   :  { %7382 = vpow2.f32 %v6058_v45 }
0x2466   :  { %v3634_v10 = vpop.f32.mrb[42].mxu1 }
0x2467   :  { %v6674_v11 = vpop.f32.mrb[43].mxu1 }
0x246d   :  { %v7383_v46 = vpop.eup %7382 }
0x246e   :  { %v3447_v39 = vadd.f32 1.0, %v7383_v46 }
0x2470   :  { %7384 = vrcp.f32 %v3447_v39 }
0x247a   :  { %v7385_v52 = vpop.eup %7384 }
0x247b   :  { %v3454_v54 = vmul.f32 %v7385_v52, %v3452_v53  ;;  %v3461_v21 = vsub.f32 1.0, %v7385_v52  ;;  %v3467_v28 = vmul.f32 %v7385_v52, %v8077_v42 }
0x247d   :  { %3456 = vrot.lane.b32.xlu1 %v3454_v54, %s7542_s5 }
0x24ef   :  { %v3457_v2 = vpop.permute.xlu1 %3456 }
0x24f0   :  { %v3459_v30 = vadd.f32 %v3457_v2, %v3439_v35 }
0x24f2   :  { %7386 = vtanh.f32 %v3459_v30 }
0x24fc   :  { %v7387_v8 = vpop.eup %7386 }
0x24fd   :  { %3463 = vrot.lane.b32.xlu0 %v7387_v8, %s7545_s15 }
0x256f   :  { %v3464_v25 = vpop.permute.xlu0 %3463 }
0x2570   :  { %v3466_v29 = vmul.f32 %v3464_v25, %v3461_v21 }
0x2572   :  { %v8171_v31 = vadd.f32 %v3467_v28, %v3466_v29 }
0x2574   :  { %3470 = vrot.lane.b32.xlu1 %v8171_v31, %s7545_s15 }
0x25e6   :  { %v8175_v36 = vpop.permute.xlu1 %3470 }
0x25e7   :  { %6660 = vmatmul.mubr.msk.f32.vlgmr.msra.gmra.mrb[40].mxu0 %vm137_vm3, %v8175_v36  ;;  %6064 = vmatmul.mubr.msk.f32.vlgmr.msra.gmra.mrb[44].mxu1 %vm137_vm3, %v8175_v36 }
0x25e8   :  { %7147 = vmatpush1.bf16.msra.mxu0 %v7625_v16  ;;  %3705 = vmatprep.mubr.f32.mxu0 %v7541_v1 }
0x25e9   :  { %7149 = vmatprep.subr.bf16.mxu0 %v7628_v20  ;;  %7166 = vmatpush3.bf16.msra.mxu1 %v7709_v62 }
0x25ea   :  { %7167 = vmatprep.subr.bf16.mxu1 %v8647_v0  ;;  %6690 = vmatprep.mubr.msk.f32.mxu1 %vm7540_vm0, %v7541_v1 }
0x25ec   :  { %7151 = vmatpush1.bf16.msra.mxu0 %v7633_v22 }
0x25ed   :  { %7160 = vmatprep.subr.bf16.mxu0 %v8647_v0  ;;  %7169 = vmatpush3.bf16.msra.mxu1 %v7712_v3 }
0x25ee   :  { %7176 = vmatprep.subr.bf16.mxu1 %v8647_v0 }
0x25ef   :  { %6063 = vmatmul.mubr.msk.f32.vlgmr.msra.gmra.mrb[42].mxu0 %vm137_vm3, %v3634_v10 }
0x25f0   :  { %7163 = vmatpush3.bf16.msk.msra.mxu0 %vm7701_vm7, %v7698_v57  ;;  %6679 = vmatprep.mubr.msk.f32.mxu0 %vm7540_vm0, %v7541_v1 }
0x25f1   :  { %7170 = vmatprep.subr.bf16.mxu0 %v8647_v0 }
0x26ba   :  { %v8199_v42 = vpop.f32.mrb[40].mxu0  ;;  %v3778_v35 = vpop.f32.mrb[44].mxu1 }
0x26bb   :  { %v6661_v24 = vpop.f32.mrb[41].mxu0  ;;  %v3780_v45 = vpop.f32.mrb[45].mxu1 }
0x26bc   :  { %v4018_v56 = vadd.f32 %v8117_v47, %v3780_v45 }
0x26c2   :  { %v3707_v46 = vpop.f32.mrb[42].mxu0 }
0x26c3   :  { %v3783_v39 = vadd.f32 %v3778_v35, %v3707_v46  ;;  %v3709_v52 = vpop.f32.mrb[43].mxu0 }
0x26c5   :  { %v3784_v53 = vadd.f32 %v8110_v40, %v3783_v39 }
0x26c7   :  { %v3785_v54 = vsel %vm297_vm4, %v3784_v53, -inf }
0x26c8   :  { %3786 = vmax.xlane.f32.xlu0 %v3785_v54 }
0x26de   :  { %4027 = vrot.lane.b32.xlu0 %v4018_v56, %s7542_s5 }
0x2755   :  { %v3787_v60 = vpop.xlane.xlu0 %3786 }
0x2756   :  { %v3788_v2 = vsub.f32 %v3784_v53, %v3787_v60 }
0x2758   :  { %v3789_v30 = vmul.f32 1.442695, %v3788_v2 }
0x275a   :  { %7388 = vpow2.f32 %v3789_v30 }
0x2764   :  { %v7389_v8 = vpop.eup %7388 }
0x2765   :  { %v3791_v10 = vsel %vm297_vm4, %v7389_v8, 0.0 }
0x2766   :  { %3792 = vadd.xlane.f32.xlu1 %v3791_v10 }
0x27f3   :  { %v3793_v11 = vpop.xlane.xlu1 %3792 }
0x27f4   :  { %7390 = vrcp.f32 %v3793_v11  ;;  %v4028_v11 = vpop.permute.xlu0 %4027 }
0x27fe   :  { %v7391_v21 = vpop.eup %7390 }
0x27ff   :  { %v8206_v25 = vmul.f32 %v7391_v21, %v7389_v8 }
0x2801   :  { %6680 = vmatmul.mubr.msk.f32.vlgmr.msra.gmra.mrb[44].mxu0 %vm311_vm8, %v8206_v25 }
0x2802   :  { %7172 = vmatpush3.bf16.msra.mxu0 %v7726_v14  ;;  %6701 = vmatprep.mubr.msk.f32.mxu0 %vm7540_vm0, %v7541_v1 }
0x2803   :  { %7173 = vmatprep.subr.bf16.mxu0 %v8647_v0 }
0x2806   :  { %7175 = vmatpush3.bf16.msra.mxu0 %v7730_v19 }
0x2807   :  { %7182 = vmatprep.subr.bf16.mxu0 %v8647_v0 }
0x28d4   :  { %v3865_v28 = vpop.f32.mrb[44].mxu0 }
0x28d5   :  { %v6681_v29 = vpop.f32.mrb[45].mxu0  ;;  %6691 = vmatmul.mubr.msk.f32.vlgmr.msra.gmra.mrb[46].mxu1 %vm137_vm3, %v3865_v28  ;;  %v4137_v28 = vstv %s6071_s0 }
0x28d6   :  { %7178 = vmatpush3.bf16.msra.mxu1 %v7767_v55  ;;  %6712 = vmatprep.mubr.msk.f32.mxu1 %vm7540_vm0, %v7541_v1  ;;  %vm4138_vm15 = vcmp.eq.s32.totalorder %v7618_v9, %v4137_v28 }
0x28d7   :  { %7179 = vmatprep.subr.bf16.mxu1 %v8647_v0  ;;  %v6072_v29 = vsel %vm4138_vm15, 1.0, %v7541_v1 }
0x28da   :  { %7181 = vmatpush3.bf16.msra.mxu1 %v7770_v59 }
0x28db   :  { %7189 = vmatprep.subr.bf16.mxu1 %v7623_v15 }
0x29a8   :  { %v3938_v35 = vpop.f32.mrb[46].mxu1 }
0x29a9   :  { %v3942_v24 = vadd.f32 %v3938_v35, %v3709_v52  ;;  %v6692_v45 = vpop.f32.mrb[47].mxu1 }
0x29ab   :  { %v3943_v46 = vadd.f32 %v8142_v26, %v3942_v24 }
0x29ad   :  { %v3944_v39 = vmax.f32 %v3943_v46, 0.0 }
0x29af   :  { %6702 = vmatmul.mubr.msk.f32.vlgmr.msra.gmra.mrb[46].mxu0 %vm137_vm3, %v3944_v39 }
0x29b0   :  { %7184 = vmatpush3.bf16.msra.mxu0 %v7612_v6  ;;  %6725 = vmatprep.mubr.msk.f32.mxu0 %vm7540_vm0, %v7541_v1 }
0x29b1   :  { %7185 = vmatprep.subr.bf16.mxu0 %v8647_v0 }
0x29b4   :  { %7187 = vmatpush3.bf16.msra.mxu0 %v7621_v13 }
0x29b5   :  { %6723 = vmatprep.subr.mxu0 %v7541_v1 }
0x29b8   :  { %6724 = vmatpush3.msra.mxu0 %v8061_v37 }
0x29b9   :  { %7197 = vmatprep.subr.bf16.mxu0 %v7650_v27  ;;  %6726 = vmatmul.mubr.msk.f32.vlgmr.msra.gmra.mrb[48].mxu0 %vm55_vm2, %v6072_v29 }
0x29ba   :  { %7199 = vmatpush1.bf16.msra.mxu0 %v7653_v32  ;;  %4352 = vmatprep.mubr.f32.mxu0 %v7541_v1 }
0x29bb   :  { %7201 = vmatprep.subr.bf16.mxu0 %v7655_v33 }
0x29be   :  { %7203 = vmatpush1.bf16.msra.mxu0 %v7659_v38 }
0x29bf   :  { %7208 = vmatprep.subr.bf16.mxu0 %v8647_v0 }
0x2a82   :  { %v4014_v52 = vpop.f32.mrb[46].mxu0 }
0x2a83   :  { %v4015_v53 = vadd.f32 %v8157_v34, %v4014_v52  ;;  %v6703_v54 = vpop.f32.mrb[47].mxu0 }
0x2a85   :  { %v4019_v60 = vadd.f32 %v4018_v56, %v4015_v53 }
0x2a87   :  { %v6069_v2 = vmul.f32 -1.442695, %v4019_v60 }
0x2a89   :  { %7392 = vpow2.f32 %v6069_v2 }
0x2a8c   :  { %v4210_v45 = vpop.f32.mrb[48].mxu0 }
0x2a8d   :  { %v6727_v46 = vpop.f32.mrb[49].mxu0 }
0x2a93   :  { %v7393_v30 = vpop.eup %7392 }
0x2a94   :  { %v4023_v8 = vadd.f32 1.0, %v7393_v30 }
0x2a96   :  { %7394 = vrcp.f32 %v4023_v8 }
0x2aa0   :  { %v7395_v10 = vpop.eup %7394 }
0x2aa1   :  { %v4030_v21 = vmul.f32 %v7395_v10, %v4028_v11  ;;  %v4037_v39 = vsub.f32 1.0, %v7395_v10  ;;  %v4043_v54 = vmul.f32 %v7395_v10, %v8171_v31 }
0x2aa3   :  { %4032 = vrot.lane.b32.xlu1 %v4030_v21, %s7542_s5 }
0x2b15   :  { %v4033_v56 = vpop.permute.xlu1 %4032 }
0x2b16   :  { %v4035_v35 = vadd.f32 %v4033_v56, %v4015_v53 }
0x2b18   :  { %7396 = vtanh.f32 %v4035_v35 }
0x2b22   :  { %v7397_v24 = vpop.eup %7396 }
0x2b23   :  { %4039 = vrot.lane.b32.xlu0 %v7397_v24, %s7545_s15 }
0x2b95   :  { %v4040_v52 = vpop.permute.xlu0 %4039 }
0x2b96   :  { %v4042_v60 = vmul.f32 %v4040_v52, %v4037_v39 }
0x2b98   :  { %v8245_v2 = vadd.f32 %v4043_v54, %v4042_v60 }
0x2b9a   :  { %4046 = vrot.lane.b32.xlu1 %v8245_v2, %s7545_s15 }
0x2c0c   :  { %v8249_v30 = vpop.permute.xlu1 %4046 }
0x2c0d   :  { %6713 = vmatmul.mubr.msk.f32.vlgmr.msra.gmra.mrb[48].mxu1 %vm137_vm3, %v8249_v30  ;;  %6075 = vmatmul.mubr.msk.f32.vlgmr.msra.gmra.mrb[50].mxu0 %vm137_vm3, %v8249_v30 }
0x2c0e   :  { %7191 = vmatpush1.bf16.msra.mxu1 %v7625_v16  ;;  %4281 = vmatprep.mubr.f32.mxu1 %v7541_v1 }
0x2c0f   :  { %7193 = vmatprep.subr.bf16.mxu1 %v7628_v20  ;;  %7210 = vmatpush3.bf16.msra.mxu0 %v7709_v62 }
0x2c10   :  { %7211 = vmatprep.subr.bf16.mxu0 %v8647_v0  ;;  %6743 = vmatprep.mubr.msk.f32.mxu0 %vm7540_vm0, %v7541_v1 }
0x2c12   :  { %7195 = vmatpush1.bf16.msra.mxu1 %v7633_v22 }
0x2c13   :  { %7204 = vmatprep.subr.bf16.mxu1 %v8647_v0  ;;  %7213 = vmatpush3.bf16.msra.mxu0 %v7712_v3 }
0x2c14   :  { %7220 = vmatprep.subr.bf16.mxu0 %v8647_v0 }
0x2c15   :  { %6074 = vmatmul.mubr.msk.f32.vlgmr.msra.gmra.mrb[50].mxu1 %vm137_vm3, %v4210_v45 }
0x2c16   :  { %7207 = vmatpush3.bf16.msk.msra.mxu1 %vm7701_vm7, %v7698_v57  ;;  %6732 = vmatprep.mubr.msk.f32.mxu1 %vm7540_vm0, %v7541_v1 }
0x2c17   :  { %7214 = vmatprep.subr.bf16.mxu1 %v8647_v0 }
0x2ce0   :  { %v8273_v31 = vpop.f32.mrb[48].mxu1  ;;  %v4354_v53 = vpop.f32.mrb[50].mxu0 }
0x2ce1   :  { %v6714_v8 = vpop.f32.mrb[49].mxu1  ;;  %v4356_v10 = vpop.f32.mrb[51].mxu0 }
0x2ce2   :  { %v4594_v35 = vadd.f32 %v8117_v47, %v4356_v10 }
0x2ce8   :  { %v4283_v11 = vpop.f32.mrb[50].mxu1 }
0x2ce9   :  { %v4359_v21 = vadd.f32 %v4354_v53, %v4283_v11  ;;  %v4285_v28 = vpop.f32.mrb[51].mxu1 }
0x2ceb   :  { %v4360_v29 = vadd.f32 %v8110_v40, %v4359_v21 }
0x2ced   :  { %v4361_v56 = vsel %vm297_vm4, %v4360_v29, -inf }
0x2cee   :  { %4362 = vmax.xlane.f32.xlu0 %v4361_v56 }
0x2d04   :  { %4603 = vrot.lane.b32.xlu0 %v4594_v35, %s7542_s5 }
0x2d7b   :  { %v4363_v24 = vpop.xlane.xlu0 %4362 }
0x2d7c   :  { %v4364_v45 = vsub.f32 %v4360_v29, %v4363_v24 }
0x2d7e   :  { %v4365_v46 = vmul.f32 1.442695, %v4364_v45 }
0x2d80   :  { %7398 = vpow2.f32 %v4365_v46 }
0x2d8a   :  { %v7399_v39 = vpop.eup %7398 }
0x2d8b   :  { %v4367_v52 = vsel %vm297_vm4, %v7399_v39, 0.0 }
0x2d8c   :  { %4368 = vadd.xlane.f32.xlu1 %v4367_v52 }
0x2e19   :  { %v4369_v54 = vpop.xlane.xlu1 %4368 }
0x2e1a   :  { %7400 = vrcp.f32 %v4369_v54 }
0x2e24   :  { %v7401_v60 = vpop.eup %7400 }
0x2e25   :  { %v8280_v53 = vmul.f32 %v7401_v60, %v7399_v39 }
0x2e27   :  { %6733 = vmatmul.mubr.msk.f32.vlgmr.msra.gmra.mrb[52].mxu1 %vm311_vm8, %v8280_v53 }
0x2e28   :  { %7216 = vmatpush3.bf16.msra.mxu1 %v7726_v14  ;;  %6754 = vmatprep.mubr.msk.f32.mxu1 %vm7540_vm0, %v7541_v1 }
0x2e29   :  { %7217 = vmatprep.subr.bf16.mxu1 %v8647_v0 }
0x2e2c   :  { %7219 = vmatpush3.bf16.msra.mxu1 %v7730_v19 }
0x2e2d   :  { %7226 = vmatprep.subr.bf16.mxu1 %v8647_v0 }
0x2efa   :  { %v4441_v8 = vpop.f32.mrb[52].mxu1 }
0x2efb   :  { %v6734_v10 = vpop.f32.mrb[53].mxu1  ;;  %6744 = vmatmul.mubr.msk.f32.vlgmr.msra.gmra.mrb[52].mxu0 %vm137_vm3, %v4441_v8 }
0x2efc   :  { %7222 = vmatpush3.bf16.msra.mxu0 %v7767_v55  ;;  %6765 = vmatprep.mubr.msk.f32.mxu0 %vm7540_vm0, %v7541_v1  ;;  %v4604_v10 = vpop.permute.xlu0 %4603 }
0x2efd   :  { %7223 = vmatprep.subr.bf16.mxu0 %v8647_v0 }
0x2f00   :  { %7225 = vmatpush3.bf16.msra.mxu0 %v7770_v59 }
0x2f01   :  { %7233 = vmatprep.subr.bf16.mxu0 %v7623_v15 }
0x2fce   :  { %v4514_v11 = vpop.f32.mrb[52].mxu0 }
0x2fcf   :  { %v4518_v21 = vadd.f32 %v4514_v11, %v4285_v28  ;;  %v6745_v29 = vpop.f32.mrb[53].mxu0 }
0x2fd1   :  { %v4519_v56 = vadd.f32 %v8142_v26, %v4518_v21  ;;  %v4713_v21 = vstv %s6082_s29 }
0x2fd2   :  { %vm4714_vm1 = vcmp.eq.s32.totalorder %v7618_v9, %v4713_v21 }
0x2fd3   :  { %v4520_v24 = vmax.f32 %v4519_v56, 0.0  ;;  %v6083_v29 = vsel %vm4714_vm1, 1.0, %v7541_v1 }
0x2fd5   :  { %6755 = vmatmul.mubr.msk.f32.vlgmr.msra.gmra.mrb[54].mxu1 %vm137_vm3, %v4520_v24 }
0x2fd6   :  { %7228 = vmatpush3.bf16.msra.mxu1 %v7612_v6  ;;  %6778 = vmatprep.mubr.msk.f32.mxu1 %vm7540_vm0, %v7541_v1 }
0x2fd7   :  { %7229 = vmatprep.subr.bf16.mxu1 %v8647_v0 }
0x2fda   :  { %7231 = vmatpush3.bf16.msra.mxu1 %v7621_v13 }
0x2fdb   :  { %6776 = vmatprep.subr.mxu1 %v7541_v1 }
0x2fde   :  { %6777 = vmatpush3.msra.mxu1 %v8061_v37 }
0x2fdf   :  { %7241 = vmatprep.subr.bf16.mxu1 %v7650_v27  ;;  %6779 = vmatmul.mubr.msk.f32.vlgmr.msra.gmra.mrb[56].mxu1 %vm55_vm2, %v6083_v29 }
0x2fe0   :  { %7243 = vmatpush1.bf16.msra.mxu1 %v7653_v32  ;;  %4928 = vmatprep.mubr.f32.mxu1 %v7541_v1 }
0x2fe1   :  { %7245 = vmatprep.subr.bf16.mxu1 %v7655_v33 }
0x2fe4   :  { %7247 = vmatpush1.bf16.msra.mxu1 %v7659_v38 }
0x2fe5   :  { %7252 = vmatprep.subr.bf16.mxu1 %v8647_v0 }
0x30a8   :  { %v4590_v28 = vpop.f32.mrb[54].mxu1 }
0x30a9   :  { %v4591_v45 = vadd.f32 %v8157_v34, %v4590_v28  ;;  %v6756_v46 = vpop.f32.mrb[55].mxu1 }
0x30ab   :  { %v4595_v39 = vadd.f32 %v4594_v35, %v4591_v45 }
0x30ad   :  { %v6080_v52 = vmul.f32 -1.442695, %v4595_v39 }
0x30af   :  { %7402 = vpow2.f32 %v6080_v52 }
0x30b2   :  { %v4786_v28 = vpop.f32.mrb[56].mxu1 }
0x30b3   :  { %v6780_v46 = vpop.f32.mrb[57].mxu1 }
0x30b9   :  { %v7403_v54 = vpop.eup %7402 }
0x30ba   :  { %v4599_v60 = vadd.f32 1.0, %v7403_v54 }
0x30bc   :  { %7404 = vrcp.f32 %v4599_v60 }
0x30c6   :  { %v7405_v8 = vpop.eup %7404 }
0x30c7   :  { %v4606_v11 = vmul.f32 %v7405_v8, %v4604_v10  ;;  %v4613_v39 = vsub.f32 1.0, %v7405_v8  ;;  %v4619_v54 = vmul.f32 %v7405_v8, %v8245_v2 }
0x30c9   :  { %4608 = vrot.lane.b32.xlu1 %v4606_v11, %s7542_s5 }
0x313b   :  { %v4609_v35 = vpop.permute.xlu1 %4608 }
0x313c   :  { %v4611_v56 = vadd.f32 %v4609_v35, %v4591_v45 }
0x313e   :  { %7406 = vtanh.f32 %v4611_v56 }
0x3148   :  { %v7407_v24 = vpop.eup %7406 }
0x3149   :  { %4615 = vrot.lane.b32.xlu0 %v7407_v24, %s7545_s15 }
0x31bb   :  { %v4616_v52 = vpop.permute.xlu0 %4615 }
0x31bc   :  { %v4618_v60 = vmul.f32 %v4616_v52, %v4613_v39 }
0x31be   :  { %v8319_v10 = vadd.f32 %v4619_v54, %v4618_v60 }
0x31c0   :  { %4622 = vrot.lane.b32.xlu1 %v8319_v10, %s7545_s15 }
0x3232   :  { %v8323_v11 = vpop.permute.xlu1 %4622 }
0x3233   :  { %6766 = vmatmul.mubr.msk.f32.vlgmr.msra.gmra.mrb[54].mxu0 %vm137_vm3, %v8323_v11  ;;  %6086 = vmatmul.mubr.msk.f32.vlgmr.msra.gmra.mrb[58].mxu1 %vm137_vm3, %v8323_v11 }
0x3234   :  { %7235 = vmatpush1.bf16.msra.mxu0 %v7625_v16  ;;  %4857 = vmatprep.mubr.f32.mxu0 %v7541_v1 }
0x3235   :  { %7237 = vmatprep.subr.bf16.mxu0 %v7628_v20  ;;  %7254 = vmatpush3.bf16.msra.mxu1 %v7709_v62 }
0x3236   :  { %7255 = vmatprep.subr.bf16.mxu1 %v8647_v0  ;;  %6796 = vmatprep.mubr.msk.f32.mxu1 %vm7540_vm0, %v7541_v1 }
0x3238   :  { %7239 = vmatpush1.bf16.msra.mxu0 %v7633_v22 }
0x3239   :  { %7248 = vmatprep.subr.bf16.mxu0 %v8647_v0  ;;  %7257 = vmatpush3.bf16.msra.mxu1 %v7712_v3 }
0x323a   :  { %7264 = vmatprep.subr.bf16.mxu1 %v8647_v0 }
0x323b   :  { %6085 = vmatmul.mubr.msk.f32.vlgmr.msra.gmra.mrb[56].mxu0 %vm137_vm3, %v4786_v28 }
0x323c   :  { %7251 = vmatpush3.bf16.msk.msra.mxu0 %vm7701_vm7, %v7698_v57  ;;  %6785 = vmatprep.mubr.msk.f32.mxu0 %vm7540_vm0, %v7541_v1 }
0x323d   :  { %7258 = vmatprep.subr.bf16.mxu0 %v8647_v0 }
0x3306   :  { %v8347_v2 = vpop.f32.mrb[54].mxu0  ;;  %v4930_v45 = vpop.f32.mrb[58].mxu1 }
0x3307   :  { %v6767_v8 = vpop.f32.mrb[55].mxu0  ;;  %v4932_v21 = vpop.f32.mrb[59].mxu1 }
0x3308   :  { %v5170_v46 = vadd.f32 %v8117_v47, %v4932_v21  ;;  %v8651_v21 = vmov 0.0|0.0  }
0x330e   :  { %v4859_v29 = vpop.f32.mrb[56].mxu0 }
0x330f   :  { %v4935_v35 = vadd.f32 %v4930_v45, %v4859_v29  ;;  %v4861_v56 = vpop.f32.mrb[57].mxu0 }
0x3311   :  { %v4936_v24 = vadd.f32 %v8110_v40, %v4935_v35 }
0x3313   :  { %v4937_v28 = vsel %vm297_vm4, %v4936_v24, -inf }
0x3314   :  { %4938 = vmax.xlane.f32.xlu0 %v4937_v28 }
0x332a   :  { %5179 = vrot.lane.b32.xlu0 %v5170_v46, %s7542_s5 }
0x33a1   :  { %v4939_v39 = vpop.xlane.xlu0 %4938 }
0x33a2   :  { %v4940_v52 = vsub.f32 %v4936_v24, %v4939_v39 }
0x33a4   :  { %v4941_v54 = vmul.f32 1.442695, %v4940_v52 }
0x33a6   :  { %7408 = vpow2.f32 %v4941_v54 }
0x33b0   :  { %v7409_v60 = vpop.eup %7408 }
0x33b1   :  { %v4943_v8 = vsel %vm297_vm4, %v7409_v60, 0.0 }
0x33b2   :  { %4944 = vadd.xlane.f32.xlu1 %v4943_v8 }
0x343f   :  { %v4945_v0 = vpop.xlane.xlu1 %4944 }
0x3440   :  { %7410 = vrcp.f32 %v4945_v0 }
0x344a   :  { %v7411_v45 = vpop.eup %7410 }
0x344b   :  { %v8354_v29 = vmul.f32 %v7411_v45, %v7409_v60 }
0x344d   :  { %6786 = vmatmul.mubr.msk.f32.vlgmr.msra.gmra.mrb[58].mxu0 %vm311_vm8, %v8354_v29 }
0x344e   :  { %7260 = vmatpush3.bf16.msra.mxu0 %v7726_v14  ;;  %6807 = vmatprep.mubr.msk.f32.mxu0 %vm7540_vm0, %v7541_v1 }
0x344f   :  { %7261 = vmatprep.subr.bf16.mxu0 %v8651_v21 }
0x3452   :  { %7263 = vmatpush3.bf16.msra.mxu0 %v7730_v19 }
0x3453   :  { %7270 = vmatprep.subr.bf16.mxu0 %v8651_v21 }
0x3520   :  { %v5017_v35 = vpop.f32.mrb[58].mxu0 }
0x3521   :  { %v6787_v24 = vpop.f32.mrb[59].mxu0  ;;  %6797 = vmatmul.mubr.msk.f32.vlgmr.msra.gmra.mrb[60].mxu1 %vm137_vm3, %v5017_v35 }
0x3522   :  { %7266 = vmatpush3.bf16.msra.mxu1 %v7767_v55  ;;  %6818 = vmatprep.mubr.msk.f32.mxu1 %vm7540_vm0, %v7541_v1 }
0x3523   :  { %7267 = vmatprep.subr.bf16.mxu1 %v8651_v21 }
0x3526   :  { %7269 = vmatpush3.bf16.msra.mxu1 %v7770_v59 }
0x3527   :  { %7277 = vmatprep.subr.bf16.mxu1 %v7623_v15 }
0x35f4   :  { %v5090_v0 = vpop.f32.mrb[60].mxu1 }
0x35f5   :  { %v5094_v28 = vadd.f32 %v5090_v0, %v4861_v56  ;;  %v6798_v39 = vpop.f32.mrb[61].mxu1  ;;  %v5180_v0 = vpop.permute.xlu0 %5179 }
0x35f7   :  { %v5095_v52 = vadd.f32 %v8142_v26, %v5094_v28 }
0x35f9   :  { %v5096_v54 = vmax.f32 %v5095_v52, 0.0 }
0x35fb   :  { %6808 = vmatmul.mubr.msk.f32.vlgmr.msra.gmra.mrb[60].mxu0 %vm137_vm3, %v5096_v54 }
0x35fc   :  { %7272 = vmatpush3.bf16.msra.mxu0 %v7612_v6  ;;  %6831 = vmatprep.mubr.msk.f32.mxu0 %vm7540_vm0, %v7541_v1 }
0x35fd   :  { %7273 = vmatprep.subr.bf16.mxu0 %v8651_v21 }
0x3600   :  { %7275 = vmatpush3.bf16.msra.mxu0 %v7621_v13  ;;  %v5289_v13 = vstv %s6093_s30 }
0x3601   :  { %6829 = vmatprep.subr.mxu0 %v7541_v1  ;;  %vm5290_vm6 = vcmp.eq.s32.totalorder %v7618_v9, %v5289_v13 }
0x3604   :  { %6830 = vmatpush3.msra.mxu0 %v8061_v37 }
0x3605   :  { %7285 = vmatprep.subr.bf16.mxu0 %v7650_v27  ;;  %v6094_v27 = vsel %vm5290_vm6, 1.0, %v7541_v1 }
0x3606   :  { %6832 = vmatmul.mubr.msk.f32.vlgmr.msra.gmra.mrb[62].mxu0 %vm55_vm2, %v6094_v27 }
0x3607   :  { %7287 = vmatpush1.bf16.msra.mxu0 %v7653_v32  ;;  %5504 = vmatprep.mubr.f32.mxu0 %v7541_v1 }
0x3608   :  { %7289 = vmatprep.subr.bf16.mxu0 %v7655_v33 }
0x360b   :  { %7291 = vmatpush1.bf16.msra.mxu0 %v7659_v38 }
0x360c   :  { %7296 = vmatprep.subr.bf16.mxu0 %v8651_v21 }
0x36ce   :  { %v5166_v15 = vpop.f32.mrb[60].mxu0 }
0x36cf   :  { %v5167_v56 = vadd.f32 %v8157_v34, %v5166_v15  ;;  %v6809_v60 = vpop.f32.mrb[61].mxu0 }
0x36d1   :  { %v5171_v8 = vadd.f32 %v5170_v46, %v5167_v56 }
0x36d3   :  { %v6091_v45 = vmul.f32 -1.442695, %v5171_v8 }
0x36d5   :  { %7412 = vpow2.f32 %v6091_v45 }
0x36d9   :  { %v5362_v9 = vpop.f32.mrb[62].mxu0 }
0x36da   :  { %v6833_v52 = vpop.f32.mrb[63].mxu0 }
0x36df   :  { %v7413_v6 = vpop.eup %7412 }
0x36e0   :  { %v5175_v35 = vadd.f32 1.0, %v7413_v6 }
0x36e2   :  { %7414 = vrcp.f32 %v5175_v35 }
0x36ec   :  { %v7415_v24 = vpop.eup %7414 }
0x36ed   :  { %v5182_v28 = vmul.f32 %v7415_v24, %v5180_v0  ;;  %v5189_v54 = vsub.f32 1.0, %v7415_v24  ;;  %v5195_v32 = vmul.f32 %v7415_v24, %v8319_v10 }
0x36ef   :  { %5184 = vrot.lane.b32.xlu1 %v5182_v28, %s7542_s5 }
0x3761   :  { %v5185_v37 = vpop.permute.xlu1 %5184 }
0x3762   :  { %v5187_v46 = vadd.f32 %v5185_v37, %v5167_v56 }
0x3764   :  { %7416 = vtanh.f32 %v5187_v46 }
0x376e   :  { %v7417_v39 = vpop.eup %7416 }
0x376f   :  { %5191 = vrot.lane.b32.xlu0 %v7417_v39, %s7545_s15 }
0x37e1   :  { %v5192_v15 = vpop.permute.xlu0 %5191 }
0x37e2   :  { %v5194_v60 = vmul.f32 %v5192_v15, %v5189_v54 }
0x37e4   :  { %v8393_v8 = vadd.f32 %v5195_v32, %v5194_v60 }
0x37e6   :  { %5198 = vrot.lane.b32.xlu1 %v8393_v8, %s7545_s15 }
0x3858   :  { %v8397_v33 = vpop.permute.xlu1 %5198 }
0x3859   :  { %6819 = vmatmul.mubr.msk.f32.vlgmr.msra.gmra.mrb[62].mxu1 %vm137_vm3, %v8397_v33  ;;  %6097 = vmatmul.mubr.msk.f32.vlgmr.msra.gmra.mrb[64].mxu0 %vm137_vm3, %v8397_v33 }
0x385a   :  { %7279 = vmatpush1.bf16.msra.mxu1 %v7625_v16  ;;  %5433 = vmatprep.mubr.f32.mxu1 %v7541_v1 }
0x385b   :  { %7281 = vmatprep.subr.bf16.mxu1 %v7628_v20  ;;  %7298 = vmatpush3.bf16.msra.mxu0 %v7709_v62 }
0x385c   :  { %7299 = vmatprep.subr.bf16.mxu0 %v8651_v21  ;;  %6849 = vmatprep.mubr.msk.f32.mxu0 %vm7540_vm0, %v7541_v1 }
0x385e   :  { %7283 = vmatpush1.bf16.msra.mxu1 %v7633_v22 }
0x385f   :  { %7292 = vmatprep.subr.bf16.mxu1 %v8651_v21  ;;  %7301 = vmatpush3.bf16.msra.mxu0 %v7712_v3 }
0x3860   :  { %7308 = vmatprep.subr.bf16.mxu0 %v8651_v21 }
0x3861   :  { %6096 = vmatmul.mubr.msk.f32.vlgmr.msra.gmra.mrb[64].mxu1 %vm137_vm3, %v5362_v9 }
0x3862   :  { %7295 = vmatpush3.bf16.msk.msra.mxu1 %vm7701_vm7, %v7698_v57  ;;  %6838 = vmatprep.mubr.msk.f32.mxu1 %vm7540_vm0, %v7541_v1  ;;  %vm5909_vm7 = vcmask 1042432  }
0x3863   :  { %7302 = vmatprep.subr.bf16.mxu1 %v8651_v21 }
0x392c   :  { %v8421_v16 = vpop.f32.mrb[62].mxu1  ;;  %v5506_v20 = vpop.f32.mrb[64].mxu0 }
0x392d   :  { %v6820_v22 = vpop.f32.mrb[63].mxu1  ;;  %v5508_v38 = vpop.f32.mrb[65].mxu0 }
0x392e   :  { %v5746_v57 = vadd.f32 %v8117_v47, %v5508_v38 }
0x3934   :  { %v5435_v62 = vpop.f32.mrb[64].mxu1 }
0x3935   :  { %v5511_v3 = vadd.f32 %v5506_v20, %v5435_v62  ;;  %v5437_v10 = vpop.f32.mrb[65].mxu1 }
0x3937   :  { %v5512_v56 = vadd.f32 %v8110_v40, %v5511_v3 }
0x3939   :  { %v5513_v45 = vsel %vm297_vm4, %v5512_v56, -inf }
0x393a   :  { %5514 = vmax.xlane.f32.xlu0 %v5513_v45 }
0x3950   :  { %5755 = vrot.lane.b32.xlu0 %v5746_v57, %s7542_s5 }
0x39c7   :  { %v5515_v58 = vpop.xlane.xlu0 %5514 }
0x39c8   :  { %v5516_v6 = vsub.f32 %v5512_v56, %v5515_v58 }
0x39ca   :  { %v5517_v35 = vmul.f32 1.442695, %v5516_v6 }
0x39cc   :  { %7418 = vpow2.f32 %v5517_v35 }
0x39d6   :  { %v7419_v24 = vpop.eup %7418 }
0x39d7   :  { %v5519_v0 = vsel %vm297_vm4, %v7419_v24, 0.0  ;;  %vm5906_vm4 = vcmask 1040384  }
0x39d8   :  { %5520 = vadd.xlane.f32.xlu1 %v5519_v0 }
0x3a65   :  { %v5521_v28 = vpop.xlane.xlu1 %5520 }
0x3a66   :  { %7420 = vrcp.f32 %v5521_v28 }
0x3a70   :  { %v7421_v13 = vpop.eup %7420 }
0x3a71   :  { %v8428_v27 = vmul.f32 %v7421_v13, %v7419_v24 }
0x3a73   :  { %6839 = vmatmul.mubr.msk.f32.vlgmr.msra.gmra.mrb[66].mxu1 %vm311_vm8, %v8428_v27 }
0x3a74   :  { %7304 = vmatpush3.bf16.msra.mxu1 %v7726_v14  ;;  %6860 = vmatprep.mubr.msk.f32.mxu1 %vm7540_vm0, %v7541_v1 }
0x3a75   :  { %7305 = vmatprep.subr.bf16.mxu1 %v8651_v21 }
0x3a78   :  { %7307 = vmatpush3.bf16.msra.mxu1 %v7730_v19 }
0x3b46   :  { %v5593_v40 = vpop.f32.mrb[66].mxu1 }
0x3b47   :  { %v6840_v47 = vpop.f32.mrb[67].mxu1  ;;  %6850 = vmatmul.mubr.msk.f32.vlgmr.msra.gmra.mrb[66].mxu0 %vm137_vm3, %v5593_v40 }
0x3b48   :  { %7310 = vmatpush3.bf16.msra.mxu0 %v7767_v55  ;;  %6871 = vmatprep.mubr.msk.f32.mxu0 %vm7540_vm0, %v7541_v1  ;;  %vm663_vm0 = vcmask 319488  }
0x3b49   :  { %7311 = vmatprep.subr.bf16.mxu0 %v8651_v21 }
0x3b4c   :  { %7313 = vmatpush3.bf16.msra.mxu0 %v7770_v59  ;;  %v5756_v59 = vpop.permute.xlu0 %5755 }
0x3c1a   :  { %v5666_v14 = vpop.f32.mrb[66].mxu0 }
0x3c1b   :  { %v5670_v37 = vadd.f32 %v5666_v14, %v5437_v10  ;;  %v6851_v46 = vpop.f32.mrb[67].mxu0 }
0x3c1d   :  { %v5671_v39 = vadd.f32 %v8142_v26, %v5670_v37 }
0x3c1f   :  { %v5672_v9 = vmax.f32 %v5671_v39, 0.0 }
0x3c21   :  { %6861 = vmatmul.mubr.msk.f32.vlgmr.msra.gmra.mrb[68].mxu1 %vm137_vm3, %v5672_v9 }
0x3cf4   :  { %v5742_v19 = vpop.f32.mrb[68].mxu1 }
0x3cf5   :  { %v5743_v52 = vadd.f32 %v8157_v34, %v5742_v19  ;;  %v6862_v54 = vpop.f32.mrb[69].mxu1  ;;  %v8451_v34 = vld [vmem:[%s8644_s4 + $0x4] sm:$0x1]  ;;  %s7546_s4 = smov [#allocation7]  }
0x3cf6   :  { %v2389_v38 = vadd.f32 %v8026_v63, %v8451_v34  ;;  %v660_v62 = vadd.f32 %v7804_v18, %v8451_v34  ;;  %v8460_v10 = vadd.f32 %v7878_v12, %v8451_v34  ;;  %v8465_v45 = vadd.f32 %v8347_v2, %v8451_v34 }
0x3cf7   :  { %v5747_v55 = vadd.f32 %v5746_v57, %v5743_v52  ;;  %v8475_v2 = vadd.f32 %v8273_v31, %v8451_v34  ;;  %v2965_v24 = vadd.f32 %v8105_v50, %v8451_v34  ;;  %v5269_v28 = vadd.f32 %v8421_v16, %v8451_v34 }
0x3cf8   :  { %v2392_v3 = vsel %vm663_vm0, %v2389_v38, -inf  ;;  %v664_v56 = vsel %vm663_vm0, %v660_v62, -inf  ;;  %v1240_v63 = vsel %vm663_vm0, %v8460_v10, -inf  ;;  %v4696_v18 = vsel %vm663_vm0, %v8465_v45, -inf }
0x3cf9   :  { %v6102_v15 = vmul.f32 -1.442695, %v5747_v55  ;;  %v4120_v0 = vsel %vm663_vm0, %v8475_v2, -inf  ;;  %v1813_v13 = vadd.f32 %v7952_v41, %v8451_v34  ;;  %v5272_v40 = vsel %vm663_vm0, %v5269_v28, -inf }
0x3cfb   :  { %7422 = vpow2.f32 %v6102_v15  ;;  %v1816_v31 = vsel %vm663_vm0, %v1813_v13, -inf }
0x3d05   :  { %v7423_v1 = vpop.eup %7422 }
0x3d06   :  { %v5751_v32 = vadd.f32 1.0, %v7423_v1 }
0x3d08   :  { %7424 = vrcp.f32 %v5751_v32 }
0x3d12   :  { %v7425_v21 = vpop.eup %7424 }
0x3d13   :  { %v5758_v60 = vmul.f32 %v7425_v21, %v5756_v59  ;;  %v5765_v57 = vsub.f32 1.0, %v7425_v21  ;;  %v5771_v12 = vmul.f32 %v7425_v21, %v8393_v8  ;;  %v2968_v8 = vsel %vm663_vm0, %v2965_v24, -inf }
0x3d15   :  { %5760 = vrot.lane.b32.xlu1 %v5758_v60, %s7542_s5  ;;  %s5983_s5 = sshll.u32 %s7546_s4, 4  ;;  %s5984_s5 = int_to_ptr.vmem [resolvable:$true] %s5983_s5 }
0x3d16   :  { %s7507_s9 = scalar_lea.vmem %s5984_s5, 512  ;;  %p7512_p0 = scmp.lt.s32.totalorder %s5984_s5, %s5984_s5 }
0x3d17   :  { %p7508_p13 = scmp.ne.s32.totalorder %s5984_s5, %s7507_s9  ;;  %p7513_p1 = scmp.lt.s32.totalorder %s7507_s9, %s7507_s9 }
0x3d19   :  { %p7514_p2 = por %p7513_p1, %p7512_p0 }
0x3d1b   :  { %p7515_p3 = pnand %p7514_p2, %p7508_p13 }
0x3d87   :  { %v5761_v20 = vpop.permute.xlu1 %5760 }
0x3d88   :  { %v5763_v26 = vadd.f32 %v5761_v20, %v5743_v52 }
0x3d8a   :  { %7426 = vtanh.f32 %v5763_v26 }
0x3d94   :  { %v7427_v22 = vpop.eup %7426 }
0x3d95   :  { %5767 = vrot.lane.b32.xlu0 %v7427_v22, %s7545_s15 }
0x3db4   :  { %2393 = vmax.xlane.f32.xlu0 %v2392_v3 }
0x3db8   :  { %665 = vmax.xlane.f32.xlu0 %v664_v56 }
0x3dbc   :  { %1241 = vmax.xlane.f32.xlu0 %v1240_v63 }
0x3dc0   :  { %4697 = vmax.xlane.f32.xlu0 %v4696_v18 }
0x3e07   :  { %v5768_v58 = vpop.permute.xlu0 %5767 }
0x3e08   :  { %v5770_v6 = vmul.f32 %v5768_v58, %v5765_v57 }
0x3e0a   :  { %v5772_v35 = vadd.f32 %v5771_v12, %v5770_v6  ;;  %v2406_v6 = vsel %vm137_vm3, %v8002_v51, 0.0 }
0x3e0c   :  { %5774 = vrot.lane.b32.xlu1 %v5772_v35, %s7545_s15  ;;  %v2407_v35 = vsel %vm311_vm8, %v7959_v48, 0.0 }
0x3e30   :  { %4121 = vmax.xlane.f32.xlu1 %v4120_v0 }
0x3e34   :  { %2969 = vmax.xlane.f32.xlu1 %v2968_v8  ;;  %v5889_v8 = vrot.slane %v2406_v6, 6 }
0x3e38   :  { %5273 = vmax.xlane.f32.xlu1 %v5272_v40 }
0x3e3c   :  { %1817 = vmax.xlane.f32.xlu1 %v1816_v31 }
0x3e41   :  { %v2394_v50 = vpop.xlane.xlu0 %2393 }
0x3e42   :  { %v2395_v47 = vsub.f32 %v2389_v38, %v2394_v50 }
0x3e44   :  { %v2396_v14 = vmul.f32 1.442695, %v2395_v47 }
0x3e45   :  { %v666_v37 = vpop.xlane.xlu0 %665 }
0x3e46   :  { %7428 = vpow2.f32 %v2396_v14  ;;  %v8488_v46 = vsub.f32 %v660_v62, %v666_v37 }
0x3e48   :  { %v668_v16 = vmul.f32 1.442695, %v8488_v46 }
0x3e49   :  { %v1242_v51 = vpop.xlane.xlu0 %1241 }
0x3e4a   :  { %7430 = vpow2.f32 %v668_v16  ;;  %v8523_v48 = vsub.f32 %v8460_v10, %v1242_v51  ;;  %v3541_v10 = vadd.f32 %v8199_v42, %v8451_v34 }
0x3e4c   :  { %v1244_v37 = vmul.f32 1.442695, %v8523_v48 }
0x3e50   :  { %v7429_v39 = vpop.eup %7428 }
0x3e51   :  { %v2398_v9 = vsel %vm663_vm0, %v7429_v39, 0.0 }
0x3e52   :  { %2399 = vadd.xlane.f32.xlu1 %v2398_v9 }
0x3e54   :  { %v7431_v41 = vpop.eup %7430 }
0x3e55   :  { %v670_v19 = vsel %vm663_vm0, %v7431_v41, 0.0 }
0x3e56   :  { %671 = vadd.xlane.f32.xlu1 %v670_v19 }
0x3e7e   :  { %v8493_v52 = vpop.permute.xlu1 %5774 }
0x3e7f   :  { %6872 = vmatmul.mubr.msk.f32.vlgmr.msra.gmra.mrb[68].mxu0 %vm137_vm3, %v8493_v52 }
0x3ebd   :  { %v4122_v54 = vpop.xlane.xlu1 %4121 }
0x3ec1   :  { %v2970_v55 = vpop.xlane.xlu1 %2969 }
0x3ec2   :  { %v8497_v15 = vsub.f32 %v2965_v24, %v2970_v55 }
0x3ec4   :  { %v2972_v1 = vmul.f32 1.442695, %v8497_v15 }
0x3ec5   :  { %v5274_v32 = vpop.xlane.xlu1 %5273 }
0x3ec6   :  { %7432 = vpow2.f32 %v2972_v1  ;;  %v8500_v21 = vsub.f32 %v5269_v28, %v5274_v32  ;;  %v1831_v28 = vsel %vm311_vm8, %v7885_v5, 0.0  ;;  %v4698_v5 = vpop.xlane.xlu0 %4697 }
0x3ec7   :  { %v8528_v16 = vsub.f32 %v8465_v45, %v4698_v5 }
0x3ec8   :  { %v5276_v59 = vmul.f32 1.442695, %v8500_v21 }
0x3ec9   :  { %v1818_v60 = vpop.xlane.xlu1 %1817 }
0x3eca   :  { %7434 = vpow2.f32 %v5276_v59  ;;  %v8503_v20 = vsub.f32 %v1813_v13, %v1818_v60  ;;  %v5892_v13 = vrot.slane %v2407_v35, 5 }
0x3ecc   :  { %v1820_v26 = vmul.f32 1.442695, %v8503_v20 }
0x3ece   :  { %7436 = vpow2.f32 %v1820_v26 }
0x3ed0   :  { %v7433_v22 = vpop.eup %7432 }
0x3ed1   :  { %v2974_v38 = vsel %vm663_vm0, %v7433_v22, 0.0 }
0x3ed2   :  { %2975 = vadd.xlane.f32.xlu1 %v2974_v38 }
0x3ed4   :  { %v7435_v62 = vpop.eup %7434 }
0x3ed5   :  { %v5278_v3 = vsel %vm663_vm0, %v7435_v62, 0.0 }
0x3ed6   :  { %5279 = vadd.xlane.f32.xlu1 %v5278_v3 }
0x3ed8   :  { %v7437_v56 = vpop.eup %7436 }
0x3ed9   :  { %v1822_v63 = vsel %vm663_vm0, %v7437_v56, 0.0  ;;  %v2983_v56 = vsel %vm311_vm8, %v8033_v23, 0.0 }
0x3eda   :  { %1823 = vadd.xlane.f32.xlu1 %v1822_v63  ;;  %v2982_v63 = vsel %vm137_vm3, %v8081_v44, 0.0  ;;  %v5901_v23 = vrot.slane %v2983_v56, 2 }
0x3edf   :  { %v2400_v18 = vpop.xlane.xlu1 %2399 }
0x3ee0   :  { %7438 = vlog2.f32 %v2400_v18  ;;  %v5286_v18 = vsel %vm137_vm3, %v8397_v33, 0.0 }
0x3ee3   :  { %v672_v45 = vpop.xlane.xlu1 %671 }
0x3eea   :  { %v7439_v57 = vpop.eup %7438 }
0x3eeb   :  { %v2402_v58 = vmul.f32 0.6931472, %v7439_v57 }
0x3eed   :  { %v2403_v12 = vsub.f32 %v2395_v47, %v2402_v58  ;;  %v8520_v47 = vsub.f32 %v8475_v2, %v4122_v54  ;;  %v4700_v2 = vmul.f32 1.442695, %v8528_v16  ;;  %v3544_v54 = vsel %vm663_vm0, %v3541_v10, -inf }
0x3eef   :  { %v2404_v24 = vsel %vm55_vm2, %v2403_v12, 0.0  ;;  %v4124_v14 = vmul.f32 1.442695, %v8520_v47  ;;  %v5287_v12 = vsel %vm311_vm8, %v8354_v29, 0.0 }
0x3ef0   :  { %v5886_v0 = vrot.slane %v2404_v24, 7  ;;  %v5948_v24 = vrot.slane %v5286_v18, 7 }
0x3ef1   :  { %7440 = vpow2.f32 %v4124_v14 }
0x3ef2   :  { %v5919_v40 = vsel %vm5906_vm4, %v1831_v28, %v5886_v0  ;;  %7442 = vpow2.f32 %v1244_v37  ;;  %v5951_v0 = vrot.slane %v5287_v12, 6 }
0x3ef3   :  { %v5920_v31 = vsel %vm315_vm5, %v5919_v40, %v5889_v8  ;;  %7444 = vpow2.f32 %v4700_v2 }
0x3ef4   :  { %v5921_v50 = vsel %vm5909_vm7, %v5920_v31, %v5892_v13 }
0x3efb   :  { %v7441_v55 = vpop.eup %7440 }
0x3efc   :  { %v4126_v1 = vsel %vm663_vm0, %v7441_v55, 0.0  ;;  %v7443_v32 = vpop.eup %7442 }
0x3efd   :  { %v1246_v60 = vsel %vm663_vm0, %v7443_v32, 0.0  ;;  %v7445_v26 = vpop.eup %7444 }
0x3f52   :  { %v5844_v39 = vpop.f32.mrb[68].mxu0 }
0x3f53   :  { %v5845_v9 = vadd.f32 %v5844_v39, %v8451_v34  ;;  %v6873_v41 = vpop.f32.mrb[69].mxu0  ;;  %v4702_v34 = vsel %vm663_vm0, %v7445_v26, 0.0 }
0x3f55   :  { %v5848_v19 = vsel %vm663_vm0, %v5845_v9, -inf }
0x3f56   :  { %5849 = vmax.xlane.f32.xlu0 %v5848_v19 }
0x3f5a   :  { %3545 = vmax.xlane.f32.xlu0 %v3544_v54 }
0x3f5e   :  { %4127 = vadd.xlane.f32.xlu0 %v4126_v1  ;;  %v678_v1 = vsel %vm137_vm3, %v7780_v17, 0.0  ;;  %v3558_v17 = vsel %vm137_vm3, %v8175_v36, 0.0 }
0x3f5f   :  { %v2976_v59 = vpop.xlane.xlu1 %2975 }
0x3f60   :  { %7446 = vlog2.f32 %v2976_v59 }
0x3f62   :  { %1247 = vadd.xlane.f32.xlu0 %v1246_v60 }
0x3f63   :  { %v5280_v42 = vpop.xlane.xlu1 %5279 }
0x3f64   :  { %7448 = vlog2.f32 %v5280_v42  ;;  %v3559_v42 = vsel %vm311_vm8, %v8122_v61, 0.0  ;;  %v4135_v61 = vsel %vm311_vm8, %v8206_v25, 0.0 }
0x3f65   :  { %7450 = vlog2.f32 %v672_v45 }
0x3f66   :  { %4703 = vadd.xlane.f32.xlu0 %v4702_v34 }
0x3f67   :  { %v1824_v51 = vpop.xlane.xlu1 %1823 }
0x3f6a   :  { %v7447_v22 = vpop.eup %7446 }
0x3f6b   :  { %v2978_v38 = vmul.f32 0.6931472, %v7447_v22  ;;  %v679_v22 = vsel %vm311_vm8, %v7717_v7, 0.0 }
0x3f6d   :  { %v2979_v62 = vsub.f32 %v8497_v15, %v2978_v38  ;;  %v5898_v15 = vrot.slane %v2982_v63, 3  ;;  %v5865_v38 = vrot.slane %v678_v1, 7  ;;  %v5927_v63 = vrot.slane %v3559_v42, 7 }
0x3f6e   :  { %v7449_v3 = vpop.eup %7448  ;;  %v5863_v42 = vsel %vm311_vm8, %v8428_v27, 0.0 }
0x3f6f   :  { %v2980_v57 = vsel %vm55_vm2, %v2979_v62, 0.0  ;;  %v5282_v58 = vmul.f32 0.6931472, %v7449_v3  ;;  %v7451_v41 = vpop.eup %7450 }
0x3f70   :  { %v5895_v6 = vrot.slane %v2980_v57, 4  ;;  %v5868_v57 = vrot.slane %v679_v22, 6 }
0x3f71   :  { %v5283_v35 = vsub.f32 %v8500_v21, %v5282_v58 }
0x3f72   :  { %v5922_v44 = vsel %vm5911_vm9, %v5921_v50, %v5895_v6  ;;  %v5962_v6 = vsel %vm5906_vm4, %v3558_v17, %v5927_v63 }
0x3f73   :  { %v5923_v33 = vsel %vm5913_vm10, %v5922_v44, %v5898_v15  ;;  %v5284_v28 = vsel %vm55_vm2, %v5283_v35, 0.0  ;;  %v5936_v35 = vrot.slane %v4135_v61, 4 }
0x3f74   :  { %v5969_v8 = vsel %vm5906_vm4, %v5284_v28, %v5948_v24  ;;  %v8555_v13 = vsel %vm5915_vm11, %v5923_v33, %v5901_v23 }
0x3f75   :  { %v8558_v29 = vsel %vm315_vm5, %v5969_v8, %v5951_v0 }
0x3fe3   :  { %v5850_v40 = vpop.xlane.xlu0 %5849 }
0x3fe4   :  { %v8560_v21 = vsub.f32 %v5845_v9, %v5850_v40  ;;  %v674_v9 = vmul.f32 0.6931472, %v7451_v41 }
0x3fe6   :  { %v5852_v31 = vmul.f32 1.442695, %v8560_v21  ;;  %v675_v32 = vsub.f32 %v8488_v46, %v674_v9  ;;  %v4134_v46 = vsel %vm137_vm3, %v8249_v30, 0.0  ;;  %v1255_v30 = vsel %vm311_vm8, %v7811_v49, 0.0 }
0x3fe7   :  { %v3546_v50 = vpop.xlane.xlu0 %3545  ;;  %v5933_v15 = vrot.slane %v4134_v46, 5  ;;  %v1830_v49 = vsel %vm137_vm3, %v7928_v4, 0.0  ;;  %v5877_v40 = vrot.slane %v1255_v30, 3  ;;  %v5960_v46 = vrot.slane %v5863_v42, 3 }
0x3fe8   :  { %7452 = vpow2.f32 %v5852_v31  ;;  %v8563_v14 = vsub.f32 %v3541_v10, %v3546_v50  ;;  %v676_v3 = vsel %vm55_vm2, %v675_v32, 0.0  ;;  %v4711_v31 = vsel %vm311_vm8, %v8280_v53, 0.0 }
0x3fe9   :  { %7454 = vlog2.f32 %v1824_v51  ;;  %v5907_v25 = vsel %vm5906_vm4, %v676_v3, %v5865_v38  ;;  %v4710_v50 = vsel %vm137_vm3, %v8323_v11, 0.0 }
0x3fea   :  { %v3548_v5 = vmul.f32 1.442695, %v8563_v14  ;;  %v5908_v33 = vsel %vm315_vm5, %v5907_v25, %v5868_v57 }
0x3feb   :  { %v4128_v37 = vpop.xlane.xlu0 %4127 }
0x3fec   :  { %7456 = vpow2.f32 %v3548_v5 }
0x3fed   :  { %7458 = vlog2.f32 %v4128_v37 }
0x3fef   :  { %v1248_v39 = vpop.xlane.xlu0 %1247 }
0x3ff0   :  { %7460 = vlog2.f32 %v1248_v39  ;;  %v5883_v39 = vrot.slane %v1830_v49, 1 }
0x3ff2   :  { %v7453_v2 = vpop.eup %7452 }
0x3ff3   :  { %v4704_v19 = vpop.xlane.xlu0 %4703  ;;  %v5854_v54 = vsel %vm663_vm0, %v7453_v2, 0.0  ;;  %v7455_v55 = vpop.eup %7454 }
0x3ff4   :  { %7462 = vlog2.f32 %v4704_v19  ;;  %5855 = vadd.xlane.f32.xlu0 %v5854_v54  ;;  %v1826_v60 = vmul.f32 0.6931472, %v7455_v55  ;;  %v5945_v19 = vrot.slane %v4711_v31, 1 }
0x3ff6   :  { %v7457_v45 = vpop.eup %7456  ;;  %v1827_v18 = vsub.f32 %v8503_v20, %v1826_v60 }
0x3ff7   :  { %v7459_v10 = vpop.eup %7458  ;;  %v3550_v59 = vsel %vm663_vm0, %v7457_v45, 0.0 }
0x3ff8   :  { %v4130_v26 = vmul.f32 0.6931472, %v7459_v10  ;;  %3551 = vadd.xlane.f32.xlu0 %v3550_v59 }
0x3ffa   :  { %v7461_v34 = vpop.eup %7460  ;;  %v4131_v62 = vsub.f32 %v8520_v47, %v4130_v26  ;;  %v1254_v47 = vsel %vm137_vm3, %v7854_v43, 0.0  ;;  %v1828_v43 = vsel %vm55_vm2, %v1827_v18, 0.0  ;;  %v5862_v26 = vsel %vm137_vm3, %v8493_v52, 0.0 }
0x3ffb   :  { %v1250_v56 = vmul.f32 0.6931472, %v7461_v34  ;;  %v5874_v44 = vrot.slane %v1254_v47, 4  ;;  %v5880_v5 = vrot.slane %v1828_v43, 2 }
0x3ffc   :  { %v4132_v7 = vsel %vm55_vm2, %v4131_v62, 0.0  ;;  %v5957_v62 = vrot.slane %v5862_v26, 4 }
0x3ffd   :  { %v5930_v58 = vrot.slane %v4132_v7, 6  ;;  %v1251_v36 = vsub.f32 %v8523_v48, %v1250_v56 }
0x3ffe   :  { %v7463_v12 = vpop.eup %7462 }
0x3fff   :  { %v5963_v20 = vsel %vm315_vm5, %v5962_v6, %v5930_v58  ;;  %v1252_v23 = vsel %vm55_vm2, %v1251_v36, 0.0  ;;  %v4706_v24 = vmul.f32 0.6931472, %v7463_v12 }
0x4000   :  { %v5964_v48 = vsel %vm5909_vm7, %v5963_v20, %v5933_v15  ;;  %v5871_v0 = vrot.slane %v1252_v23, 5 }
0x4001   :  { %v5965_v28 = vsel %vm5911_vm9, %v5964_v48, %v5936_v35  ;;  %v4707_v8 = vsub.f32 %v8528_v16, %v4706_v24  ;;  %v5942_v16 = vrot.slane %v4710_v50, 2 }
0x4002   :  { %v5910_v51 = vsel %vm5909_vm7, %v5908_v33, %v5871_v0 }
0x4003   :  { %v5912_v37 = vsel %vm5911_vm9, %v5910_v51, %v5874_v44  ;;  %v4708_v4 = vsel %vm55_vm2, %v4707_v8, 0.0 }
0x4004   :  { %v5914_v41 = vsel %vm5913_vm10, %v5912_v37, %v5877_v40  ;;  %v5939_v2 = vrot.slane %v4708_v4, 3 }
0x4005   :  { %v5916_v9 = vsel %vm5915_vm11, %v5914_v41, %v5880_v5 }
0x4006   :  { %v5966_v53 = vsel %vm5913_vm10, %v5965_v28, %v5939_v2  ;;  %v5918_v11 = vsel %vm5917_vm12, %v5916_v9, %v5883_v39 }
0x4007   :  { %v5967_v54 = vsel %vm5915_vm11, %v5966_v53, %v5942_v16  ;;  %5974 = vst [vmem:[#allocation7] sm:$0xff] %v5918_v11 }
0x4008   :  { %v5968_v55 = vsel %vm5917_vm12, %v5967_v54, %v5945_v19 }
0x4009   :  { %5976 = vst [vmem:[#allocation7 + $0x10] sm:$0xff] %v5968_v55 }
0x4081   :  { %v5856_v45 = vpop.xlane.xlu0 %5855 }
0x4082   :  { %7464 = vlog2.f32 %v5856_v45 }
0x4085   :  { %v3552_v10 = vpop.xlane.xlu0 %3551 }
0x4086   :  { %7466 = vlog2.f32 %v3552_v10 }
0x408c   :  { %v7465_v1 = vpop.eup %7464 }
0x408d   :  { %v5858_v32 = vmul.f32 0.6931472, %v7465_v1 }
0x408f   :  { %v5859_v59 = vsub.f32 %v8560_v21, %v5858_v32 }
0x4090   :  { %v7467_v60 = vpop.eup %7466 }
0x4091   :  { %v5860_v34 = vsel %vm55_vm2, %v5859_v59, 0.0  ;;  %v3554_v22 = vmul.f32 0.6931472, %v7467_v60 }
0x4092   :  { %v5954_v38 = vrot.slane %v5860_v34, 5 }
0x4093   :  { %v3555_v17 = vsub.f32 %v8563_v14, %v3554_v22 }
0x4094   :  { %v5971_v3 = vsel %vm5909_vm7, %v8558_v29, %v5954_v38 }
0x4095   :  { %v5972_v21 = vsel %vm5911_vm9, %v5971_v3, %v5957_v62  ;;  %v3556_v52 = vsel %vm55_vm2, %v3555_v17, 0.0 }
0x4096   :  { %v5904_v56 = vrot.slane %v3556_v52, 1  ;;  %v5973_v27 = vsel %vm5913_vm10, %v5972_v21, %v5960_v46 }
0x4097   :  { %5977 = vst [vmem:[#allocation7 + $0x18] sm:$0x3f] %v5973_v27 }
0x4098   :  { %v5925_v63 = vsel %vm5917_vm12, %v8555_v13, %v5904_v56 }
0x4099   :  { %5975 = vst [vmem:[#allocation7 + $0x8] sm:$0xff] %v5925_v63 }
0x409a   :  { %7518 = shalt.err (!%p7515_p3)
}
0x409b   :  { %s7519_s11 = scalar_lea.hbm %s8646_s6, 512 }
0x409c   :  { %p7520_p4 = scmp.ne.s32.totalorder %s8646_s6, %s7519_s11  ;;  %p7523_p5 = scmp.lt.u32.totalorder %s7519_s11, %s8646_s6 }
0x409e   :  { %p7525_p6 = pnand %p7523_p5, %p7520_p4 }
0x40a0   :  { %7528 = shalt.err (!%p7525_p6)
}
0x40a1   :  { %s7547_s16 = smov 128   ;;  %s7548_s17 = smov 8  }
0x40a2   :  { %5989 = dma.vmem_to_hbm [thread:$0]  %s5984_s5, 512, %s8646_s6, [#allocation6], %s7547_s16, %s7547_s16, %s7548_s17  }
0x40a3   :  { %7533 = dma.done.wait [#allocation6], 512  }
0x40a4   :  { %7534 = vsyncadd [#allocation6], 4294966784 }
0x40a5   :  { %5993 = vsyncpa [#allocation5], 1 }
0x40a6   :  { %5994 = vsyncpa [#allocation6], 1 }

</bundles_post_ra>
